<compile_context>
chip_gen: v7x
topology: tpu7x:2x2x1
jax: 0.10.0
libtpu: 0.0.40
codegen_flags: <defaults>
</compile_context>

<pallas_src>
import functools

import jax
import jax.numpy as jnp
from jax.experimental import pallas as pl
from jax.experimental.pallas import tpu as pltpu

# ----------------------------- config ---------------------------------------
N_LAYERS = 2
EMBED_DIM = 32
NUM_HEADS = 4
R = 4
HEAD_DIM = EMBED_DIM // NUM_HEADS
HIDDEN = EMBED_DIM * R
LEAKY_SLOPE = 0.01     # nn.LeakyReLU default
LN_EPS = 1e-5          # nn.LayerNorm default
AW_LANES = 2 * N_LAYERS * NUM_HEADS   # * S at runtime -> lane width of the aw slab

_WEIGHT_KEYS = (
    "wqkv_s", "bqkv_s", "wo_s", "bo_s",
    "wq_c", "bq_c", "wkv_c", "bkv_c", "wo_c", "bo_c",
    "w1", "b1", "w2", "b2",
    "g1", "be1", "g2", "be2", "g3", "be3",
)


# ----------------------------- fused Pallas kernel ---------------------------
def _make_decoder_kernel(bps: int, seq: int):
    """Build the kernel for `bps` batch elements per grid step, sequence length `seq`."""
    H, Dh, D = NUM_HEADS, HEAD_DIM, EMBED_DIM
    HS = H * seq

    def kernel(
        x_ref, prompt_ref,
        wqkv_s_ref, bqkv_s_ref, wo_s_ref, bo_s_ref,
        wq_c_ref, bq_c_ref, wkv_c_ref, bkv_c_ref, wo_c_ref, bo_c_ref,
        w1_ref, b1_ref, w2_ref, b2_ref,
        g1_ref, be1_ref, g2_ref, be2_ref, g3_ref, be3_ref,
        out_ref, aw_ref,
    ):
        dot = functools.partial(jnp.dot, preferred_element_type=jnp.float32)
        # q @ k^T without materializing a transpose: contract the last dim of both operands.
        dot_qkt = functools.partial(
            jax.lax.dot_general,
            dimension_numbers=(((1,), (1,)), ((), ())),
            preferred_element_type=jnp.float32,
        )

        def layernorm(t, g_ref, b_ref):
            mean = jnp.mean(t, axis=-1, keepdims=True)
            var = jnp.mean(jnp.square(t - mean), axis=-1, keepdims=True)
            return (t - mean) * jax.lax.rsqrt(var + LN_EPS) * g_ref[...] + b_ref[...]

        def attention(q_all, k_all, v_all, wo_ref, slot):
            """q/k/v: (bps*seq, D), heads contiguous along lanes.  The 1/sqrt(Dh) scale is
            already folded into the q projection.  The head-concat is folded into an
            accumulating per-head output projection (sublane slice of Wo).  Softmax
            weights are written straight into the lane-dense aw slab."""
            per_batch = []
            for b in range(bps):
                rows = slice(b * seq, (b + 1) * seq)
                acc = jnp.zeros((seq, D), jnp.float32)
                for h in range(H):
                    hs = slice(h * Dh, (h + 1) * Dh)
                    s = dot_qkt(q_all[rows, hs], k_all[rows, hs])          # (seq, seq)
                    s = s - jnp.max(s, axis=-1, keepdims=True)
                    p = jnp.exp(s)
                    p = p / jnp.sum(p, axis=-1, keepdims=True)             # exact softmax
                    lane0 = slot * HS + h * seq
                    aw_ref[b, :, lane0:lane0 + seq] = p
                    # fold the head concat into the output projection:
                    acc = acc + dot(dot(p, v_all[rows, hs]), wo_ref[hs, :])
                per_batch.append(acc)
            return per_batch[0] if bps == 1 else jnp.concatenate(per_batch, axis=0)

        x = x_ref[...]                                                     # (bps*seq, D)
        prompt = prompt_ref[...]

        # Cross-attn query projection of the (constant) prompt; weights are shared across
        # layers, so hoist it out of the layer loop.
        q_cross = dot(prompt, wq_c_ref[...]) + bq_c_ref[...]

        for layer in range(N_LAYERS):
            # --- x = norm1(x); x, aw = self_attn(x); x = dropout(x) + x  (= 2*x in eval)
            xn = layernorm(x, g1_ref, be1_ref)
            qkv = dot(xn, wqkv_s_ref[...]) + bqkv_s_ref[...]               # fused QKV
            a = attention(qkv[:, :D], qkv[:, D:2 * D], qkv[:, 2 * D:],
                          wo_s_ref, 2 * layer + 0)
            x = 2.0 * (a + bo_s_ref[...])

            # --- x = norm2(x); x, awc = cross_attn(prompt, x, x, mask='all'); x = 2*x
            # TODO(synk): 'all' mask assumed to be a no-op (all-ones) mask.
            xn = layernorm(x, g2_ref, be2_ref)
            kv = dot(xn, wkv_c_ref[...]) + bkv_c_ref[...]                  # fused KV
            a = attention(q_cross, kv[:, :D], kv[:, D:], wo_c_ref, 2 * layer + 1)
            x = 2.0 * (a + bo_c_ref[...])

            # --- x = norm3(x); x = mlp(x); x = dropout(x) + x  (= 2*x in eval)
            xn = layernorm(x, g3_ref, be3_ref)
            h1 = dot(xn, w1_ref[...]) + b1_ref[...]
            h1 = jnp.where(h1 >= 0, h1, LEAKY_SLOPE * h1)                  # LeakyReLU
            x = 2.0 * (dot(h1, w2_ref[...]) + b2_ref[...])

        out_ref[...] = x

    return kernel


# ----------------------------- jitted wrapper --------------------------------
def _num_grid_steps(batch: int) -> int:
    """1 step over the whole batch on single-TC chips (v5e/v6e); 2 parallel steps on v7x."""
    try:
        kind = jax.devices()[0].device_kind.lower()
    except Exception:  # pragma: no cover
        kind = ""
    if (("v7" in kind) or ("7x" in kind)) and batch >= 2 and batch % 2 == 0:
        return 2
    return 1


@jax.jit
def transformer_decoder(x, prompt, packed):
    """x, prompt: (B, S, D). Returns (out (B,S,D), [(aw, aw_cross)] * N_LAYERS)."""
    b, s, d = x.shape
    x2 = x.reshape(b * s, d)
    p2 = prompt.reshape(b * s, d)
    weights = tuple(packed[k] for k in _WEIGHT_KEYS)

    nsteps = _num_grid_steps(b)
    bps = b // nsteps                      # batch elements per grid step
    aw_lanes = AW_LANES * s                # 2*N_LAYERS*H*S (= 128 for S=8)

    def replicated(arr):                   # full-array block, same block for every step
        nd = arr.ndim
        return pl.BlockSpec(tuple(arr.shape), lambda i, _nd=nd: (0,) * _nd)

    tok_spec = pl.BlockSpec((bps * s, d), lambda i: (i, 0))
    in_specs = [tok_spec, tok_spec] + [replicated(w) for w in weights]
    out_specs = (
        tok_spec,
        # lane-dense attention-weights slab: (B, S, 2*N_LAYERS*H*S)
        pl.BlockSpec((bps, s, aw_lanes), lambda i: (i, 0, 0)),
    )
    out_shape = (
        jax.ShapeDtypeStruct((b * s, d), jnp.float32),
        jax.ShapeDtypeStruct((b, s, aw_lanes), jnp.float32),
    )

    # Advisory cost hint so XLA schedules sensibly around the tiny custom call.
    per_row_mm = 2 * (d * 3 * d + d * d + d * 2 * d + d * d + d * HIDDEN + HIDDEN * d)
    attn_mm = 2 * N_LAYERS * b * NUM_HEADS * 2 * 2 * (s * s * HEAD_DIM)
    flops = N_LAYERS * b * s * per_row_mm + attn_mm + 2 * b * s * d * d
    cost = pl.CostEstimate(
        flops=int(flops),
        transcendentals=int(2 * N_LAYERS * b * NUM_HEADS * s * s),
        bytes_accessed=int(4 * (3 * b * s * d + b * s * aw_lanes
                                + sum(int(w.size) for w in weights))),
    )

    out2, aw = pl.pallas_call(
        _make_decoder_kernel(bps, s),
        grid=(nsteps,),
        in_specs=in_specs,
        out_specs=out_specs,
        out_shape=out_shape,
        compiler_params=pltpu.CompilerParams(
            dimension_semantics=("parallel",)),   # batch split across TCs on v7x
        cost_estimate=cost,
    )(x2, p2, *weights)

    out = out2.reshape(b, s, d)
    # (B, S, 2N*H*S) -> (B, S, 2N, H, S) -> (2N, B, H, Sq, Sk)
    aw = aw.reshape(b, s, 2 * N_LAYERS, NUM_HEADS, s).transpose(2, 0, 3, 1, 4)
    attn_weights = [(aw[2 * l], aw[2 * l + 1]) for l in range(N_LAYERS)]
    return out, attn_weights


# ----------------------------- params ----------------------------------------
def _init_linear(key, out_dim, in_dim):
    kw, kb = jax.random.split(key)
    w = jax.random.normal(kw, (out_dim, in_dim), jnp.float32) * 0.02   # torch (out, in)
    b = jax.random.normal(kb, (out_dim,), jnp.float32) * 0.02
    return w, b


def init_params(key):
    ks = jax.random.split(key, 4)

    def attn_params(k4):
        kq, kk, kv, ko = jax.random.split(k4, 4)
        wq, bq = _init_linear(kq, EMBED_DIM, EMBED_DIM)
        wk, bk = _init_linear(kk, EMBED_DIM, EMBED_DIM)
        wv, bv = _init_linear(kv, EMBED_DIM, EMBED_DIM)
        wo, bo = _init_linear(ko, EMBED_DIM, EMBED_DIM)
        return dict(wq=wq, bq=bq, wk=wk, bk=bk, wv=wv, bv=bv, wo=wo, bo=bo)

    w1, b1 = _init_linear(ks[2], HIDDEN, EMBED_DIM)
    w2, b2 = _init_linear(ks[3], EMBED_DIM, HIDDEN)
    ones = jnp.ones((EMBED_DIM,), jnp.float32)
    zeros = jnp.zeros((EMBED_DIM,), jnp.float32)
    return dict(attn=attn_params(ks[0]), cross=attn_params(ks[1]),
                w1=w1, b1=b1, w2=w2, b2=b2,
                g1=ones, be1=zeros, g2=ones, be2=zeros, g3=ones, be3=zeros)


def pack_params(params):
    """One-time repack: transpose torch (out,in) weights to (in,out), fuse QKV / KV
    projections, fold 1/sqrt(head_dim) into the query projection, make biases/LN
    params (1, N) rows so the kernel contracts native layouts with no .T."""
    a, c = params["attn"], params["cross"]
    scale = 1.0 / (HEAD_DIM ** 0.5)
    t = lambda w: w.T
    row = lambda v: v.reshape(1, -1)
    return dict(
        wqkv_s=jnp.concatenate([t(a["wq"]) * scale, t(a["wk"]), t(a["wv"])], axis=1),
        bqkv_s=row(jnp.concatenate([a["bq"] * scale, a["bk"], a["bv"]])),
        wo_s=t(a["wo"]), bo_s=row(a["bo"]),
        wq_c=t(c["wq"]) * scale, bq_c=row(c["bq"] * scale),
        wkv_c=jnp.concatenate([t(c["wk"]), t(c["wv"])], axis=1),
        bkv_c=row(jnp.concatenate([c["bk"], c["bv"]])),
        wo_c=t(c["wo"]), bo_c=row(c["bo"]),
        w1=t(params["w1"]), b1=row(params["b1"]),
        w2=t(params["w2"]), b2=row(params["b2"]),
        g1=row(params["g1"]), be1=row(params["be1"]),
        g2=row(params["g2"]), be2=row(params["be2"]),
        g3=row(params["g3"]), be3=row(params["be3"]),
    )


# ----------------------------- pure-JAX reference -----------------------------
def _reference(x, prompt, params):
    """Pure-JAX mirror of the PyTorch forward (pre_norm, eval-mode dropouts)."""
    def ln(t, g, b):
        m = jnp.mean(t, axis=-1, keepdims=True)
        v = jnp.mean(jnp.square(t - m), axis=-1, keepdims=True)
        return (t - m) * jax.lax.rsqrt(v + LN_EPS) * g + b

    def mha(q_in, kv_in, p):
        bsz, sq, d = q_in.shape
        sk = kv_in.shape[1]
        q = q_in @ p["wq"].T + p["bq"]
        k = kv_in @ p["wk"].T + p["bk"]
        v = kv_in @ p["wv"].T + p["bv"]
        split = lambda t_, s_: t_.reshape(bsz, s_, NUM_HEADS, HEAD_DIM).transpose(0, 2, 1, 3)
        qh, kh, vh = split(q, sq), split(k, sk), split(v, sk)
        s = jnp.einsum("bhqd,bhkd->bhqk", qh, kh) / (HEAD_DIM ** 0.5)
        w = jax.nn.softmax(s, axis=-1)
        o = jnp.einsum("bhqk,bhkd->bhqd", w, vh).transpose(0, 2, 1, 3).reshape(bsz, sq, d)
        return o @ p["wo"].T + p["bo"], w

    aws = []
    for _ in range(N_LAYERS):
        x = ln(x, params["g1"], params["be1"])
        x, aw = mha(x, x, params["attn"])
        x = x + x
        x = ln(x, params["g2"], params["be2"])
        x, awc = mha(prompt, x, params["cross"])
        x = x + x
        x = ln(x, params["g3"], params["be3"])
        h = x @ params["w1"].T + params["b1"]
        h = jnp.where(h >= 0, h, LEAKY_SLOPE * h)
        x = h @ params["w2"].T + params["b2"]
        x = x + x
        aws.append((aw, awc))
    return x, aws


# ----------------------------- main -------------------------------------------
if __name__ == "__main__":
    key = jax.random.PRNGKey(0)
    k_x, k_p, k_w = jax.random.split(key, 3)

    B, S, D = 2, 8, EMBED_DIM
    x = jax.random.normal(k_x, (B, S, D), jnp.float32)
    prompt = jax.random.normal(k_p, (B, S, D), jnp.float32)
    params = init_params(k_w)
    packed = pack_params(params)

    out, attn_weights = transformer_decoder(x, prompt, packed)
    out = jax.block_until_ready(out)
    for aw, awc in attn_weights:
        jax.block_until_ready(aw)
        jax.block_until_ready(awc)

    assert out.shape == (B, S, D)
    assert len(attn_weights) == N_LAYERS
    assert attn_weights[0][0].shape == (B, NUM_HEADS, S, S)
    assert attn_weights[0][1].shape == (B, NUM_HEADS, S, S)

    # Numerical check against the pure-JAX mirror of the PyTorch forward.
    ref_out, ref_aws = _reference(x, prompt, params)
    assert jnp.allclose(out, ref_out, rtol=2e-2, atol=2e-3), "decoder output mismatch"
    for (aw, awc), (raw, rawc) in zip(attn_weights, ref_aws):
        assert jnp.allclose(aw, raw, rtol=2e-2, atol=2e-3), "self-attn weights mismatch"
        assert jnp.allclose(awc, rawc, rtol=2e-2, atol=2e-3), "cross-attn weights mismatch"

    print("KERNEL_OK")
</pallas_src>

<mosaic_0001>
module attributes {stable_mosaic.version = 11 : i64} {
  func.func @kernel(%arg0: i32, %arg1: memref<16x32xf32, #tpu.memory_space<vmem>>, %arg2: memref<16x32xf32, #tpu.memory_space<vmem>>, %arg3: memref<32x96xf32, #tpu.memory_space<vmem>>, %arg4: memref<1x96xf32, #tpu.memory_space<vmem>>, %arg5: memref<32x32xf32, #tpu.memory_space<vmem>>, %arg6: memref<1x32xf32, #tpu.memory_space<vmem>>, %arg7: memref<32x32xf32, #tpu.memory_space<vmem>>, %arg8: memref<1x32xf32, #tpu.memory_space<vmem>>, %arg9: memref<32x64xf32, #tpu.memory_space<vmem>>, %arg10: memref<1x64xf32, #tpu.memory_space<vmem>>, %arg11: memref<32x32xf32, #tpu.memory_space<vmem>>, %arg12: memref<1x32xf32, #tpu.memory_space<vmem>>, %arg13: memref<32x128xf32, #tpu.memory_space<vmem>>, %arg14: memref<1x128xf32, #tpu.memory_space<vmem>>, %arg15: memref<128x32xf32, #tpu.memory_space<vmem>>, %arg16: memref<1x32xf32, #tpu.memory_space<vmem>>, %arg17: memref<1x32xf32, #tpu.memory_space<vmem>>, %arg18: memref<1x32xf32, #tpu.memory_space<vmem>>, %arg19: memref<1x32xf32, #tpu.memory_space<vmem>>, %arg20: memref<1x32xf32, #tpu.memory_space<vmem>>, %arg21: memref<1x32xf32, #tpu.memory_space<vmem>>, %arg22: memref<1x32xf32, #tpu.memory_space<vmem>>, %arg23: memref<16x32xf32, #tpu.memory_space<vmem>>, %arg24: memref<2x8x128xf32, #tpu.memory_space<vmem>>) attributes {dimension_semantics = [#tpu.dimension_semantics<parallel>], iteration_bounds = array<i64: 1>, scalar_prefetch = 0 : i64, scratch_operands = 0 : i64, tpu.core_type = #tpu.core_type<tc>, window_params = [{transform_indices = @transform_0, window_bounds = array<i64: 16, 32>}, {transform_indices = @transform_1, window_bounds = array<i64: 16, 32>}, {pipeline_mode = #tpu.pipeline_mode<synchronous>, transform_indices = @transform_2, window_bounds = array<i64: 32, 96>}, {pipeline_mode = #tpu.pipeline_mode<synchronous>, transform_indices = @transform_3, window_bounds = array<i64: 1, 96>}, {pipeline_mode = #tpu.pipeline_mode<synchronous>, transform_indices = @transform_4, window_bounds = array<i64: 32, 32>}, {pipeline_mode = #tpu.pipeline_mode<synchronous>, transform_indices = @transform_5, window_bounds = array<i64: 1, 32>}, {pipeline_mode = #tpu.pipeline_mode<synchronous>, transform_indices = @transform_6, window_bounds = array<i64: 32, 32>}, {pipeline_mode = #tpu.pipeline_mode<synchronous>, transform_indices = @transform_7, window_bounds = array<i64: 1, 32>}, {pipeline_mode = #tpu.pipeline_mode<synchronous>, transform_indices = @transform_8, window_bounds = array<i64: 32, 64>}, {pipeline_mode = #tpu.pipeline_mode<synchronous>, transform_indices = @transform_9, window_bounds = array<i64: 1, 64>}, {pipeline_mode = #tpu.pipeline_mode<synchronous>, transform_indices = @transform_10, window_bounds = array<i64: 32, 32>}, {pipeline_mode = #tpu.pipeline_mode<synchronous>, transform_indices = @transform_11, window_bounds = array<i64: 1, 32>}, {pipeline_mode = #tpu.pipeline_mode<synchronous>, transform_indices = @transform_12, window_bounds = array<i64: 32, 128>}, {pipeline_mode = #tpu.pipeline_mode<synchronous>, transform_indices = @transform_13, window_bounds = array<i64: 1, 128>}, {pipeline_mode = #tpu.pipeline_mode<synchronous>, transform_indices = @transform_14, window_bounds = array<i64: 128, 32>}, {pipeline_mode = #tpu.pipeline_mode<synchronous>, transform_indices = @transform_15, window_bounds = array<i64: 1, 32>}, {pipeline_mode = #tpu.pipeline_mode<synchronous>, transform_indices = @transform_16, window_bounds = array<i64: 1, 32>}, {pipeline_mode = #tpu.pipeline_mode<synchronous>, transform_indices = @transform_17, window_bounds = array<i64: 1, 32>}, {pipeline_mode = #tpu.pipeline_mode<synchronous>, transform_indices = @transform_18, window_bounds = array<i64: 1, 32>}, {pipeline_mode = #tpu.pipeline_mode<synchronous>, transform_indices = @transform_19, window_bounds = array<i64: 1, 32>}, {pipeline_mode = #tpu.pipeline_mode<synchronous>, transform_indices = @transform_20, window_bounds = array<i64: 1, 32>}, {pipeline_mode = #tpu.pipeline_mode<synchronous>, transform_indices = @transform_21, window_bounds = array<i64: 1, 32>}, {transform_indices = @transform_22, window_bounds = array<i64: 16, 32>}, {transform_indices = @transform_23, window_bounds = array<i64: 2, 8, 128>}]} {
    %c0 = arith.constant 0 : index
    %c0_0 = arith.constant 0 : index
    %0 = vector.load %arg1[%c0, %c0_0] : memref<16x32xf32, #tpu.memory_space<vmem>>, vector<16x32xf32>
    %c0_1 = arith.constant 0 : index
    %c0_2 = arith.constant 0 : index
    %1 = vector.load %arg2[%c0_1, %c0_2] : memref<16x32xf32, #tpu.memory_space<vmem>>, vector<16x32xf32>
    %c0_3 = arith.constant 0 : index
    %c0_4 = arith.constant 0 : index
    %2 = vector.load %arg7[%c0_3, %c0_4] : memref<32x32xf32, #tpu.memory_space<vmem>>, vector<32x32xf32>
    %cst = arith.constant dense<0.000000e+00> : vector<16x32xf32>
    %3 = tpu.matmul %1, %2, %cst {dimension_numbers = #tpu.dot_dimension_numbers<[1], [0], [0], [1], [0, 0, 1, 1], [], []>} : vector<16x32xf32>, vector<32x32xf32>, vector<16x32xf32> -> vector<16x32xf32>
    %c0_5 = arith.constant 0 : index
    %c0_6 = arith.constant 0 : index
    %4 = vector.load %arg8[%c0_5, %c0_6] : memref<1x32xf32, #tpu.memory_space<vmem>>, vector<1x32xf32>
    %5 = vector.broadcast %4 : vector<1x32xf32> to vector<16x32xf32>
    %6 = arith.addf %3, %5 : vector<16x32xf32>
    %cst_7 = arith.constant dense<0.000000e+00> : vector<16xf32>
    %7 = vector.multi_reduction <add>, %0, %cst_7 [1] : vector<16x32xf32> to vector<16xf32>
    %8 = vector.shape_cast %7 : vector<16xf32> to vector<16x1xf32>
    %cst_8 = arith.constant 3.200000e+01 : f32
    %9 = vector.broadcast %cst_8 : f32 to vector<16x1xf32>
    %10 = arith.divf %8, %9 : vector<16x1xf32>
    %11 = vector.broadcast %10 : vector<16x1xf32> to vector<16x32xf32>
    %12 = arith.subf %0, %11 : vector<16x32xf32>
    %13 = arith.mulf %12, %12 : vector<16x32xf32>
    %cst_9 = arith.constant dense<0.000000e+00> : vector<16xf32>
    %14 = vector.multi_reduction <add>, %13, %cst_9 [1] : vector<16x32xf32> to vector<16xf32>
    %15 = vector.shape_cast %14 : vector<16xf32> to vector<16x1xf32>
    %cst_10 = arith.constant 3.200000e+01 : f32
    %16 = vector.broadcast %cst_10 : f32 to vector<16x1xf32>
    %17 = arith.divf %15, %16 : vector<16x1xf32>
    %18 = vector.broadcast %10 : vector<16x1xf32> to vector<16x32xf32>
    %19 = arith.subf %0, %18 : vector<16x32xf32>
    %cst_11 = arith.constant 9.99999974E-6 : f32
    %20 = vector.broadcast %cst_11 : f32 to vector<16x1xf32>
    %21 = arith.addf %17, %20 : vector<16x1xf32>
    %22 = math.rsqrt %21 : vector<16x1xf32>
    %23 = vector.broadcast %22 : vector<16x1xf32> to vector<16x32xf32>
    %24 = arith.mulf %19, %23 : vector<16x32xf32>
    %c0_12 = arith.constant 0 : index
    %c0_13 = arith.constant 0 : index
    %25 = vector.load %arg17[%c0_12, %c0_13] : memref<1x32xf32, #tpu.memory_space<vmem>>, vector<1x32xf32>
    %26 = vector.broadcast %25 : vector<1x32xf32> to vector<16x32xf32>
    %27 = arith.mulf %24, %26 : vector<16x32xf32>
    %c0_14 = arith.constant 0 : index
    %c0_15 = arith.constant 0 : index
    %28 = vector.load %arg18[%c0_14, %c0_15] : memref<1x32xf32, #tpu.memory_space<vmem>>, vector<1x32xf32>
    %29 = vector.broadcast %28 : vector<1x32xf32> to vector<16x32xf32>
    %30 = arith.addf %27, %29 : vector<16x32xf32>
    %c0_16 = arith.constant 0 : index
    %c0_17 = arith.constant 0 : index
    %31 = vector.load %arg3[%c0_16, %c0_17] : memref<32x96xf32, #tpu.memory_space<vmem>>, vector<32x96xf32>
    %cst_18 = arith.constant dense<0.000000e+00> : vector<16x96xf32>
    %32 = tpu.matmul %30, %31, %cst_18 {dimension_numbers = #tpu.dot_dimension_numbers<[1], [0], [0], [1], [0, 0, 1, 1], [], []>} : vector<16x32xf32>, vector<32x96xf32>, vector<16x96xf32> -> vector<16x96xf32>
    %c0_19 = arith.constant 0 : index
    %c0_20 = arith.constant 0 : index
    %33 = vector.load %arg4[%c0_19, %c0_20] : memref<1x96xf32, #tpu.memory_space<vmem>>, vector<1x96xf32>
    %34 = vector.broadcast %33 : vector<1x96xf32> to vector<16x96xf32>
    %35 = arith.addf %32, %34 : vector<16x96xf32>
    %36 = vector.extract_strided_slice %35 {offsets = [0, 0], sizes = [16, 32], strides = [1, 1]} : vector<16x96xf32> to vector<16x32xf32>
    %37 = vector.extract_strided_slice %35 {offsets = [0, 32], sizes = [16, 32], strides = [1, 1]} : vector<16x96xf32> to vector<16x32xf32>
    %38 = vector.extract_strided_slice %35 {offsets = [0, 64], sizes = [16, 32], strides = [1, 1]} : vector<16x96xf32> to vector<16x32xf32>
    %cst_21 = arith.constant 0.000000e+00 : f32
    %39 = vector.broadcast %cst_21 : f32 to vector<8x32xf32>
    %40 = vector.extract_strided_slice %36 {offsets = [0, 0], sizes = [8, 8], strides = [1, 1]} : vector<16x32xf32> to vector<8x8xf32>
    %41 = vector.extract_strided_slice %37 {offsets = [0, 0], sizes = [8, 8], strides = [1, 1]} : vector<16x32xf32> to vector<8x8xf32>
    %cst_22 = arith.constant dense<0.000000e+00> : vector<8x8xf32>
    %42 = tpu.matmul %40, %41, %cst_22 {dimension_numbers = #tpu.dot_dimension_numbers<[1], [1], [0], [0], [0, 0, 1, 0], [], []>} : vector<8x8xf32>, vector<8x8xf32>, vector<8x8xf32> -> vector<8x8xf32>
    %cst_23 = arith.constant dense<0xFF800000> : vector<8xf32>
    %43 = vector.multi_reduction <maximumf>, %42, %cst_23 [1] : vector<8x8xf32> to vector<8xf32>
    %44 = vector.shape_cast %43 : vector<8xf32> to vector<8x1xf32>
    %45 = vector.broadcast %44 : vector<8x1xf32> to vector<8x8xf32>
    %46 = arith.subf %42, %45 : vector<8x8xf32>
    %47 = math.exp %46 : vector<8x8xf32>
    %cst_24 = arith.constant dense<0.000000e+00> : vector<8xf32>
    %48 = vector.multi_reduction <add>, %47, %cst_24 [1] : vector<8x8xf32> to vector<8xf32>
    %49 = vector.shape_cast %48 : vector<8xf32> to vector<8x1xf32>
    %50 = vector.broadcast %49 : vector<8x1xf32> to vector<8x8xf32>
    %51 = arith.divf %47, %50 : vector<8x8xf32>
    %c0_25 = arith.constant 0 : index
    %c0_26 = arith.constant 0 : index
    %c0_27 = arith.constant 0 : index
    %52 = vector.load %arg24[%c0_25, %c0_26, %c0_27] : memref<2x8x128xf32, #tpu.memory_space<vmem>>, vector<1x8x8xf32>
    %53 = vector.shape_cast %52 : vector<1x8x8xf32> to vector<8x8xf32>
    %54 = vector.shape_cast %51 : vector<8x8xf32> to vector<1x8x8xf32>
    tpu.vector_store %arg24[%c0_25, %c0_26, %c0_27], %54 {strides = array<i32>} : memref<2x8x128xf32, #tpu.memory_space<vmem>>, vector<1x8x8xf32>,
    %55 = vector.extract_strided_slice %38 {offsets = [0, 0], sizes = [8, 8], strides = [1, 1]} : vector<16x32xf32> to vector<8x8xf32>
    %cst_28 = arith.constant dense<0.000000e+00> : vector<8x8xf32>
    %56 = tpu.matmul %51, %55, %cst_28 {dimension_numbers = #tpu.dot_dimension_numbers<[1], [0], [0], [1], [0, 0, 1, 1], [], []>} : vector<8x8xf32>, vector<8x8xf32>, vector<8x8xf32> -> vector<8x8xf32>
    %c0_29 = arith.constant 0 : index
    %c0_30 = arith.constant 0 : index
    %57 = vector.load %arg5[%c0_29, %c0_30] : memref<32x32xf32, #tpu.memory_space<vmem>>, vector<8x32xf32>
    %cst_31 = arith.constant dense<0.000000e+00> : vector<8x32xf32>
    %58 = tpu.matmul %56, %57, %cst_31 {dimension_numbers = #tpu.dot_dimension_numbers<[1], [0], [0], [1], [0, 0, 1, 1], [], []>} : vector<8x8xf32>, vector<8x32xf32>, vector<8x32xf32> -> vector<8x32xf32>
    %59 = arith.addf %39, %58 : vector<8x32xf32>
    %60 = vector.extract_strided_slice %36 {offsets = [0, 8], sizes = [8, 8], strides = [1, 1]} : vector<16x32xf32> to vector<8x8xf32>
    %61 = vector.extract_strided_slice %37 {offsets = [0, 8], sizes = [8, 8], strides = [1, 1]} : vector<16x32xf32> to vector<8x8xf32>
    %cst_32 = arith.constant dense<0.000000e+00> : vector<8x8xf32>
    %62 = tpu.matmul %60, %61, %cst_32 {dimension_numbers = #tpu.dot_dimension_numbers<[1], [1], [0], [0], [0, 0, 1, 0], [], []>} : vector<8x8xf32>, vector<8x8xf32>, vector<8x8xf32> -> vector<8x8xf32>
    %cst_33 = arith.constant dense<0xFF800000> : vector<8xf32>
    %63 = vector.multi_reduction <maximumf>, %62, %cst_33 [1] : vector<8x8xf32> to vector<8xf32>
    %64 = vector.shape_cast %63 : vector<8xf32> to vector<8x1xf32>
    %65 = vector.broadcast %64 : vector<8x1xf32> to vector<8x8xf32>
    %66 = arith.subf %62, %65 : vector<8x8xf32>
    %67 = math.exp %66 : vector<8x8xf32>
    %cst_34 = arith.constant dense<0.000000e+00> : vector<8xf32>
    %68 = vector.multi_reduction <add>, %67, %cst_34 [1] : vector<8x8xf32> to vector<8xf32>
    %69 = vector.shape_cast %68 : vector<8xf32> to vector<8x1xf32>
    %70 = vector.broadcast %69 : vector<8x1xf32> to vector<8x8xf32>
    %71 = arith.divf %67, %70 : vector<8x8xf32>
    %c0_35 = arith.constant 0 : index
    %c0_36 = arith.constant 0 : index
    %c8 = arith.constant 8 : index
    %72 = vector.load %arg24[%c0_35, %c0_36, %c8] : memref<2x8x128xf32, #tpu.memory_space<vmem>>, vector<1x8x8xf32>
    %73 = vector.shape_cast %72 : vector<1x8x8xf32> to vector<8x8xf32>
    %74 = vector.shape_cast %71 : vector<8x8xf32> to vector<1x8x8xf32>
    tpu.vector_store %arg24[%c0_35, %c0_36, %c8], %74 {strides = array<i32>} : memref<2x8x128xf32, #tpu.memory_space<vmem>>, vector<1x8x8xf32>,
    %75 = vector.extract_strided_slice %38 {offsets = [0, 8], sizes = [8, 8], strides = [1, 1]} : vector<16x32xf32> to vector<8x8xf32>
    %cst_37 = arith.constant dense<0.000000e+00> : vector<8x8xf32>
    %76 = tpu.matmul %71, %75, %cst_37 {dimension_numbers = #tpu.dot_dimension_numbers<[1], [0], [0], [1], [0, 0, 1, 1], [], []>} : vector<8x8xf32>, vector<8x8xf32>, vector<8x8xf32> -> vector<8x8xf32>
    %c8_38 = arith.constant 8 : index
    %c0_39 = arith.constant 0 : index
    %77 = vector.load %arg5[%c8_38, %c0_39] : memref<32x32xf32, #tpu.memory_space<vmem>>, vector<8x32xf32>
    %cst_40 = arith.constant dense<0.000000e+00> : vector<8x32xf32>
    %78 = tpu.matmul %76, %77, %cst_40 {dimension_numbers = #tpu.dot_dimension_numbers<[1], [0], [0], [1], [0, 0, 1, 1], [], []>} : vector<8x8xf32>, vector<8x32xf32>, vector<8x32xf32> -> vector<8x32xf32>
    %79 = arith.addf %59, %78 : vector<8x32xf32>
    %80 = vector.extract_strided_slice %36 {offsets = [0, 16], sizes = [8, 8], strides = [1, 1]} : vector<16x32xf32> to vector<8x8xf32>
    %81 = vector.extract_strided_slice %37 {offsets = [0, 16], sizes = [8, 8], strides = [1, 1]} : vector<16x32xf32> to vector<8x8xf32>
    %cst_41 = arith.constant dense<0.000000e+00> : vector<8x8xf32>
    %82 = tpu.matmul %80, %81, %cst_41 {dimension_numbers = #tpu.dot_dimension_numbers<[1], [1], [0], [0], [0, 0, 1, 0], [], []>} : vector<8x8xf32>, vector<8x8xf32>, vector<8x8xf32> -> vector<8x8xf32>
    %cst_42 = arith.constant dense<0xFF800000> : vector<8xf32>
    %83 = vector.multi_reduction <maximumf>, %82, %cst_42 [1] : vector<8x8xf32> to vector<8xf32>
    %84 = vector.shape_cast %83 : vector<8xf32> to vector<8x1xf32>
    %85 = vector.broadcast %84 : vector<8x1xf32> to vector<8x8xf32>
    %86 = arith.subf %82, %85 : vector<8x8xf32>
    %87 = math.exp %86 : vector<8x8xf32>
    %cst_43 = arith.constant dense<0.000000e+00> : vector<8xf32>
    %88 = vector.multi_reduction <add>, %87, %cst_43 [1] : vector<8x8xf32> to vector<8xf32>
    %89 = vector.shape_cast %88 : vector<8xf32> to vector<8x1xf32>
    %90 = vector.broadcast %89 : vector<8x1xf32> to vector<8x8xf32>
    %91 = arith.divf %87, %90 : vector<8x8xf32>
    %c0_44 = arith.constant 0 : index
    %c0_45 = arith.constant 0 : index
    %c16 = arith.constant 16 : index
    %92 = vector.load %arg24[%c0_44, %c0_45, %c16] : memref<2x8x128xf32, #tpu.memory_space<vmem>>, vector<1x8x8xf32>
    %93 = vector.shape_cast %92 : vector<1x8x8xf32> to vector<8x8xf32>
    %94 = vector.shape_cast %91 : vector<8x8xf32> to vector<1x8x8xf32>
    tpu.vector_store %arg24[%c0_44, %c0_45, %c16], %94 {strides = array<i32>} : memref<2x8x128xf32, #tpu.memory_space<vmem>>, vector<1x8x8xf32>,
    %95 = vector.extract_strided_slice %38 {offsets = [0, 16], sizes = [8, 8], strides = [1, 1]} : vector<16x32xf32> to vector<8x8xf32>
    %cst_46 = arith.constant dense<0.000000e+00> : vector<8x8xf32>
    %96 = tpu.matmul %91, %95, %cst_46 {dimension_numbers = #tpu.dot_dimension_numbers<[1], [0], [0], [1], [0, 0, 1, 1], [], []>} : vector<8x8xf32>, vector<8x8xf32>, vector<8x8xf32> -> vector<8x8xf32>
    %c16_47 = arith.constant 16 : index
    %c0_48 = arith.constant 0 : index
    %97 = vector.load %arg5[%c16_47, %c0_48] : memref<32x32xf32, #tpu.memory_space<vmem>>, vector<8x32xf32>
    %cst_49 = arith.constant dense<0.000000e+00> : vector<8x32xf32>
    %98 = tpu.matmul %96, %97, %cst_49 {dimension_numbers = #tpu.dot_dimension_numbers<[1], [0], [0], [1], [0, 0, 1, 1], [], []>} : vector<8x8xf32>, vector<8x32xf32>, vector<8x32xf32> -> vector<8x32xf32>
    %99 = arith.addf %79, %98 : vector<8x32xf32>
    %100 = vector.extract_strided_slice %36 {offsets = [0, 24], sizes = [8, 8], strides = [1, 1]} : vector<16x32xf32> to vector<8x8xf32>
    %101 = vector.extract_strided_slice %37 {offsets = [0, 24], sizes = [8, 8], strides = [1, 1]} : vector<16x32xf32> to vector<8x8xf32>
    %cst_50 = arith.constant dense<0.000000e+00> : vector<8x8xf32>
    %102 = tpu.matmul %100, %101, %cst_50 {dimension_numbers = #tpu.dot_dimension_numbers<[1], [1], [0], [0], [0, 0, 1, 0], [], []>} : vector<8x8xf32>, vector<8x8xf32>, vector<8x8xf32> -> vector<8x8xf32>
    %cst_51 = arith.constant dense<0xFF800000> : vector<8xf32>
    %103 = vector.multi_reduction <maximumf>, %102, %cst_51 [1] : vector<8x8xf32> to vector<8xf32>
    %104 = vector.shape_cast %103 : vector<8xf32> to vector<8x1xf32>
    %105 = vector.broadcast %104 : vector<8x1xf32> to vector<8x8xf32>
    %106 = arith.subf %102, %105 : vector<8x8xf32>
    %107 = math.exp %106 : vector<8x8xf32>
    %cst_52 = arith.constant dense<0.000000e+00> : vector<8xf32>
    %108 = vector.multi_reduction <add>, %107, %cst_52 [1] : vector<8x8xf32> to vector<8xf32>
    %109 = vector.shape_cast %108 : vector<8xf32> to vector<8x1xf32>
    %110 = vector.broadcast %109 : vector<8x1xf32> to vector<8x8xf32>
    %111 = arith.divf %107, %110 : vector<8x8xf32>
    %c0_53 = arith.constant 0 : index
    %c0_54 = arith.constant 0 : index
    %c24 = arith.constant 24 : index
    %112 = vector.load %arg24[%c0_53, %c0_54, %c24] : memref<2x8x128xf32, #tpu.memory_space<vmem>>, vector<1x8x8xf32>
    %113 = vector.shape_cast %112 : vector<1x8x8xf32> to vector<8x8xf32>
    %114 = vector.shape_cast %111 : vector<8x8xf32> to vector<1x8x8xf32>
    tpu.vector_store %arg24[%c0_53, %c0_54, %c24], %114 {strides = array<i32>} : memref<2x8x128xf32, #tpu.memory_space<vmem>>, vector<1x8x8xf32>,
    %115 = vector.extract_strided_slice %38 {offsets = [0, 24], sizes = [8, 8], strides = [1, 1]} : vector<16x32xf32> to vector<8x8xf32>
    %cst_55 = arith.constant dense<0.000000e+00> : vector<8x8xf32>
    %116 = tpu.matmul %111, %115, %cst_55 {dimension_numbers = #tpu.dot_dimension_numbers<[1], [0], [0], [1], [0, 0, 1, 1], [], []>} : vector<8x8xf32>, vector<8x8xf32>, vector<8x8xf32> -> vector<8x8xf32>
    %c24_56 = arith.constant 24 : index
    %c0_57 = arith.constant 0 : index
    %117 = vector.load %arg5[%c24_56, %c0_57] : memref<32x32xf32, #tpu.memory_space<vmem>>, vector<8x32xf32>
    %cst_58 = arith.constant dense<0.000000e+00> : vector<8x32xf32>
    %118 = tpu.matmul %116, %117, %cst_58 {dimension_numbers = #tpu.dot_dimension_numbers<[1], [0], [0], [1], [0, 0, 1, 1], [], []>} : vector<8x8xf32>, vector<8x32xf32>, vector<8x32xf32> -> vector<8x32xf32>
    %119 = arith.addf %99, %118 : vector<8x32xf32>
    %cst_59 = arith.constant 0.000000e+00 : f32
    %120 = vector.broadcast %cst_59 : f32 to vector<8x32xf32>
    %121 = vector.extract_strided_slice %36 {offsets = [8, 0], sizes = [8, 8], strides = [1, 1]} : vector<16x32xf32> to vector<8x8xf32>
    %122 = vector.extract_strided_slice %37 {offsets = [8, 0], sizes = [8, 8], strides = [1, 1]} : vector<16x32xf32> to vector<8x8xf32>
    %cst_60 = arith.constant dense<0.000000e+00> : vector<8x8xf32>
    %123 = tpu.matmul %121, %122, %cst_60 {dimension_numbers = #tpu.dot_dimension_numbers<[1], [1], [0], [0], [0, 0, 1, 0], [], []>} : vector<8x8xf32>, vector<8x8xf32>, vector<8x8xf32> -> vector<8x8xf32>
    %cst_61 = arith.constant dense<0xFF800000> : vector<8xf32>
    %124 = vector.multi_reduction <maximumf>, %123, %cst_61 [1] : vector<8x8xf32> to vector<8xf32>
    %125 = vector.shape_cast %124 : vector<8xf32> to vector<8x1xf32>
    %126 = vector.broadcast %125 : vector<8x1xf32> to vector<8x8xf32>
    %127 = arith.subf %123, %126 : vector<8x8xf32>
    %128 = math.exp %127 : vector<8x8xf32>
    %cst_62 = arith.constant dense<0.000000e+00> : vector<8xf32>
    %129 = vector.multi_reduction <add>, %128, %cst_62 [1] : vector<8x8xf32> to vector<8xf32>
    %130 = vector.shape_cast %129 : vector<8xf32> to vector<8x1xf32>
    %131 = vector.broadcast %130 : vector<8x1xf32> to vector<8x8xf32>
    %132 = arith.divf %128, %131 : vector<8x8xf32>
    %c1 = arith.constant 1 : index
    %c0_63 = arith.constant 0 : index
    %c0_64 = arith.constant 0 : index
    %133 = vector.load %arg24[%c1, %c0_63, %c0_64] : memref<2x8x128xf32, #tpu.memory_space<vmem>>, vector<1x8x8xf32>
    %134 = vector.shape_cast %133 : vector<1x8x8xf32> to vector<8x8xf32>
    %135 = vector.shape_cast %132 : vector<8x8xf32> to vector<1x8x8xf32>
    tpu.vector_store %arg24[%c1, %c0_63, %c0_64], %135 {strides = array<i32>} : memref<2x8x128xf32, #tpu.memory_space<vmem>>, vector<1x8x8xf32>,
    %136 = vector.extract_strided_slice %38 {offsets = [8, 0], sizes = [8, 8], strides = [1, 1]} : vector<16x32xf32> to vector<8x8xf32>
    %cst_65 = arith.constant dense<0.000000e+00> : vector<8x8xf32>
    %137 = tpu.matmul %132, %136, %cst_65 {dimension_numbers = #tpu.dot_dimension_numbers<[1], [0], [0], [1], [0, 0, 1, 1], [], []>} : vector<8x8xf32>, vector<8x8xf32>, vector<8x8xf32> -> vector<8x8xf32>
    %c0_66 = arith.constant 0 : index
    %c0_67 = arith.constant 0 : index
    %138 = vector.load %arg5[%c0_66, %c0_67] : memref<32x32xf32, #tpu.memory_space<vmem>>, vector<8x32xf32>
    %cst_68 = arith.constant dense<0.000000e+00> : vector<8x32xf32>
    %139 = tpu.matmul %137, %138, %cst_68 {dimension_numbers = #tpu.dot_dimension_numbers<[1], [0], [0], [1], [0, 0, 1, 1], [], []>} : vector<8x8xf32>, vector<8x32xf32>, vector<8x32xf32> -> vector<8x32xf32>
    %140 = arith.addf %120, %139 : vector<8x32xf32>
    %141 = vector.extract_strided_slice %36 {offsets = [8, 8], sizes = [8, 8], strides = [1, 1]} : vector<16x32xf32> to vector<8x8xf32>
    %142 = vector.extract_strided_slice %37 {offsets = [8, 8], sizes = [8, 8], strides = [1, 1]} : vector<16x32xf32> to vector<8x8xf32>
    %cst_69 = arith.constant dense<0.000000e+00> : vector<8x8xf32>
    %143 = tpu.matmul %141, %142, %cst_69 {dimension_numbers = #tpu.dot_dimension_numbers<[1], [1], [0], [0], [0, 0, 1, 0], [], []>} : vector<8x8xf32>, vector<8x8xf32>, vector<8x8xf32> -> vector<8x8xf32>
    %cst_70 = arith.constant dense<0xFF800000> : vector<8xf32>
    %144 = vector.multi_reduction <maximumf>, %143, %cst_70 [1] : vector<8x8xf32> to vector<8xf32>
    %145 = vector.shape_cast %144 : vector<8xf32> to vector<8x1xf32>
    %146 = vector.broadcast %145 : vector<8x1xf32> to vector<8x8xf32>
    %147 = arith.subf %143, %146 : vector<8x8xf32>
    %148 = math.exp %147 : vector<8x8xf32>
    %cst_71 = arith.constant dense<0.000000e+00> : vector<8xf32>
    %149 = vector.multi_reduction <add>, %148, %cst_71 [1] : vector<8x8xf32> to vector<8xf32>
    %150 = vector.shape_cast %149 : vector<8xf32> to vector<8x1xf32>
    %151 = vector.broadcast %150 : vector<8x1xf32> to vector<8x8xf32>
    %152 = arith.divf %148, %151 : vector<8x8xf32>
    %c1_72 = arith.constant 1 : index
    %c0_73 = arith.constant 0 : index
    %c8_74 = arith.constant 8 : index
    %153 = vector.load %arg24[%c1_72, %c0_73, %c8_74] : memref<2x8x128xf32, #tpu.memory_space<vmem>>, vector<1x8x8xf32>
    %154 = vector.shape_cast %153 : vector<1x8x8xf32> to vector<8x8xf32>
    %155 = vector.shape_cast %152 : vector<8x8xf32> to vector<1x8x8xf32>
    tpu.vector_store %arg24[%c1_72, %c0_73, %c8_74], %155 {strides = array<i32>} : memref<2x8x128xf32, #tpu.memory_space<vmem>>, vector<1x8x8xf32>,
    %156 = vector.extract_strided_slice %38 {offsets = [8, 8], sizes = [8, 8], strides = [1, 1]} : vector<16x32xf32> to vector<8x8xf32>
    %cst_75 = arith.constant dense<0.000000e+00> : vector<8x8xf32>
    %157 = tpu.matmul %152, %156, %cst_75 {dimension_numbers = #tpu.dot_dimension_numbers<[1], [0], [0], [1], [0, 0, 1, 1], [], []>} : vector<8x8xf32>, vector<8x8xf32>, vector<8x8xf32> -> vector<8x8xf32>
    %c8_76 = arith.constant 8 : index
    %c0_77 = arith.constant 0 : index
    %158 = vector.load %arg5[%c8_76, %c0_77] : memref<32x32xf32, #tpu.memory_space<vmem>>, vector<8x32xf32>
    %cst_78 = arith.constant dense<0.000000e+00> : vector<8x32xf32>
    %159 = tpu.matmul %157, %158, %cst_78 {dimension_numbers = #tpu.dot_dimension_numbers<[1], [0], [0], [1], [0, 0, 1, 1], [], []>} : vector<8x8xf32>, vector<8x32xf32>, vector<8x32xf32> -> vector<8x32xf32>
    %160 = arith.addf %140, %159 : vector<8x32xf32>
    %161 = vector.extract_strided_slice %36 {offsets = [8, 16], sizes = [8, 8], strides = [1, 1]} : vector<16x32xf32> to vector<8x8xf32>
    %162 = vector.extract_strided_slice %37 {offsets = [8, 16], sizes = [8, 8], strides = [1, 1]} : vector<16x32xf32> to vector<8x8xf32>
    %cst_79 = arith.constant dense<0.000000e+00> : vector<8x8xf32>
    %163 = tpu.matmul %161, %162, %cst_79 {dimension_numbers = #tpu.dot_dimension_numbers<[1], [1], [0], [0], [0, 0, 1, 0], [], []>} : vector<8x8xf32>, vector<8x8xf32>, vector<8x8xf32> -> vector<8x8xf32>
    %cst_80 = arith.constant dense<0xFF800000> : vector<8xf32>
    %164 = vector.multi_reduction <maximumf>, %163, %cst_80 [1] : vector<8x8xf32> to vector<8xf32>
    %165 = vector.shape_cast %164 : vector<8xf32> to vector<8x1xf32>
    %166 = vector.broadcast %165 : vector<8x1xf32> to vector<8x8xf32>
    %167 = arith.subf %163, %166 : vector<8x8xf32>
    %168 = math.exp %167 : vector<8x8xf32>
    %cst_81 = arith.constant dense<0.000000e+00> : vector<8xf32>
    %169 = vector.multi_reduction <add>, %168, %cst_81 [1] : vector<8x8xf32> to vector<8xf32>
    %170 = vector.shape_cast %169 : vector<8xf32> to vector<8x1xf32>
    %171 = vector.broadcast %170 : vector<8x1xf32> to vector<8x8xf32>
    %172 = arith.divf %168, %171 : vector<8x8xf32>
    %c1_82 = arith.constant 1 : index
    %c0_83 = arith.constant 0 : index
    %c16_84 = arith.constant 16 : index
    %173 = vector.load %arg24[%c1_82, %c0_83, %c16_84] : memref<2x8x128xf32, #tpu.memory_space<vmem>>, vector<1x8x8xf32>
    %174 = vector.shape_cast %173 : vector<1x8x8xf32> to vector<8x8xf32>
    %175 = vector.shape_cast %172 : vector<8x8xf32> to vector<1x8x8xf32>
    tpu.vector_store %arg24[%c1_82, %c0_83, %c16_84], %175 {strides = array<i32>} : memref<2x8x128xf32, #tpu.memory_space<vmem>>, vector<1x8x8xf32>,
    %176 = vector.extract_strided_slice %38 {offsets = [8, 16], sizes = [8, 8], strides = [1, 1]} : vector<16x32xf32> to vector<8x8xf32>
    %cst_85 = arith.constant dense<0.000000e+00> : vector<8x8xf32>
    %177 = tpu.matmul %172, %176, %cst_85 {dimension_numbers = #tpu.dot_dimension_numbers<[1], [0], [0], [1], [0, 0, 1, 1], [], []>} : vector<8x8xf32>, vector<8x8xf32>, vector<8x8xf32> -> vector<8x8xf32>
    %c16_86 = arith.constant 16 : index
    %c0_87 = arith.constant 0 : index
    %178 = vector.load %arg5[%c16_86, %c0_87] : memref<32x32xf32, #tpu.memory_space<vmem>>, vector<8x32xf32>
    %cst_88 = arith.constant dense<0.000000e+00> : vector<8x32xf32>
    %179 = tpu.matmul %177, %178, %cst_88 {dimension_numbers = #tpu.dot_dimension_numbers<[1], [0], [0], [1], [0, 0, 1, 1], [], []>} : vector<8x8xf32>, vector<8x32xf32>, vector<8x32xf32> -> vector<8x32xf32>
    %180 = arith.addf %160, %179 : vector<8x32xf32>
    %181 = vector.extract_strided_slice %36 {offsets = [8, 24], sizes = [8, 8], strides = [1, 1]} : vector<16x32xf32> to vector<8x8xf32>
    %182 = vector.extract_strided_slice %37 {offsets = [8, 24], sizes = [8, 8], strides = [1, 1]} : vector<16x32xf32> to vector<8x8xf32>
    %cst_89 = arith.constant dense<0.000000e+00> : vector<8x8xf32>
    %183 = tpu.matmul %181, %182, %cst_89 {dimension_numbers = #tpu.dot_dimension_numbers<[1], [1], [0], [0], [0, 0, 1, 0], [], []>} : vector<8x8xf32>, vector<8x8xf32>, vector<8x8xf32> -> vector<8x8xf32>
    %cst_90 = arith.constant dense<0xFF800000> : vector<8xf32>
    %184 = vector.multi_reduction <maximumf>, %183, %cst_90 [1] : vector<8x8xf32> to vector<8xf32>
    %185 = vector.shape_cast %184 : vector<8xf32> to vector<8x1xf32>
    %186 = vector.broadcast %185 : vector<8x1xf32> to vector<8x8xf32>
    %187 = arith.subf %183, %186 : vector<8x8xf32>
    %188 = math.exp %187 : vector<8x8xf32>
    %cst_91 = arith.constant dense<0.000000e+00> : vector<8xf32>
    %189 = vector.multi_reduction <add>, %188, %cst_91 [1] : vector<8x8xf32> to vector<8xf32>
    %190 = vector.shape_cast %189 : vector<8xf32> to vector<8x1xf32>
    %191 = vector.broadcast %190 : vector<8x1xf32> to vector<8x8xf32>
    %192 = arith.divf %188, %191 : vector<8x8xf32>
    %c1_92 = arith.constant 1 : index
    %c0_93 = arith.constant 0 : index
    %c24_94 = arith.constant 24 : index
    %193 = vector.load %arg24[%c1_92, %c0_93, %c24_94] : memref<2x8x128xf32, #tpu.memory_space<vmem>>, vector<1x8x8xf32>
    %194 = vector.shape_cast %193 : vector<1x8x8xf32> to vector<8x8xf32>
    %195 = vector.shape_cast %192 : vector<8x8xf32> to vector<1x8x8xf32>
    tpu.vector_store %arg24[%c1_92, %c0_93, %c24_94], %195 {strides = array<i32>} : memref<2x8x128xf32, #tpu.memory_space<vmem>>, vector<1x8x8xf32>,
    %196 = vector.extract_strided_slice %38 {offsets = [8, 24], sizes = [8, 8], strides = [1, 1]} : vector<16x32xf32> to vector<8x8xf32>
    %cst_95 = arith.constant dense<0.000000e+00> : vector<8x8xf32>
    %197 = tpu.matmul %192, %196, %cst_95 {dimension_numbers = #tpu.dot_dimension_numbers<[1], [0], [0], [1], [0, 0, 1, 1], [], []>} : vector<8x8xf32>, vector<8x8xf32>, vector<8x8xf32> -> vector<8x8xf32>
    %c24_96 = arith.constant 24 : index
    %c0_97 = arith.constant 0 : index
    %198 = vector.load %arg5[%c24_96, %c0_97] : memref<32x32xf32, #tpu.memory_space<vmem>>, vector<8x32xf32>
    %cst_98 = arith.constant dense<0.000000e+00> : vector<8x32xf32>
    %199 = tpu.matmul %197, %198, %cst_98 {dimension_numbers = #tpu.dot_dimension_numbers<[1], [0], [0], [1], [0, 0, 1, 1], [], []>} : vector<8x8xf32>, vector<8x32xf32>, vector<8x32xf32> -> vector<8x32xf32>
    %200 = arith.addf %180, %199 : vector<8x32xf32>
    %201 = tpu.concatenate %119, %200 in 0 : vector<8x32xf32>, vector<8x32xf32> -> vector<16x32xf32>
    %c0_99 = arith.constant 0 : index
    %c0_100 = arith.constant 0 : index
    %202 = vector.load %arg6[%c0_99, %c0_100] : memref<1x32xf32, #tpu.memory_space<vmem>>, vector<1x32xf32>
    %203 = vector.broadcast %202 : vector<1x32xf32> to vector<16x32xf32>
    %204 = arith.addf %201, %203 : vector<16x32xf32>
    %cst_101 = arith.constant 2.000000e+00 : f32
    %205 = vector.broadcast %cst_101 : f32 to vector<16x32xf32>
    %206 = arith.mulf %205, %204 : vector<16x32xf32>
    %cst_102 = arith.constant dense<0.000000e+00> : vector<16xf32>
    %207 = vector.multi_reduction <add>, %206, %cst_102 [1] : vector<16x32xf32> to vector<16xf32>
    %208 = vector.shape_cast %207 : vector<16xf32> to vector<16x1xf32>
    %cst_103 = arith.constant 3.200000e+01 : f32
    %209 = vector.broadcast %cst_103 : f32 to vector<16x1xf32>
    %210 = arith.divf %208, %209 : vector<16x1xf32>
    %211 = vector.broadcast %210 : vector<16x1xf32> to vector<16x32xf32>
    %212 = arith.subf %206, %211 : vector<16x32xf32>
    %213 = arith.mulf %212, %212 : vector<16x32xf32>
    %cst_104 = arith.constant dense<0.000000e+00> : vector<16xf32>
    %214 = vector.multi_reduction <add>, %213, %cst_104 [1] : vector<16x32xf32> to vector<16xf32>
    %215 = vector.shape_cast %214 : vector<16xf32> to vector<16x1xf32>
    %cst_105 = arith.constant 3.200000e+01 : f32
    %216 = vector.broadcast %cst_105 : f32 to vector<16x1xf32>
    %217 = arith.divf %215, %216 : vector<16x1xf32>
    %218 = vector.broadcast %210 : vector<16x1xf32> to vector<16x32xf32>
    %219 = arith.subf %206, %218 : vector<16x32xf32>
    %cst_106 = arith.constant 9.99999974E-6 : f32
    %220 = vector.broadcast %cst_106 : f32 to vector<16x1xf32>
    %221 = arith.addf %217, %220 : vector<16x1xf32>
    %222 = math.rsqrt %221 : vector<16x1xf32>
    %223 = vector.broadcast %222 : vector<16x1xf32> to vector<16x32xf32>
    %224 = arith.mulf %219, %223 : vector<16x32xf32>
    %c0_107 = arith.constant 0 : index
    %c0_108 = arith.constant 0 : index
    %225 = vector.load %arg19[%c0_107, %c0_108] : memref<1x32xf32, #tpu.memory_space<vmem>>, vector<1x32xf32>
    %226 = vector.broadcast %225 : vector<1x32xf32> to vector<16x32xf32>
    %227 = arith.mulf %224, %226 : vector<16x32xf32>
    %c0_109 = arith.constant 0 : index
    %c0_110 = arith.constant 0 : index
    %228 = vector.load %arg20[%c0_109, %c0_110] : memref<1x32xf32, #tpu.memory_space<vmem>>, vector<1x32xf32>
    %229 = vector.broadcast %228 : vector<1x32xf32> to vector<16x32xf32>
    %230 = arith.addf %227, %229 : vector<16x32xf32>
    %c0_111 = arith.constant 0 : index
    %c0_112 = arith.constant 0 : index
    %231 = vector.load %arg9[%c0_111, %c0_112] : memref<32x64xf32, #tpu.memory_space<vmem>>, vector<32x64xf32>
    %cst_113 = arith.constant dense<0.000000e+00> : vector<16x64xf32>
    %232 = tpu.matmul %230, %231, %cst_113 {dimension_numbers = #tpu.dot_dimension_numbers<[1], [0], [0], [1], [0, 0, 1, 1], [], []>} : vector<16x32xf32>, vector<32x64xf32>, vector<16x64xf32> -> vector<16x64xf32>
    %c0_114 = arith.constant 0 : index
    %c0_115 = arith.constant 0 : index
    %233 = vector.load %arg10[%c0_114, %c0_115] : memref<1x64xf32, #tpu.memory_space<vmem>>, vector<1x64xf32>
    %234 = vector.broadcast %233 : vector<1x64xf32> to vector<16x64xf32>
    %235 = arith.addf %232, %234 : vector<16x64xf32>
    %236 = vector.extract_strided_slice %235 {offsets = [0, 0], sizes = [16, 32], strides = [1, 1]} : vector<16x64xf32> to vector<16x32xf32>
    %237 = vector.extract_strided_slice %235 {offsets = [0, 32], sizes = [16, 32], strides = [1, 1]} : vector<16x64xf32> to vector<16x32xf32>
    %cst_116 = arith.constant 0.000000e+00 : f32
    %238 = vector.broadcast %cst_116 : f32 to vector<8x32xf32>
    %239 = vector.extract_strided_slice %6 {offsets = [0, 0], sizes = [8, 8], strides = [1, 1]} : vector<16x32xf32> to vector<8x8xf32>
    %240 = vector.extract_strided_slice %236 {offsets = [0, 0], sizes = [8, 8], strides = [1, 1]} : vector<16x32xf32> to vector<8x8xf32>
    %cst_117 = arith.constant dense<0.000000e+00> : vector<8x8xf32>
    %241 = tpu.matmul %239, %240, %cst_117 {dimension_numbers = #tpu.dot_dimension_numbers<[1], [1], [0], [0], [0, 0, 1, 0], [], []>} : vector<8x8xf32>, vector<8x8xf32>, vector<8x8xf32> -> vector<8x8xf32>
    %cst_118 = arith.constant dense<0xFF800000> : vector<8xf32>
    %242 = vector.multi_reduction <maximumf>, %241, %cst_118 [1] : vector<8x8xf32> to vector<8xf32>
    %243 = vector.shape_cast %242 : vector<8xf32> to vector<8x1xf32>
    %244 = vector.broadcast %243 : vector<8x1xf32> to vector<8x8xf32>
    %245 = arith.subf %241, %244 : vector<8x8xf32>
    %246 = math.exp %245 : vector<8x8xf32>
    %cst_119 = arith.constant dense<0.000000e+00> : vector<8xf32>
    %247 = vector.multi_reduction <add>, %246, %cst_119 [1] : vector<8x8xf32> to vector<8xf32>
    %248 = vector.shape_cast %247 : vector<8xf32> to vector<8x1xf32>
    %249 = vector.broadcast %248 : vector<8x1xf32> to vector<8x8xf32>
    %250 = arith.divf %246, %249 : vector<8x8xf32>
    %c0_120 = arith.constant 0 : index
    %c0_121 = arith.constant 0 : index
    %c32 = arith.constant 32 : index
    %251 = vector.load %arg24[%c0_120, %c0_121, %c32] : memref<2x8x128xf32, #tpu.memory_space<vmem>>, vector<1x8x8xf32>
    %252 = vector.shape_cast %251 : vector<1x8x8xf32> to vector<8x8xf32>
    %253 = vector.shape_cast %250 : vector<8x8xf32> to vector<1x8x8xf32>
    tpu.vector_store %arg24[%c0_120, %c0_121, %c32], %253 {strides = array<i32>} : memref<2x8x128xf32, #tpu.memory_space<vmem>>, vector<1x8x8xf32>,
    %254 = vector.extract_strided_slice %237 {offsets = [0, 0], sizes = [8, 8], strides = [1, 1]} : vector<16x32xf32> to vector<8x8xf32>
    %cst_122 = arith.constant dense<0.000000e+00> : vector<8x8xf32>
    %255 = tpu.matmul %250, %254, %cst_122 {dimension_numbers = #tpu.dot_dimension_numbers<[1], [0], [0], [1], [0, 0, 1, 1], [], []>} : vector<8x8xf32>, vector<8x8xf32>, vector<8x8xf32> -> vector<8x8xf32>
    %c0_123 = arith.constant 0 : index
    %c0_124 = arith.constant 0 : index
    %256 = vector.load %arg11[%c0_123, %c0_124] : memref<32x32xf32, #tpu.memory_space<vmem>>, vector<8x32xf32>
    %cst_125 = arith.constant dense<0.000000e+00> : vector<8x32xf32>
    %257 = tpu.matmul %255, %256, %cst_125 {dimension_numbers = #tpu.dot_dimension_numbers<[1], [0], [0], [1], [0, 0, 1, 1], [], []>} : vector<8x8xf32>, vector<8x32xf32>, vector<8x32xf32> -> vector<8x32xf32>
    %258 = arith.addf %238, %257 : vector<8x32xf32>
    %259 = vector.extract_strided_slice %6 {offsets = [0, 8], sizes = [8, 8], strides = [1, 1]} : vector<16x32xf32> to vector<8x8xf32>
    %260 = vector.extract_strided_slice %236 {offsets = [0, 8], sizes = [8, 8], strides = [1, 1]} : vector<16x32xf32> to vector<8x8xf32>
    %cst_126 = arith.constant dense<0.000000e+00> : vector<8x8xf32>
    %261 = tpu.matmul %259, %260, %cst_126 {dimension_numbers = #tpu.dot_dimension_numbers<[1], [1], [0], [0], [0, 0, 1, 0], [], []>} : vector<8x8xf32>, vector<8x8xf32>, vector<8x8xf32> -> vector<8x8xf32>
    %cst_127 = arith.constant dense<0xFF800000> : vector<8xf32>
    %262 = vector.multi_reduction <maximumf>, %261, %cst_127 [1] : vector<8x8xf32> to vector<8xf32>
    %263 = vector.shape_cast %262 : vector<8xf32> to vector<8x1xf32>
    %264 = vector.broadcast %263 : vector<8x1xf32> to vector<8x8xf32>
    %265 = arith.subf %261, %264 : vector<8x8xf32>
    %266 = math.exp %265 : vector<8x8xf32>
    %cst_128 = arith.constant dense<0.000000e+00> : vector<8xf32>
    %267 = vector.multi_reduction <add>, %266, %cst_128 [1] : vector<8x8xf32> to vector<8xf32>
    %268 = vector.shape_cast %267 : vector<8xf32> to vector<8x1xf32>
    %269 = vector.broadcast %268 : vector<8x1xf32> to vector<8x8xf32>
    %270 = arith.divf %266, %269 : vector<8x8xf32>
    %c0_129 = arith.constant 0 : index
    %c0_130 = arith.constant 0 : index
    %c40 = arith.constant 40 : index
    %271 = vector.load %arg24[%c0_129, %c0_130, %c40] : memref<2x8x128xf32, #tpu.memory_space<vmem>>, vector<1x8x8xf32>
    %272 = vector.shape_cast %271 : vector<1x8x8xf32> to vector<8x8xf32>
    %273 = vector.shape_cast %270 : vector<8x8xf32> to vector<1x8x8xf32>
    tpu.vector_store %arg24[%c0_129, %c0_130, %c40], %273 {strides = array<i32>} : memref<2x8x128xf32, #tpu.memory_space<vmem>>, vector<1x8x8xf32>,
    %274 = vector.extract_strided_slice %237 {offsets = [0, 8], sizes = [8, 8], strides = [1, 1]} : vector<16x32xf32> to vector<8x8xf32>
    %cst_131 = arith.constant dense<0.000000e+00> : vector<8x8xf32>
    %275 = tpu.matmul %270, %274, %cst_131 {dimension_numbers = #tpu.dot_dimension_numbers<[1], [0], [0], [1], [0, 0, 1, 1], [], []>} : vector<8x8xf32>, vector<8x8xf32>, vector<8x8xf32> -> vector<8x8xf32>
    %c8_132 = arith.constant 8 : index
    %c0_133 = arith.constant 0 : index
    %276 = vector.load %arg11[%c8_132, %c0_133] : memref<32x32xf32, #tpu.memory_space<vmem>>, vector<8x32xf32>
    %cst_134 = arith.constant dense<0.000000e+00> : vector<8x32xf32>
    %277 = tpu.matmul %275, %276, %cst_134 {dimension_numbers = #tpu.dot_dimension_numbers<[1], [0], [0], [1], [0, 0, 1, 1], [], []>} : vector<8x8xf32>, vector<8x32xf32>, vector<8x32xf32> -> vector<8x32xf32>
    %278 = arith.addf %258, %277 : vector<8x32xf32>
    %279 = vector.extract_strided_slice %6 {offsets = [0, 16], sizes = [8, 8], strides = [1, 1]} : vector<16x32xf32> to vector<8x8xf32>
    %280 = vector.extract_strided_slice %236 {offsets = [0, 16], sizes = [8, 8], strides = [1, 1]} : vector<16x32xf32> to vector<8x8xf32>
    %cst_135 = arith.constant dense<0.000000e+00> : vector<8x8xf32>
    %281 = tpu.matmul %279, %280, %cst_135 {dimension_numbers = #tpu.dot_dimension_numbers<[1], [1], [0], [0], [0, 0, 1, 0], [], []>} : vector<8x8xf32>, vector<8x8xf32>, vector<8x8xf32> -> vector<8x8xf32>
    %cst_136 = arith.constant dense<0xFF800000> : vector<8xf32>
    %282 = vector.multi_reduction <maximumf>, %281, %cst_136 [1] : vector<8x8xf32> to vector<8xf32>
    %283 = vector.shape_cast %282 : vector<8xf32> to vector<8x1xf32>
    %284 = vector.broadcast %283 : vector<8x1xf32> to vector<8x8xf32>
    %285 = arith.subf %281, %284 : vector<8x8xf32>
    %286 = math.exp %285 : vector<8x8xf32>
    %cst_137 = arith.constant dense<0.000000e+00> : vector<8xf32>
    %287 = vector.multi_reduction <add>, %286, %cst_137 [1] : vector<8x8xf32> to vector<8xf32>
    %288 = vector.shape_cast %287 : vector<8xf32> to vector<8x1xf32>
    %289 = vector.broadcast %288 : vector<8x1xf32> to vector<8x8xf32>
    %290 = arith.divf %286, %289 : vector<8x8xf32>
    %c0_138 = arith.constant 0 : index
    %c0_139 = arith.constant 0 : index
    %c48 = arith.constant 48 : index
    %291 = vector.load %arg24[%c0_138, %c0_139, %c48] : memref<2x8x128xf32, #tpu.memory_space<vmem>>, vector<1x8x8xf32>
    %292 = vector.shape_cast %291 : vector<1x8x8xf32> to vector<8x8xf32>
    %293 = vector.shape_cast %290 : vector<8x8xf32> to vector<1x8x8xf32>
    tpu.vector_store %arg24[%c0_138, %c0_139, %c48], %293 {strides = array<i32>} : memref<2x8x128xf32, #tpu.memory_space<vmem>>, vector<1x8x8xf32>,
    %294 = vector.extract_strided_slice %237 {offsets = [0, 16], sizes = [8, 8], strides = [1, 1]} : vector<16x32xf32> to vector<8x8xf32>
    %cst_140 = arith.constant dense<0.000000e+00> : vector<8x8xf32>
    %295 = tpu.matmul %290, %294, %cst_140 {dimension_numbers = #tpu.dot_dimension_numbers<[1], [0], [0], [1], [0, 0, 1, 1], [], []>} : vector<8x8xf32>, vector<8x8xf32>, vector<8x8xf32> -> vector<8x8xf32>
    %c16_141 = arith.constant 16 : index
    %c0_142 = arith.constant 0 : index
    %296 = vector.load %arg11[%c16_141, %c0_142] : memref<32x32xf32, #tpu.memory_space<vmem>>, vector<8x32xf32>
    %cst_143 = arith.constant dense<0.000000e+00> : vector<8x32xf32>
    %297 = tpu.matmul %295, %296, %cst_143 {dimension_numbers = #tpu.dot_dimension_numbers<[1], [0], [0], [1], [0, 0, 1, 1], [], []>} : vector<8x8xf32>, vector<8x32xf32>, vector<8x32xf32> -> vector<8x32xf32>
    %298 = arith.addf %278, %297 : vector<8x32xf32>
    %299 = vector.extract_strided_slice %6 {offsets = [0, 24], sizes = [8, 8], strides = [1, 1]} : vector<16x32xf32> to vector<8x8xf32>
    %300 = vector.extract_strided_slice %236 {offsets = [0, 24], sizes = [8, 8], strides = [1, 1]} : vector<16x32xf32> to vector<8x8xf32>
    %cst_144 = arith.constant dense<0.000000e+00> : vector<8x8xf32>
    %301 = tpu.matmul %299, %300, %cst_144 {dimension_numbers = #tpu.dot_dimension_numbers<[1], [1], [0], [0], [0, 0, 1, 0], [], []>} : vector<8x8xf32>, vector<8x8xf32>, vector<8x8xf32> -> vector<8x8xf32>
    %cst_145 = arith.constant dense<0xFF800000> : vector<8xf32>
    %302 = vector.multi_reduction <maximumf>, %301, %cst_145 [1] : vector<8x8xf32> to vector<8xf32>
    %303 = vector.shape_cast %302 : vector<8xf32> to vector<8x1xf32>
    %304 = vector.broadcast %303 : vector<8x1xf32> to vector<8x8xf32>
    %305 = arith.subf %301, %304 : vector<8x8xf32>
    %306 = math.exp %305 : vector<8x8xf32>
    %cst_146 = arith.constant dense<0.000000e+00> : vector<8xf32>
    %307 = vector.multi_reduction <add>, %306, %cst_146 [1] : vector<8x8xf32> to vector<8xf32>
    %308 = vector.shape_cast %307 : vector<8xf32> to vector<8x1xf32>
    %309 = vector.broadcast %308 : vector<8x1xf32> to vector<8x8xf32>
    %310 = arith.divf %306, %309 : vector<8x8xf32>
    %c0_147 = arith.constant 0 : index
    %c0_148 = arith.constant 0 : index
    %c56 = arith.constant 56 : index
    %311 = vector.load %arg24[%c0_147, %c0_148, %c56] : memref<2x8x128xf32, #tpu.memory_space<vmem>>, vector<1x8x8xf32>
    %312 = vector.shape_cast %311 : vector<1x8x8xf32> to vector<8x8xf32>
    %313 = vector.shape_cast %310 : vector<8x8xf32> to vector<1x8x8xf32>
    tpu.vector_store %arg24[%c0_147, %c0_148, %c56], %313 {strides = array<i32>} : memref<2x8x128xf32, #tpu.memory_space<vmem>>, vector<1x8x8xf32>,
    %314 = vector.extract_strided_slice %237 {offsets = [0, 24], sizes = [8, 8], strides = [1, 1]} : vector<16x32xf32> to vector<8x8xf32>
    %cst_149 = arith.constant dense<0.000000e+00> : vector<8x8xf32>
    %315 = tpu.matmul %310, %314, %cst_149 {dimension_numbers = #tpu.dot_dimension_numbers<[1], [0], [0], [1], [0, 0, 1, 1], [], []>} : vector<8x8xf32>, vector<8x8xf32>, vector<8x8xf32> -> vector<8x8xf32>
    %c24_150 = arith.constant 24 : index
    %c0_151 = arith.constant 0 : index
    %316 = vector.load %arg11[%c24_150, %c0_151] : memref<32x32xf32, #tpu.memory_space<vmem>>, vector<8x32xf32>
    %cst_152 = arith.constant dense<0.000000e+00> : vector<8x32xf32>
    %317 = tpu.matmul %315, %316, %cst_152 {dimension_numbers = #tpu.dot_dimension_numbers<[1], [0], [0], [1], [0, 0, 1, 1], [], []>} : vector<8x8xf32>, vector<8x32xf32>, vector<8x32xf32> -> vector<8x32xf32>
    %318 = arith.addf %298, %317 : vector<8x32xf32>
    %cst_153 = arith.constant 0.000000e+00 : f32
    %319 = vector.broadcast %cst_153 : f32 to vector<8x32xf32>
    %320 = vector.extract_strided_slice %6 {offsets = [8, 0], sizes = [8, 8], strides = [1, 1]} : vector<16x32xf32> to vector<8x8xf32>
    %321 = vector.extract_strided_slice %236 {offsets = [8, 0], sizes = [8, 8], strides = [1, 1]} : vector<16x32xf32> to vector<8x8xf32>
    %cst_154 = arith.constant dense<0.000000e+00> : vector<8x8xf32>
    %322 = tpu.matmul %320, %321, %cst_154 {dimension_numbers = #tpu.dot_dimension_numbers<[1], [1], [0], [0], [0, 0, 1, 0], [], []>} : vector<8x8xf32>, vector<8x8xf32>, vector<8x8xf32> -> vector<8x8xf32>
    %cst_155 = arith.constant dense<0xFF800000> : vector<8xf32>
    %323 = vector.multi_reduction <maximumf>, %322, %cst_155 [1] : vector<8x8xf32> to vector<8xf32>
    %324 = vector.shape_cast %323 : vector<8xf32> to vector<8x1xf32>
    %325 = vector.broadcast %324 : vector<8x1xf32> to vector<8x8xf32>
    %326 = arith.subf %322, %325 : vector<8x8xf32>
    %327 = math.exp %326 : vector<8x8xf32>
    %cst_156 = arith.constant dense<0.000000e+00> : vector<8xf32>
    %328 = vector.multi_reduction <add>, %327, %cst_156 [1] : vector<8x8xf32> to vector<8xf32>
    %329 = vector.shape_cast %328 : vector<8xf32> to vector<8x1xf32>
    %330 = vector.broadcast %329 : vector<8x1xf32> to vector<8x8xf32>
    %331 = arith.divf %327, %330 : vector<8x8xf32>
    %c1_157 = arith.constant 1 : index
    %c0_158 = arith.constant 0 : index
    %c32_159 = arith.constant 32 : index
    %332 = vector.load %arg24[%c1_157, %c0_158, %c32_159] : memref<2x8x128xf32, #tpu.memory_space<vmem>>, vector<1x8x8xf32>
    %333 = vector.shape_cast %332 : vector<1x8x8xf32> to vector<8x8xf32>
    %334 = vector.shape_cast %331 : vector<8x8xf32> to vector<1x8x8xf32>
    tpu.vector_store %arg24[%c1_157, %c0_158, %c32_159], %334 {strides = array<i32>} : memref<2x8x128xf32, #tpu.memory_space<vmem>>, vector<1x8x8xf32>,
    %335 = vector.extract_strided_slice %237 {offsets = [8, 0], sizes = [8, 8], strides = [1, 1]} : vector<16x32xf32> to vector<8x8xf32>
    %cst_160 = arith.constant dense<0.000000e+00> : vector<8x8xf32>
    %336 = tpu.matmul %331, %335, %cst_160 {dimension_numbers = #tpu.dot_dimension_numbers<[1], [0], [0], [1], [0, 0, 1, 1], [], []>} : vector<8x8xf32>, vector<8x8xf32>, vector<8x8xf32> -> vector<8x8xf32>
    %c0_161 = arith.constant 0 : index
    %c0_162 = arith.constant 0 : index
    %337 = vector.load %arg11[%c0_161, %c0_162] : memref<32x32xf32, #tpu.memory_space<vmem>>, vector<8x32xf32>
    %cst_163 = arith.constant dense<0.000000e+00> : vector<8x32xf32>
    %338 = tpu.matmul %336, %337, %cst_163 {dimension_numbers = #tpu.dot_dimension_numbers<[1], [0], [0], [1], [0, 0, 1, 1], [], []>} : vector<8x8xf32>, vector<8x32xf32>, vector<8x32xf32> -> vector<8x32xf32>
    %339 = arith.addf %319, %338 : vector<8x32xf32>
    %340 = vector.extract_strided_slice %6 {offsets = [8, 8], sizes = [8, 8], strides = [1, 1]} : vector<16x32xf32> to vector<8x8xf32>
    %341 = vector.extract_strided_slice %236 {offsets = [8, 8], sizes = [8, 8], strides = [1, 1]} : vector<16x32xf32> to vector<8x8xf32>
    %cst_164 = arith.constant dense<0.000000e+00> : vector<8x8xf32>
    %342 = tpu.matmul %340, %341, %cst_164 {dimension_numbers = #tpu.dot_dimension_numbers<[1], [1], [0], [0], [0, 0, 1, 0], [], []>} : vector<8x8xf32>, vector<8x8xf32>, vector<8x8xf32> -> vector<8x8xf32>
    %cst_165 = arith.constant dense<0xFF800000> : vector<8xf32>
    %343 = vector.multi_reduction <maximumf>, %342, %cst_165 [1] : vector<8x8xf32> to vector<8xf32>
    %344 = vector.shape_cast %343 : vector<8xf32> to vector<8x1xf32>
    %345 = vector.broadcast %344 : vector<8x1xf32> to vector<8x8xf32>
    %346 = arith.subf %342, %345 : vector<8x8xf32>
    %347 = math.exp %346 : vector<8x8xf32>
    %cst_166 = arith.constant dense<0.000000e+00> : vector<8xf32>
    %348 = vector.multi_reduction <add>, %347, %cst_166 [1] : vector<8x8xf32> to vector<8xf32>
    %349 = vector.shape_cast %348 : vector<8xf32> to vector<8x1xf32>
    %350 = vector.broadcast %349 : vector<8x1xf32> to vector<8x8xf32>
    %351 = arith.divf %347, %350 : vector<8x8xf32>
    %c1_167 = arith.constant 1 : index
    %c0_168 = arith.constant 0 : index
    %c40_169 = arith.constant 40 : index
    %352 = vector.load %arg24[%c1_167, %c0_168, %c40_169] : memref<2x8x128xf32, #tpu.memory_space<vmem>>, vector<1x8x8xf32>
    %353 = vector.shape_cast %352 : vector<1x8x8xf32> to vector<8x8xf32>
    %354 = vector.shape_cast %351 : vector<8x8xf32> to vector<1x8x8xf32>
    tpu.vector_store %arg24[%c1_167, %c0_168, %c40_169], %354 {strides = array<i32>} : memref<2x8x128xf32, #tpu.memory_space<vmem>>, vector<1x8x8xf32>,
    %355 = vector.extract_strided_slice %237 {offsets = [8, 8], sizes = [8, 8], strides = [1, 1]} : vector<16x32xf32> to vector<8x8xf32>
    %cst_170 = arith.constant dense<0.000000e+00> : vector<8x8xf32>
    %356 = tpu.matmul %351, %355, %cst_170 {dimension_numbers = #tpu.dot_dimension_numbers<[1], [0], [0], [1], [0, 0, 1, 1], [], []>} : vector<8x8xf32>, vector<8x8xf32>, vector<8x8xf32> -> vector<8x8xf32>
    %c8_171 = arith.constant 8 : index
    %c0_172 = arith.constant 0 : index
    %357 = vector.load %arg11[%c8_171, %c0_172] : memref<32x32xf32, #tpu.memory_space<vmem>>, vector<8x32xf32>
    %cst_173 = arith.constant dense<0.000000e+00> : vector<8x32xf32>
    %358 = tpu.matmul %356, %357, %cst_173 {dimension_numbers = #tpu.dot_dimension_numbers<[1], [0], [0], [1], [0, 0, 1, 1], [], []>} : vector<8x8xf32>, vector<8x32xf32>, vector<8x32xf32> -> vector<8x32xf32>
    %359 = arith.addf %339, %358 : vector<8x32xf32>
    %360 = vector.extract_strided_slice %6 {offsets = [8, 16], sizes = [8, 8], strides = [1, 1]} : vector<16x32xf32> to vector<8x8xf32>
    %361 = vector.extract_strided_slice %236 {offsets = [8, 16], sizes = [8, 8], strides = [1, 1]} : vector<16x32xf32> to vector<8x8xf32>
    %cst_174 = arith.constant dense<0.000000e+00> : vector<8x8xf32>
    %362 = tpu.matmul %360, %361, %cst_174 {dimension_numbers = #tpu.dot_dimension_numbers<[1], [1], [0], [0], [0, 0, 1, 0], [], []>} : vector<8x8xf32>, vector<8x8xf32>, vector<8x8xf32> -> vector<8x8xf32>
    %cst_175 = arith.constant dense<0xFF800000> : vector<8xf32>
    %363 = vector.multi_reduction <maximumf>, %362, %cst_175 [1] : vector<8x8xf32> to vector<8xf32>
    %364 = vector.shape_cast %363 : vector<8xf32> to vector<8x1xf32>
    %365 = vector.broadcast %364 : vector<8x1xf32> to vector<8x8xf32>
    %366 = arith.subf %362, %365 : vector<8x8xf32>
    %367 = math.exp %366 : vector<8x8xf32>
    %cst_176 = arith.constant dense<0.000000e+00> : vector<8xf32>
    %368 = vector.multi_reduction <add>, %367, %cst_176 [1] : vector<8x8xf32> to vector<8xf32>
    %369 = vector.shape_cast %368 : vector<8xf32> to vector<8x1xf32>
    %370 = vector.broadcast %369 : vector<8x1xf32> to vector<8x8xf32>
    %371 = arith.divf %367, %370 : vector<8x8xf32>
    %c1_177 = arith.constant 1 : index
    %c0_178 = arith.constant 0 : index
    %c48_179 = arith.constant 48 : index
    %372 = vector.load %arg24[%c1_177, %c0_178, %c48_179] : memref<2x8x128xf32, #tpu.memory_space<vmem>>, vector<1x8x8xf32>
    %373 = vector.shape_cast %372 : vector<1x8x8xf32> to vector<8x8xf32>
    %374 = vector.shape_cast %371 : vector<8x8xf32> to vector<1x8x8xf32>
    tpu.vector_store %arg24[%c1_177, %c0_178, %c48_179], %374 {strides = array<i32>} : memref<2x8x128xf32, #tpu.memory_space<vmem>>, vector<1x8x8xf32>,
    %375 = vector.extract_strided_slice %237 {offsets = [8, 16], sizes = [8, 8], strides = [1, 1]} : vector<16x32xf32> to vector<8x8xf32>
    %cst_180 = arith.constant dense<0.000000e+00> : vector<8x8xf32>
    %376 = tpu.matmul %371, %375, %cst_180 {dimension_numbers = #tpu.dot_dimension_numbers<[1], [0], [0], [1], [0, 0, 1, 1], [], []>} : vector<8x8xf32>, vector<8x8xf32>, vector<8x8xf32> -> vector<8x8xf32>
    %c16_181 = arith.constant 16 : index
    %c0_182 = arith.constant 0 : index
    %377 = vector.load %arg11[%c16_181, %c0_182] : memref<32x32xf32, #tpu.memory_space<vmem>>, vector<8x32xf32>
    %cst_183 = arith.constant dense<0.000000e+00> : vector<8x32xf32>
    %378 = tpu.matmul %376, %377, %cst_183 {dimension_numbers = #tpu.dot_dimension_numbers<[1], [0], [0], [1], [0, 0, 1, 1], [], []>} : vector<8x8xf32>, vector<8x32xf32>, vector<8x32xf32> -> vector<8x32xf32>
    %379 = arith.addf %359, %378 : vector<8x32xf32>
    %380 = vector.extract_strided_slice %6 {offsets = [8, 24], sizes = [8, 8], strides = [1, 1]} : vector<16x32xf32> to vector<8x8xf32>
    %381 = vector.extract_strided_slice %236 {offsets = [8, 24], sizes = [8, 8], strides = [1, 1]} : vector<16x32xf32> to vector<8x8xf32>
    %cst_184 = arith.constant dense<0.000000e+00> : vector<8x8xf32>
    %382 = tpu.matmul %380, %381, %cst_184 {dimension_numbers = #tpu.dot_dimension_numbers<[1], [1], [0], [0], [0, 0, 1, 0], [], []>} : vector<8x8xf32>, vector<8x8xf32>, vector<8x8xf32> -> vector<8x8xf32>
    %cst_185 = arith.constant dense<0xFF800000> : vector<8xf32>
    %383 = vector.multi_reduction <maximumf>, %382, %cst_185 [1] : vector<8x8xf32> to vector<8xf32>
    %384 = vector.shape_cast %383 : vector<8xf32> to vector<8x1xf32>
    %385 = vector.broadcast %384 : vector<8x1xf32> to vector<8x8xf32>
    %386 = arith.subf %382, %385 : vector<8x8xf32>
    %387 = math.exp %386 : vector<8x8xf32>
    %cst_186 = arith.constant dense<0.000000e+00> : vector<8xf32>
    %388 = vector.multi_reduction <add>, %387, %cst_186 [1] : vector<8x8xf32> to vector<8xf32>
    %389 = vector.shape_cast %388 : vector<8xf32> to vector<8x1xf32>
    %390 = vector.broadcast %389 : vector<8x1xf32> to vector<8x8xf32>
    %391 = arith.divf %387, %390 : vector<8x8xf32>
    %c1_187 = arith.constant 1 : index
    %c0_188 = arith.constant 0 : index
    %c56_189 = arith.constant 56 : index
    %392 = vector.load %arg24[%c1_187, %c0_188, %c56_189] : memref<2x8x128xf32, #tpu.memory_space<vmem>>, vector<1x8x8xf32>
    %393 = vector.shape_cast %392 : vector<1x8x8xf32> to vector<8x8xf32>
    %394 = vector.shape_cast %391 : vector<8x8xf32> to vector<1x8x8xf32>
    tpu.vector_store %arg24[%c1_187, %c0_188, %c56_189], %394 {strides = array<i32>} : memref<2x8x128xf32, #tpu.memory_space<vmem>>, vector<1x8x8xf32>,
    %395 = vector.extract_strided_slice %237 {offsets = [8, 24], sizes = [8, 8], strides = [1, 1]} : vector<16x32xf32> to vector<8x8xf32>
    %cst_190 = arith.constant dense<0.000000e+00> : vector<8x8xf32>
    %396 = tpu.matmul %391, %395, %cst_190 {dimension_numbers = #tpu.dot_dimension_numbers<[1], [0], [0], [1], [0, 0, 1, 1], [], []>} : vector<8x8xf32>, vector<8x8xf32>, vector<8x8xf32> -> vector<8x8xf32>
    %c24_191 = arith.constant 24 : index
    %c0_192 = arith.constant 0 : index
    %397 = vector.load %arg11[%c24_191, %c0_192] : memref<32x32xf32, #tpu.memory_space<vmem>>, vector<8x32xf32>
    %cst_193 = arith.constant dense<0.000000e+00> : vector<8x32xf32>
    %398 = tpu.matmul %396, %397, %cst_193 {dimension_numbers = #tpu.dot_dimension_numbers<[1], [0], [0], [1], [0, 0, 1, 1], [], []>} : vector<8x8xf32>, vector<8x32xf32>, vector<8x32xf32> -> vector<8x32xf32>
    %399 = arith.addf %379, %398 : vector<8x32xf32>
    %400 = tpu.concatenate %318, %399 in 0 : vector<8x32xf32>, vector<8x32xf32> -> vector<16x32xf32>
    %c0_194 = arith.constant 0 : index
    %c0_195 = arith.constant 0 : index
    %401 = vector.load %arg12[%c0_194, %c0_195] : memref<1x32xf32, #tpu.memory_space<vmem>>, vector<1x32xf32>
    %402 = vector.broadcast %401 : vector<1x32xf32> to vector<16x32xf32>
    %403 = arith.addf %400, %402 : vector<16x32xf32>
    %cst_196 = arith.constant 2.000000e+00 : f32
    %404 = vector.broadcast %cst_196 : f32 to vector<16x32xf32>
    %405 = arith.mulf %404, %403 : vector<16x32xf32>
    %cst_197 = arith.constant dense<0.000000e+00> : vector<16xf32>
    %406 = vector.multi_reduction <add>, %405, %cst_197 [1] : vector<16x32xf32> to vector<16xf32>
    %407 = vector.shape_cast %406 : vector<16xf32> to vector<16x1xf32>
    %cst_198 = arith.constant 3.200000e+01 : f32
    %408 = vector.broadcast %cst_198 : f32 to vector<16x1xf32>
    %409 = arith.divf %407, %408 : vector<16x1xf32>
    %410 = vector.broadcast %409 : vector<16x1xf32> to vector<16x32xf32>
    %411 = arith.subf %405, %410 : vector<16x32xf32>
    %412 = arith.mulf %411, %411 : vector<16x32xf32>
    %cst_199 = arith.constant dense<0.000000e+00> : vector<16xf32>
    %413 = vector.multi_reduction <add>, %412, %cst_199 [1] : vector<16x32xf32> to vector<16xf32>
    %414 = vector.shape_cast %413 : vector<16xf32> to vector<16x1xf32>
    %cst_200 = arith.constant 3.200000e+01 : f32
    %415 = vector.broadcast %cst_200 : f32 to vector<16x1xf32>
    %416 = arith.divf %414, %415 : vector<16x1xf32>
    %417 = vector.broadcast %409 : vector<16x1xf32> to vector<16x32xf32>
    %418 = arith.subf %405, %417 : vector<16x32xf32>
    %cst_201 = arith.constant 9.99999974E-6 : f32
    %419 = vector.broadcast %cst_201 : f32 to vector<16x1xf32>
    %420 = arith.addf %416, %419 : vector<16x1xf32>
    %421 = math.rsqrt %420 : vector<16x1xf32>
    %422 = vector.broadcast %421 : vector<16x1xf32> to vector<16x32xf32>
    %423 = arith.mulf %418, %422 : vector<16x32xf32>
    %c0_202 = arith.constant 0 : index
    %c0_203 = arith.constant 0 : index
    %424 = vector.load %arg21[%c0_202, %c0_203] : memref<1x32xf32, #tpu.memory_space<vmem>>, vector<1x32xf32>
    %425 = vector.broadcast %424 : vector<1x32xf32> to vector<16x32xf32>
    %426 = arith.mulf %423, %425 : vector<16x32xf32>
    %c0_204 = arith.constant 0 : index
    %c0_205 = arith.constant 0 : index
    %427 = vector.load %arg22[%c0_204, %c0_205] : memref<1x32xf32, #tpu.memory_space<vmem>>, vector<1x32xf32>
    %428 = vector.broadcast %427 : vector<1x32xf32> to vector<16x32xf32>
    %429 = arith.addf %426, %428 : vector<16x32xf32>
    %c0_206 = arith.constant 0 : index
    %c0_207 = arith.constant 0 : index
    %430 = vector.load %arg13[%c0_206, %c0_207] : memref<32x128xf32, #tpu.memory_space<vmem>>, vector<32x128xf32>
    %cst_208 = arith.constant dense<0.000000e+00> : vector<16x128xf32>
    %431 = tpu.matmul %429, %430, %cst_208 {dimension_numbers = #tpu.dot_dimension_numbers<[1], [0], [0], [1], [0, 0, 1, 1], [], []>} : vector<16x32xf32>, vector<32x128xf32>, vector<16x128xf32> -> vector<16x128xf32>
    %c0_209 = arith.constant 0 : index
    %c0_210 = arith.constant 0 : index
    %432 = vector.load %arg14[%c0_209, %c0_210] : memref<1x128xf32, #tpu.memory_space<vmem>>, vector<1x128xf32>
    %433 = vector.broadcast %432 : vector<1x128xf32> to vector<16x128xf32>
    %434 = arith.addf %431, %433 : vector<16x128xf32>
    %cst_211 = arith.constant 0.000000e+00 : f32
    %435 = vector.broadcast %cst_211 : f32 to vector<16x128xf32>
    %436 = arith.cmpf oge, %434, %435 : vector<16x128xf32>
    %cst_212 = arith.constant 0.00999999977 : f32
    %437 = vector.broadcast %cst_212 : f32 to vector<16x128xf32>
    %438 = arith.mulf %437, %434 : vector<16x128xf32>
    %439 = arith.select %436, %434, %438 : vector<16x128xi1>, vector<16x128xf32>
    %c0_213 = arith.constant 0 : index
    %c0_214 = arith.constant 0 : index
    %440 = vector.load %arg15[%c0_213, %c0_214] : memref<128x32xf32, #tpu.memory_space<vmem>>, vector<128x32xf32>
    %cst_215 = arith.constant dense<0.000000e+00> : vector<16x32xf32>
    %441 = tpu.matmul %439, %440, %cst_215 {dimension_numbers = #tpu.dot_dimension_numbers<[1], [0], [0], [1], [0, 0, 1, 1], [], []>} : vector<16x128xf32>, vector<128x32xf32>, vector<16x32xf32> -> vector<16x32xf32>
    %c0_216 = arith.constant 0 : index
    %c0_217 = arith.constant 0 : index
    %442 = vector.load %arg16[%c0_216, %c0_217] : memref<1x32xf32, #tpu.memory_space<vmem>>, vector<1x32xf32>
    %443 = vector.broadcast %442 : vector<1x32xf32> to vector<16x32xf32>
    %444 = arith.addf %441, %443 : vector<16x32xf32>
    %cst_218 = arith.constant 2.000000e+00 : f32
    %445 = vector.broadcast %cst_218 : f32 to vector<16x32xf32>
    %446 = arith.mulf %445, %444 : vector<16x32xf32>
    %cst_219 = arith.constant dense<0.000000e+00> : vector<16xf32>
    %447 = vector.multi_reduction <add>, %446, %cst_219 [1] : vector<16x32xf32> to vector<16xf32>
    %448 = vector.shape_cast %447 : vector<16xf32> to vector<16x1xf32>
    %cst_220 = arith.constant 3.200000e+01 : f32
    %449 = vector.broadcast %cst_220 : f32 to vector<16x1xf32>
    %450 = arith.divf %448, %449 : vector<16x1xf32>
    %451 = vector.broadcast %450 : vector<16x1xf32> to vector<16x32xf32>
    %452 = arith.subf %446, %451 : vector<16x32xf32>
    %453 = arith.mulf %452, %452 : vector<16x32xf32>
    %cst_221 = arith.constant dense<0.000000e+00> : vector<16xf32>
    %454 = vector.multi_reduction <add>, %453, %cst_221 [1] : vector<16x32xf32> to vector<16xf32>
    %455 = vector.shape_cast %454 : vector<16xf32> to vector<16x1xf32>
    %cst_222 = arith.constant 3.200000e+01 : f32
    %456 = vector.broadcast %cst_222 : f32 to vector<16x1xf32>
    %457 = arith.divf %455, %456 : vector<16x1xf32>
    %458 = vector.broadcast %450 : vector<16x1xf32> to vector<16x32xf32>
    %459 = arith.subf %446, %458 : vector<16x32xf32>
    %cst_223 = arith.constant 9.99999974E-6 : f32
    %460 = vector.broadcast %cst_223 : f32 to vector<16x1xf32>
    %461 = arith.addf %457, %460 : vector<16x1xf32>
    %462 = math.rsqrt %461 : vector<16x1xf32>
    %463 = vector.broadcast %462 : vector<16x1xf32> to vector<16x32xf32>
    %464 = arith.mulf %459, %463 : vector<16x32xf32>
    %c0_224 = arith.constant 0 : index
    %c0_225 = arith.constant 0 : index
    %465 = vector.load %arg17[%c0_224, %c0_225] : memref<1x32xf32, #tpu.memory_space<vmem>>, vector<1x32xf32>
    %466 = vector.broadcast %465 : vector<1x32xf32> to vector<16x32xf32>
    %467 = arith.mulf %464, %466 : vector<16x32xf32>
    %c0_226 = arith.constant 0 : index
    %c0_227 = arith.constant 0 : index
    %468 = vector.load %arg18[%c0_226, %c0_227] : memref<1x32xf32, #tpu.memory_space<vmem>>, vector<1x32xf32>
    %469 = vector.broadcast %468 : vector<1x32xf32> to vector<16x32xf32>
    %470 = arith.addf %467, %469 : vector<16x32xf32>
    %c0_228 = arith.constant 0 : index
    %c0_229 = arith.constant 0 : index
    %471 = vector.load %arg3[%c0_228, %c0_229] : memref<32x96xf32, #tpu.memory_space<vmem>>, vector<32x96xf32>
    %cst_230 = arith.constant dense<0.000000e+00> : vector<16x96xf32>
    %472 = tpu.matmul %470, %471, %cst_230 {dimension_numbers = #tpu.dot_dimension_numbers<[1], [0], [0], [1], [0, 0, 1, 1], [], []>} : vector<16x32xf32>, vector<32x96xf32>, vector<16x96xf32> -> vector<16x96xf32>
    %c0_231 = arith.constant 0 : index
    %c0_232 = arith.constant 0 : index
    %473 = vector.load %arg4[%c0_231, %c0_232] : memref<1x96xf32, #tpu.memory_space<vmem>>, vector<1x96xf32>
    %474 = vector.broadcast %473 : vector<1x96xf32> to vector<16x96xf32>
    %475 = arith.addf %472, %474 : vector<16x96xf32>
    %476 = vector.extract_strided_slice %475 {offsets = [0, 0], sizes = [16, 32], strides = [1, 1]} : vector<16x96xf32> to vector<16x32xf32>
    %477 = vector.extract_strided_slice %475 {offsets = [0, 32], sizes = [16, 32], strides = [1, 1]} : vector<16x96xf32> to vector<16x32xf32>
    %478 = vector.extract_strided_slice %475 {offsets = [0, 64], sizes = [16, 32], strides = [1, 1]} : vector<16x96xf32> to vector<16x32xf32>
    %cst_233 = arith.constant 0.000000e+00 : f32
    %479 = vector.broadcast %cst_233 : f32 to vector<8x32xf32>
    %480 = vector.extract_strided_slice %476 {offsets = [0, 0], sizes = [8, 8], strides = [1, 1]} : vector<16x32xf32> to vector<8x8xf32>
    %481 = vector.extract_strided_slice %477 {offsets = [0, 0], sizes = [8, 8], strides = [1, 1]} : vector<16x32xf32> to vector<8x8xf32>
    %cst_234 = arith.constant dense<0.000000e+00> : vector<8x8xf32>
    %482 = tpu.matmul %480, %481, %cst_234 {dimension_numbers = #tpu.dot_dimension_numbers<[1], [1], [0], [0], [0, 0, 1, 0], [], []>} : vector<8x8xf32>, vector<8x8xf32>, vector<8x8xf32> -> vector<8x8xf32>
    %cst_235 = arith.constant dense<0xFF800000> : vector<8xf32>
    %483 = vector.multi_reduction <maximumf>, %482, %cst_235 [1] : vector<8x8xf32> to vector<8xf32>
    %484 = vector.shape_cast %483 : vector<8xf32> to vector<8x1xf32>
    %485 = vector.broadcast %484 : vector<8x1xf32> to vector<8x8xf32>
    %486 = arith.subf %482, %485 : vector<8x8xf32>
    %487 = math.exp %486 : vector<8x8xf32>
    %cst_236 = arith.constant dense<0.000000e+00> : vector<8xf32>
    %488 = vector.multi_reduction <add>, %487, %cst_236 [1] : vector<8x8xf32> to vector<8xf32>
    %489 = vector.shape_cast %488 : vector<8xf32> to vector<8x1xf32>
    %490 = vector.broadcast %489 : vector<8x1xf32> to vector<8x8xf32>
    %491 = arith.divf %487, %490 : vector<8x8xf32>
    %c0_237 = arith.constant 0 : index
    %c0_238 = arith.constant 0 : index
    %c64 = arith.constant 64 : index
    %492 = vector.load %arg24[%c0_237, %c0_238, %c64] : memref<2x8x128xf32, #tpu.memory_space<vmem>>, vector<1x8x8xf32>
    %493 = vector.shape_cast %492 : vector<1x8x8xf32> to vector<8x8xf32>
    %494 = vector.shape_cast %491 : vector<8x8xf32> to vector<1x8x8xf32>
    tpu.vector_store %arg24[%c0_237, %c0_238, %c64], %494 {strides = array<i32>} : memref<2x8x128xf32, #tpu.memory_space<vmem>>, vector<1x8x8xf32>,
    %495 = vector.extract_strided_slice %478 {offsets = [0, 0], sizes = [8, 8], strides = [1, 1]} : vector<16x32xf32> to vector<8x8xf32>
    %cst_239 = arith.constant dense<0.000000e+00> : vector<8x8xf32>
    %496 = tpu.matmul %491, %495, %cst_239 {dimension_numbers = #tpu.dot_dimension_numbers<[1], [0], [0], [1], [0, 0, 1, 1], [], []>} : vector<8x8xf32>, vector<8x8xf32>, vector<8x8xf32> -> vector<8x8xf32>
    %c0_240 = arith.constant 0 : index
    %c0_241 = arith.constant 0 : index
    %497 = vector.load %arg5[%c0_240, %c0_241] : memref<32x32xf32, #tpu.memory_space<vmem>>, vector<8x32xf32>
    %cst_242 = arith.constant dense<0.000000e+00> : vector<8x32xf32>
    %498 = tpu.matmul %496, %497, %cst_242 {dimension_numbers = #tpu.dot_dimension_numbers<[1], [0], [0], [1], [0, 0, 1, 1], [], []>} : vector<8x8xf32>, vector<8x32xf32>, vector<8x32xf32> -> vector<8x32xf32>
    %499 = arith.addf %479, %498 : vector<8x32xf32>
    %500 = vector.extract_strided_slice %476 {offsets = [0, 8], sizes = [8, 8], strides = [1, 1]} : vector<16x32xf32> to vector<8x8xf32>
    %501 = vector.extract_strided_slice %477 {offsets = [0, 8], sizes = [8, 8], strides = [1, 1]} : vector<16x32xf32> to vector<8x8xf32>
    %cst_243 = arith.constant dense<0.000000e+00> : vector<8x8xf32>
    %502 = tpu.matmul %500, %501, %cst_243 {dimension_numbers = #tpu.dot_dimension_numbers<[1], [1], [0], [0], [0, 0, 1, 0], [], []>} : vector<8x8xf32>, vector<8x8xf32>, vector<8x8xf32> -> vector<8x8xf32>
    %cst_244 = arith.constant dense<0xFF800000> : vector<8xf32>
    %503 = vector.multi_reduction <maximumf>, %502, %cst_244 [1] : vector<8x8xf32> to vector<8xf32>
    %504 = vector.shape_cast %503 : vector<8xf32> to vector<8x1xf32>
    %505 = vector.broadcast %504 : vector<8x1xf32> to vector<8x8xf32>
    %506 = arith.subf %502, %505 : vector<8x8xf32>
    %507 = math.exp %506 : vector<8x8xf32>
    %cst_245 = arith.constant dense<0.000000e+00> : vector<8xf32>
    %508 = vector.multi_reduction <add>, %507, %cst_245 [1] : vector<8x8xf32> to vector<8xf32>
    %509 = vector.shape_cast %508 : vector<8xf32> to vector<8x1xf32>
    %510 = vector.broadcast %509 : vector<8x1xf32> to vector<8x8xf32>
    %511 = arith.divf %507, %510 : vector<8x8xf32>
    %c0_246 = arith.constant 0 : index
    %c0_247 = arith.constant 0 : index
    %c72 = arith.constant 72 : index
    %512 = vector.load %arg24[%c0_246, %c0_247, %c72] : memref<2x8x128xf32, #tpu.memory_space<vmem>>, vector<1x8x8xf32>
    %513 = vector.shape_cast %512 : vector<1x8x8xf32> to vector<8x8xf32>
    %514 = vector.shape_cast %511 : vector<8x8xf32> to vector<1x8x8xf32>
    tpu.vector_store %arg24[%c0_246, %c0_247, %c72], %514 {strides = array<i32>} : memref<2x8x128xf32, #tpu.memory_space<vmem>>, vector<1x8x8xf32>,
    %515 = vector.extract_strided_slice %478 {offsets = [0, 8], sizes = [8, 8], strides = [1, 1]} : vector<16x32xf32> to vector<8x8xf32>
    %cst_248 = arith.constant dense<0.000000e+00> : vector<8x8xf32>
    %516 = tpu.matmul %511, %515, %cst_248 {dimension_numbers = #tpu.dot_dimension_numbers<[1], [0], [0], [1], [0, 0, 1, 1], [], []>} : vector<8x8xf32>, vector<8x8xf32>, vector<8x8xf32> -> vector<8x8xf32>
    %c8_249 = arith.constant 8 : index
    %c0_250 = arith.constant 0 : index
    %517 = vector.load %arg5[%c8_249, %c0_250] : memref<32x32xf32, #tpu.memory_space<vmem>>, vector<8x32xf32>
    %cst_251 = arith.constant dense<0.000000e+00> : vector<8x32xf32>
    %518 = tpu.matmul %516, %517, %cst_251 {dimension_numbers = #tpu.dot_dimension_numbers<[1], [0], [0], [1], [0, 0, 1, 1], [], []>} : vector<8x8xf32>, vector<8x32xf32>, vector<8x32xf32> -> vector<8x32xf32>
    %519 = arith.addf %499, %518 : vector<8x32xf32>
    %520 = vector.extract_strided_slice %476 {offsets = [0, 16], sizes = [8, 8], strides = [1, 1]} : vector<16x32xf32> to vector<8x8xf32>
    %521 = vector.extract_strided_slice %477 {offsets = [0, 16], sizes = [8, 8], strides = [1, 1]} : vector<16x32xf32> to vector<8x8xf32>
    %cst_252 = arith.constant dense<0.000000e+00> : vector<8x8xf32>
    %522 = tpu.matmul %520, %521, %cst_252 {dimension_numbers = #tpu.dot_dimension_numbers<[1], [1], [0], [0], [0, 0, 1, 0], [], []>} : vector<8x8xf32>, vector<8x8xf32>, vector<8x8xf32> -> vector<8x8xf32>
    %cst_253 = arith.constant dense<0xFF800000> : vector<8xf32>
    %523 = vector.multi_reduction <maximumf>, %522, %cst_253 [1] : vector<8x8xf32> to vector<8xf32>
    %524 = vector.shape_cast %523 : vector<8xf32> to vector<8x1xf32>
    %525 = vector.broadcast %524 : vector<8x1xf32> to vector<8x8xf32>
    %526 = arith.subf %522, %525 : vector<8x8xf32>
    %527 = math.exp %526 : vector<8x8xf32>
    %cst_254 = arith.constant dense<0.000000e+00> : vector<8xf32>
    %528 = vector.multi_reduction <add>, %527, %cst_254 [1] : vector<8x8xf32> to vector<8xf32>
    %529 = vector.shape_cast %528 : vector<8xf32> to vector<8x1xf32>
    %530 = vector.broadcast %529 : vector<8x1xf32> to vector<8x8xf32>
    %531 = arith.divf %527, %530 : vector<8x8xf32>
    %c0_255 = arith.constant 0 : index
    %c0_256 = arith.constant 0 : index
    %c80 = arith.constant 80 : index
    %532 = vector.load %arg24[%c0_255, %c0_256, %c80] : memref<2x8x128xf32, #tpu.memory_space<vmem>>, vector<1x8x8xf32>
    %533 = vector.shape_cast %532 : vector<1x8x8xf32> to vector<8x8xf32>
    %534 = vector.shape_cast %531 : vector<8x8xf32> to vector<1x8x8xf32>
    tpu.vector_store %arg24[%c0_255, %c0_256, %c80], %534 {strides = array<i32>} : memref<2x8x128xf32, #tpu.memory_space<vmem>>, vector<1x8x8xf32>,
    %535 = vector.extract_strided_slice %478 {offsets = [0, 16], sizes = [8, 8], strides = [1, 1]} : vector<16x32xf32> to vector<8x8xf32>
    %cst_257 = arith.constant dense<0.000000e+00> : vector<8x8xf32>
    %536 = tpu.matmul %531, %535, %cst_257 {dimension_numbers = #tpu.dot_dimension_numbers<[1], [0], [0], [1], [0, 0, 1, 1], [], []>} : vector<8x8xf32>, vector<8x8xf32>, vector<8x8xf32> -> vector<8x8xf32>
    %c16_258 = arith.constant 16 : index
    %c0_259 = arith.constant 0 : index
    %537 = vector.load %arg5[%c16_258, %c0_259] : memref<32x32xf32, #tpu.memory_space<vmem>>, vector<8x32xf32>
    %cst_260 = arith.constant dense<0.000000e+00> : vector<8x32xf32>
    %538 = tpu.matmul %536, %537, %cst_260 {dimension_numbers = #tpu.dot_dimension_numbers<[1], [0], [0], [1], [0, 0, 1, 1], [], []>} : vector<8x8xf32>, vector<8x32xf32>, vector<8x32xf32> -> vector<8x32xf32>
    %539 = arith.addf %519, %538 : vector<8x32xf32>
    %540 = vector.extract_strided_slice %476 {offsets = [0, 24], sizes = [8, 8], strides = [1, 1]} : vector<16x32xf32> to vector<8x8xf32>
    %541 = vector.extract_strided_slice %477 {offsets = [0, 24], sizes = [8, 8], strides = [1, 1]} : vector<16x32xf32> to vector<8x8xf32>
    %cst_261 = arith.constant dense<0.000000e+00> : vector<8x8xf32>
    %542 = tpu.matmul %540, %541, %cst_261 {dimension_numbers = #tpu.dot_dimension_numbers<[1], [1], [0], [0], [0, 0, 1, 0], [], []>} : vector<8x8xf32>, vector<8x8xf32>, vector<8x8xf32> -> vector<8x8xf32>
    %cst_262 = arith.constant dense<0xFF800000> : vector<8xf32>
    %543 = vector.multi_reduction <maximumf>, %542, %cst_262 [1] : vector<8x8xf32> to vector<8xf32>
    %544 = vector.shape_cast %543 : vector<8xf32> to vector<8x1xf32>
    %545 = vector.broadcast %544 : vector<8x1xf32> to vector<8x8xf32>
    %546 = arith.subf %542, %545 : vector<8x8xf32>
    %547 = math.exp %546 : vector<8x8xf32>
    %cst_263 = arith.constant dense<0.000000e+00> : vector<8xf32>
    %548 = vector.multi_reduction <add>, %547, %cst_263 [1] : vector<8x8xf32> to vector<8xf32>
    %549 = vector.shape_cast %548 : vector<8xf32> to vector<8x1xf32>
    %550 = vector.broadcast %549 : vector<8x1xf32> to vector<8x8xf32>
    %551 = arith.divf %547, %550 : vector<8x8xf32>
    %c0_264 = arith.constant 0 : index
    %c0_265 = arith.constant 0 : index
    %c88 = arith.constant 88 : index
    %552 = vector.load %arg24[%c0_264, %c0_265, %c88] : memref<2x8x128xf32, #tpu.memory_space<vmem>>, vector<1x8x8xf32>
    %553 = vector.shape_cast %552 : vector<1x8x8xf32> to vector<8x8xf32>
    %554 = vector.shape_cast %551 : vector<8x8xf32> to vector<1x8x8xf32>
    tpu.vector_store %arg24[%c0_264, %c0_265, %c88], %554 {strides = array<i32>} : memref<2x8x128xf32, #tpu.memory_space<vmem>>, vector<1x8x8xf32>,
    %555 = vector.extract_strided_slice %478 {offsets = [0, 24], sizes = [8, 8], strides = [1, 1]} : vector<16x32xf32> to vector<8x8xf32>
    %cst_266 = arith.constant dense<0.000000e+00> : vector<8x8xf32>
    %556 = tpu.matmul %551, %555, %cst_266 {dimension_numbers = #tpu.dot_dimension_numbers<[1], [0], [0], [1], [0, 0, 1, 1], [], []>} : vector<8x8xf32>, vector<8x8xf32>, vector<8x8xf32> -> vector<8x8xf32>
    %c24_267 = arith.constant 24 : index
    %c0_268 = arith.constant 0 : index
    %557 = vector.load %arg5[%c24_267, %c0_268] : memref<32x32xf32, #tpu.memory_space<vmem>>, vector<8x32xf32>
    %cst_269 = arith.constant dense<0.000000e+00> : vector<8x32xf32>
    %558 = tpu.matmul %556, %557, %cst_269 {dimension_numbers = #tpu.dot_dimension_numbers<[1], [0], [0], [1], [0, 0, 1, 1], [], []>} : vector<8x8xf32>, vector<8x32xf32>, vector<8x32xf32> -> vector<8x32xf32>
    %559 = arith.addf %539, %558 : vector<8x32xf32>
    %cst_270 = arith.constant 0.000000e+00 : f32
    %560 = vector.broadcast %cst_270 : f32 to vector<8x32xf32>
    %561 = vector.extract_strided_slice %476 {offsets = [8, 0], sizes = [8, 8], strides = [1, 1]} : vector<16x32xf32> to vector<8x8xf32>
    %562 = vector.extract_strided_slice %477 {offsets = [8, 0], sizes = [8, 8], strides = [1, 1]} : vector<16x32xf32> to vector<8x8xf32>
    %cst_271 = arith.constant dense<0.000000e+00> : vector<8x8xf32>
    %563 = tpu.matmul %561, %562, %cst_271 {dimension_numbers = #tpu.dot_dimension_numbers<[1], [1], [0], [0], [0, 0, 1, 0], [], []>} : vector<8x8xf32>, vector<8x8xf32>, vector<8x8xf32> -> vector<8x8xf32>
    %cst_272 = arith.constant dense<0xFF800000> : vector<8xf32>
    %564 = vector.multi_reduction <maximumf>, %563, %cst_272 [1] : vector<8x8xf32> to vector<8xf32>
    %565 = vector.shape_cast %564 : vector<8xf32> to vector<8x1xf32>
    %566 = vector.broadcast %565 : vector<8x1xf32> to vector<8x8xf32>
    %567 = arith.subf %563, %566 : vector<8x8xf32>
    %568 = math.exp %567 : vector<8x8xf32>
    %cst_273 = arith.constant dense<0.000000e+00> : vector<8xf32>
    %569 = vector.multi_reduction <add>, %568, %cst_273 [1] : vector<8x8xf32> to vector<8xf32>
    %570 = vector.shape_cast %569 : vector<8xf32> to vector<8x1xf32>
    %571 = vector.broadcast %570 : vector<8x1xf32> to vector<8x8xf32>
    %572 = arith.divf %568, %571 : vector<8x8xf32>
    %c1_274 = arith.constant 1 : index
    %c0_275 = arith.constant 0 : index
    %c64_276 = arith.constant 64 : index
    %573 = vector.load %arg24[%c1_274, %c0_275, %c64_276] : memref<2x8x128xf32, #tpu.memory_space<vmem>>, vector<1x8x8xf32>
    %574 = vector.shape_cast %573 : vector<1x8x8xf32> to vector<8x8xf32>
    %575 = vector.shape_cast %572 : vector<8x8xf32> to vector<1x8x8xf32>
    tpu.vector_store %arg24[%c1_274, %c0_275, %c64_276], %575 {strides = array<i32>} : memref<2x8x128xf32, #tpu.memory_space<vmem>>, vector<1x8x8xf32>,
    %576 = vector.extract_strided_slice %478 {offsets = [8, 0], sizes = [8, 8], strides = [1, 1]} : vector<16x32xf32> to vector<8x8xf32>
    %cst_277 = arith.constant dense<0.000000e+00> : vector<8x8xf32>
    %577 = tpu.matmul %572, %576, %cst_277 {dimension_numbers = #tpu.dot_dimension_numbers<[1], [0], [0], [1], [0, 0, 1, 1], [], []>} : vector<8x8xf32>, vector<8x8xf32>, vector<8x8xf32> -> vector<8x8xf32>
    %c0_278 = arith.constant 0 : index
    %c0_279 = arith.constant 0 : index
    %578 = vector.load %arg5[%c0_278, %c0_279] : memref<32x32xf32, #tpu.memory_space<vmem>>, vector<8x32xf32>
    %cst_280 = arith.constant dense<0.000000e+00> : vector<8x32xf32>
    %579 = tpu.matmul %577, %578, %cst_280 {dimension_numbers = #tpu.dot_dimension_numbers<[1], [0], [0], [1], [0, 0, 1, 1], [], []>} : vector<8x8xf32>, vector<8x32xf32>, vector<8x32xf32> -> vector<8x32xf32>
    %580 = arith.addf %560, %579 : vector<8x32xf32>
    %581 = vector.extract_strided_slice %476 {offsets = [8, 8], sizes = [8, 8], strides = [1, 1]} : vector<16x32xf32> to vector<8x8xf32>
    %582 = vector.extract_strided_slice %477 {offsets = [8, 8], sizes = [8, 8], strides = [1, 1]} : vector<16x32xf32> to vector<8x8xf32>
    %cst_281 = arith.constant dense<0.000000e+00> : vector<8x8xf32>
    %583 = tpu.matmul %581, %582, %cst_281 {dimension_numbers = #tpu.dot_dimension_numbers<[1], [1], [0], [0], [0, 0, 1, 0], [], []>} : vector<8x8xf32>, vector<8x8xf32>, vector<8x8xf32> -> vector<8x8xf32>
    %cst_282 = arith.constant dense<0xFF800000> : vector<8xf32>
    %584 = vector.multi_reduction <maximumf>, %583, %cst_282 [1] : vector<8x8xf32> to vector<8xf32>
    %585 = vector.shape_cast %584 : vector<8xf32> to vector<8x1xf32>
    %586 = vector.broadcast %585 : vector<8x1xf32> to vector<8x8xf32>
    %587 = arith.subf %583, %586 : vector<8x8xf32>
    %588 = math.exp %587 : vector<8x8xf32>
    %cst_283 = arith.constant dense<0.000000e+00> : vector<8xf32>
    %589 = vector.multi_reduction <add>, %588, %cst_283 [1] : vector<8x8xf32> to vector<8xf32>
    %590 = vector.shape_cast %589 : vector<8xf32> to vector<8x1xf32>
    %591 = vector.broadcast %590 : vector<8x1xf32> to vector<8x8xf32>
    %592 = arith.divf %588, %591 : vector<8x8xf32>
    %c1_284 = arith.constant 1 : index
    %c0_285 = arith.constant 0 : index
    %c72_286 = arith.constant 72 : index
    %593 = vector.load %arg24[%c1_284, %c0_285, %c72_286] : memref<2x8x128xf32, #tpu.memory_space<vmem>>, vector<1x8x8xf32>
    %594 = vector.shape_cast %593 : vector<1x8x8xf32> to vector<8x8xf32>
    %595 = vector.shape_cast %592 : vector<8x8xf32> to vector<1x8x8xf32>
    tpu.vector_store %arg24[%c1_284, %c0_285, %c72_286], %595 {strides = array<i32>} : memref<2x8x128xf32, #tpu.memory_space<vmem>>, vector<1x8x8xf32>,
    %596 = vector.extract_strided_slice %478 {offsets = [8, 8], sizes = [8, 8], strides = [1, 1]} : vector<16x32xf32> to vector<8x8xf32>
    %cst_287 = arith.constant dense<0.000000e+00> : vector<8x8xf32>
    %597 = tpu.matmul %592, %596, %cst_287 {dimension_numbers = #tpu.dot_dimension_numbers<[1], [0], [0], [1], [0, 0, 1, 1], [], []>} : vector<8x8xf32>, vector<8x8xf32>, vector<8x8xf32> -> vector<8x8xf32>
    %c8_288 = arith.constant 8 : index
    %c0_289 = arith.constant 0 : index
    %598 = vector.load %arg5[%c8_288, %c0_289] : memref<32x32xf32, #tpu.memory_space<vmem>>, vector<8x32xf32>
    %cst_290 = arith.constant dense<0.000000e+00> : vector<8x32xf32>
    %599 = tpu.matmul %597, %598, %cst_290 {dimension_numbers = #tpu.dot_dimension_numbers<[1], [0], [0], [1], [0, 0, 1, 1], [], []>} : vector<8x8xf32>, vector<8x32xf32>, vector<8x32xf32> -> vector<8x32xf32>
    %600 = arith.addf %580, %599 : vector<8x32xf32>
    %601 = vector.extract_strided_slice %476 {offsets = [8, 16], sizes = [8, 8], strides = [1, 1]} : vector<16x32xf32> to vector<8x8xf32>
    %602 = vector.extract_strided_slice %477 {offsets = [8, 16], sizes = [8, 8], strides = [1, 1]} : vector<16x32xf32> to vector<8x8xf32>
    %cst_291 = arith.constant dense<0.000000e+00> : vector<8x8xf32>
    %603 = tpu.matmul %601, %602, %cst_291 {dimension_numbers = #tpu.dot_dimension_numbers<[1], [1], [0], [0], [0, 0, 1, 0], [], []>} : vector<8x8xf32>, vector<8x8xf32>, vector<8x8xf32> -> vector<8x8xf32>
    %cst_292 = arith.constant dense<0xFF800000> : vector<8xf32>
    %604 = vector.multi_reduction <maximumf>, %603, %cst_292 [1] : vector<8x8xf32> to vector<8xf32>
    %605 = vector.shape_cast %604 : vector<8xf32> to vector<8x1xf32>
    %606 = vector.broadcast %605 : vector<8x1xf32> to vector<8x8xf32>
    %607 = arith.subf %603, %606 : vector<8x8xf32>
    %608 = math.exp %607 : vector<8x8xf32>
    %cst_293 = arith.constant dense<0.000000e+00> : vector<8xf32>
    %609 = vector.multi_reduction <add>, %608, %cst_293 [1] : vector<8x8xf32> to vector<8xf32>
    %610 = vector.shape_cast %609 : vector<8xf32> to vector<8x1xf32>
    %611 = vector.broadcast %610 : vector<8x1xf32> to vector<8x8xf32>
    %612 = arith.divf %608, %611 : vector<8x8xf32>
    %c1_294 = arith.constant 1 : index
    %c0_295 = arith.constant 0 : index
    %c80_296 = arith.constant 80 : index
    %613 = vector.load %arg24[%c1_294, %c0_295, %c80_296] : memref<2x8x128xf32, #tpu.memory_space<vmem>>, vector<1x8x8xf32>
    %614 = vector.shape_cast %613 : vector<1x8x8xf32> to vector<8x8xf32>
    %615 = vector.shape_cast %612 : vector<8x8xf32> to vector<1x8x8xf32>
    tpu.vector_store %arg24[%c1_294, %c0_295, %c80_296], %615 {strides = array<i32>} : memref<2x8x128xf32, #tpu.memory_space<vmem>>, vector<1x8x8xf32>,
    %616 = vector.extract_strided_slice %478 {offsets = [8, 16], sizes = [8, 8], strides = [1, 1]} : vector<16x32xf32> to vector<8x8xf32>
    %cst_297 = arith.constant dense<0.000000e+00> : vector<8x8xf32>
    %617 = tpu.matmul %612, %616, %cst_297 {dimension_numbers = #tpu.dot_dimension_numbers<[1], [0], [0], [1], [0, 0, 1, 1], [], []>} : vector<8x8xf32>, vector<8x8xf32>, vector<8x8xf32> -> vector<8x8xf32>
    %c16_298 = arith.constant 16 : index
    %c0_299 = arith.constant 0 : index
    %618 = vector.load %arg5[%c16_298, %c0_299] : memref<32x32xf32, #tpu.memory_space<vmem>>, vector<8x32xf32>
    %cst_300 = arith.constant dense<0.000000e+00> : vector<8x32xf32>
    %619 = tpu.matmul %617, %618, %cst_300 {dimension_numbers = #tpu.dot_dimension_numbers<[1], [0], [0], [1], [0, 0, 1, 1], [], []>} : vector<8x8xf32>, vector<8x32xf32>, vector<8x32xf32> -> vector<8x32xf32>
    %620 = arith.addf %600, %619 : vector<8x32xf32>
    %621 = vector.extract_strided_slice %476 {offsets = [8, 24], sizes = [8, 8], strides = [1, 1]} : vector<16x32xf32> to vector<8x8xf32>
    %622 = vector.extract_strided_slice %477 {offsets = [8, 24], sizes = [8, 8], strides = [1, 1]} : vector<16x32xf32> to vector<8x8xf32>
    %cst_301 = arith.constant dense<0.000000e+00> : vector<8x8xf32>
    %623 = tpu.matmul %621, %622, %cst_301 {dimension_numbers = #tpu.dot_dimension_numbers<[1], [1], [0], [0], [0, 0, 1, 0], [], []>} : vector<8x8xf32>, vector<8x8xf32>, vector<8x8xf32> -> vector<8x8xf32>
    %cst_302 = arith.constant dense<0xFF800000> : vector<8xf32>
    %624 = vector.multi_reduction <maximumf>, %623, %cst_302 [1] : vector<8x8xf32> to vector<8xf32>
    %625 = vector.shape_cast %624 : vector<8xf32> to vector<8x1xf32>
    %626 = vector.broadcast %625 : vector<8x1xf32> to vector<8x8xf32>
    %627 = arith.subf %623, %626 : vector<8x8xf32>
    %628 = math.exp %627 : vector<8x8xf32>
    %cst_303 = arith.constant dense<0.000000e+00> : vector<8xf32>
    %629 = vector.multi_reduction <add>, %628, %cst_303 [1] : vector<8x8xf32> to vector<8xf32>
    %630 = vector.shape_cast %629 : vector<8xf32> to vector<8x1xf32>
    %631 = vector.broadcast %630 : vector<8x1xf32> to vector<8x8xf32>
    %632 = arith.divf %628, %631 : vector<8x8xf32>
    %c1_304 = arith.constant 1 : index
    %c0_305 = arith.constant 0 : index
    %c88_306 = arith.constant 88 : index
    %633 = vector.load %arg24[%c1_304, %c0_305, %c88_306] : memref<2x8x128xf32, #tpu.memory_space<vmem>>, vector<1x8x8xf32>
    %634 = vector.shape_cast %633 : vector<1x8x8xf32> to vector<8x8xf32>
    %635 = vector.shape_cast %632 : vector<8x8xf32> to vector<1x8x8xf32>
    tpu.vector_store %arg24[%c1_304, %c0_305, %c88_306], %635 {strides = array<i32>} : memref<2x8x128xf32, #tpu.memory_space<vmem>>, vector<1x8x8xf32>,
    %636 = vector.extract_strided_slice %478 {offsets = [8, 24], sizes = [8, 8], strides = [1, 1]} : vector<16x32xf32> to vector<8x8xf32>
    %cst_307 = arith.constant dense<0.000000e+00> : vector<8x8xf32>
    %637 = tpu.matmul %632, %636, %cst_307 {dimension_numbers = #tpu.dot_dimension_numbers<[1], [0], [0], [1], [0, 0, 1, 1], [], []>} : vector<8x8xf32>, vector<8x8xf32>, vector<8x8xf32> -> vector<8x8xf32>
    %c24_308 = arith.constant 24 : index
    %c0_309 = arith.constant 0 : index
    %638 = vector.load %arg5[%c24_308, %c0_309] : memref<32x32xf32, #tpu.memory_space<vmem>>, vector<8x32xf32>
    %cst_310 = arith.constant dense<0.000000e+00> : vector<8x32xf32>
    %639 = tpu.matmul %637, %638, %cst_310 {dimension_numbers = #tpu.dot_dimension_numbers<[1], [0], [0], [1], [0, 0, 1, 1], [], []>} : vector<8x8xf32>, vector<8x32xf32>, vector<8x32xf32> -> vector<8x32xf32>
    %640 = arith.addf %620, %639 : vector<8x32xf32>
    %641 = tpu.concatenate %559, %640 in 0 : vector<8x32xf32>, vector<8x32xf32> -> vector<16x32xf32>
    %c0_311 = arith.constant 0 : index
    %c0_312 = arith.constant 0 : index
    %642 = vector.load %arg6[%c0_311, %c0_312] : memref<1x32xf32, #tpu.memory_space<vmem>>, vector<1x32xf32>
    %643 = vector.broadcast %642 : vector<1x32xf32> to vector<16x32xf32>
    %644 = arith.addf %641, %643 : vector<16x32xf32>
    %cst_313 = arith.constant 2.000000e+00 : f32
    %645 = vector.broadcast %cst_313 : f32 to vector<16x32xf32>
    %646 = arith.mulf %645, %644 : vector<16x32xf32>
    %cst_314 = arith.constant dense<0.000000e+00> : vector<16xf32>
    %647 = vector.multi_reduction <add>, %646, %cst_314 [1] : vector<16x32xf32> to vector<16xf32>
    %648 = vector.shape_cast %647 : vector<16xf32> to vector<16x1xf32>
    %cst_315 = arith.constant 3.200000e+01 : f32
    %649 = vector.broadcast %cst_315 : f32 to vector<16x1xf32>
    %650 = arith.divf %648, %649 : vector<16x1xf32>
    %651 = vector.broadcast %650 : vector<16x1xf32> to vector<16x32xf32>
    %652 = arith.subf %646, %651 : vector<16x32xf32>
    %653 = arith.mulf %652, %652 : vector<16x32xf32>
    %cst_316 = arith.constant dense<0.000000e+00> : vector<16xf32>
    %654 = vector.multi_reduction <add>, %653, %cst_316 [1] : vector<16x32xf32> to vector<16xf32>
    %655 = vector.shape_cast %654 : vector<16xf32> to vector<16x1xf32>
    %cst_317 = arith.constant 3.200000e+01 : f32
    %656 = vector.broadcast %cst_317 : f32 to vector<16x1xf32>
    %657 = arith.divf %655, %656 : vector<16x1xf32>
    %658 = vector.broadcast %650 : vector<16x1xf32> to vector<16x32xf32>
    %659 = arith.subf %646, %658 : vector<16x32xf32>
    %cst_318 = arith.constant 9.99999974E-6 : f32
    %660 = vector.broadcast %cst_318 : f32 to vector<16x1xf32>
    %661 = arith.addf %657, %660 : vector<16x1xf32>
    %662 = math.rsqrt %661 : vector<16x1xf32>
    %663 = vector.broadcast %662 : vector<16x1xf32> to vector<16x32xf32>
    %664 = arith.mulf %659, %663 : vector<16x32xf32>
    %c0_319 = arith.constant 0 : index
    %c0_320 = arith.constant 0 : index
    %665 = vector.load %arg19[%c0_319, %c0_320] : memref<1x32xf32, #tpu.memory_space<vmem>>, vector<1x32xf32>
    %666 = vector.broadcast %665 : vector<1x32xf32> to vector<16x32xf32>
    %667 = arith.mulf %664, %666 : vector<16x32xf32>
    %c0_321 = arith.constant 0 : index
    %c0_322 = arith.constant 0 : index
    %668 = vector.load %arg20[%c0_321, %c0_322] : memref<1x32xf32, #tpu.memory_space<vmem>>, vector<1x32xf32>
    %669 = vector.broadcast %668 : vector<1x32xf32> to vector<16x32xf32>
    %670 = arith.addf %667, %669 : vector<16x32xf32>
    %c0_323 = arith.constant 0 : index
    %c0_324 = arith.constant 0 : index
    %671 = vector.load %arg9[%c0_323, %c0_324] : memref<32x64xf32, #tpu.memory_space<vmem>>, vector<32x64xf32>
    %cst_325 = arith.constant dense<0.000000e+00> : vector<16x64xf32>
    %672 = tpu.matmul %670, %671, %cst_325 {dimension_numbers = #tpu.dot_dimension_numbers<[1], [0], [0], [1], [0, 0, 1, 1], [], []>} : vector<16x32xf32>, vector<32x64xf32>, vector<16x64xf32> -> vector<16x64xf32>
    %c0_326 = arith.constant 0 : index
    %c0_327 = arith.constant 0 : index
    %673 = vector.load %arg10[%c0_326, %c0_327] : memref<1x64xf32, #tpu.memory_space<vmem>>, vector<1x64xf32>
    %674 = vector.broadcast %673 : vector<1x64xf32> to vector<16x64xf32>
    %675 = arith.addf %672, %674 : vector<16x64xf32>
    %676 = vector.extract_strided_slice %675 {offsets = [0, 0], sizes = [16, 32], strides = [1, 1]} : vector<16x64xf32> to vector<16x32xf32>
    %677 = vector.extract_strided_slice %675 {offsets = [0, 32], sizes = [16, 32], strides = [1, 1]} : vector<16x64xf32> to vector<16x32xf32>
    %cst_328 = arith.constant 0.000000e+00 : f32
    %678 = vector.broadcast %cst_328 : f32 to vector<8x32xf32>
    %679 = vector.extract_strided_slice %6 {offsets = [0, 0], sizes = [8, 8], strides = [1, 1]} : vector<16x32xf32> to vector<8x8xf32>
    %680 = vector.extract_strided_slice %676 {offsets = [0, 0], sizes = [8, 8], strides = [1, 1]} : vector<16x32xf32> to vector<8x8xf32>
    %cst_329 = arith.constant dense<0.000000e+00> : vector<8x8xf32>
    %681 = tpu.matmul %679, %680, %cst_329 {dimension_numbers = #tpu.dot_dimension_numbers<[1], [1], [0], [0], [0, 0, 1, 0], [], []>} : vector<8x8xf32>, vector<8x8xf32>, vector<8x8xf32> -> vector<8x8xf32>
    %cst_330 = arith.constant dense<0xFF800000> : vector<8xf32>
    %682 = vector.multi_reduction <maximumf>, %681, %cst_330 [1] : vector<8x8xf32> to vector<8xf32>
    %683 = vector.shape_cast %682 : vector<8xf32> to vector<8x1xf32>
    %684 = vector.broadcast %683 : vector<8x1xf32> to vector<8x8xf32>
    %685 = arith.subf %681, %684 : vector<8x8xf32>
    %686 = math.exp %685 : vector<8x8xf32>
    %cst_331 = arith.constant dense<0.000000e+00> : vector<8xf32>
    %687 = vector.multi_reduction <add>, %686, %cst_331 [1] : vector<8x8xf32> to vector<8xf32>
    %688 = vector.shape_cast %687 : vector<8xf32> to vector<8x1xf32>
    %689 = vector.broadcast %688 : vector<8x1xf32> to vector<8x8xf32>
    %690 = arith.divf %686, %689 : vector<8x8xf32>
    %c0_332 = arith.constant 0 : index
    %c0_333 = arith.constant 0 : index
    %c96 = arith.constant 96 : index
    %691 = vector.load %arg24[%c0_332, %c0_333, %c96] : memref<2x8x128xf32, #tpu.memory_space<vmem>>, vector<1x8x8xf32>
    %692 = vector.shape_cast %691 : vector<1x8x8xf32> to vector<8x8xf32>
    %693 = vector.shape_cast %690 : vector<8x8xf32> to vector<1x8x8xf32>
    tpu.vector_store %arg24[%c0_332, %c0_333, %c96], %693 {strides = array<i32>} : memref<2x8x128xf32, #tpu.memory_space<vmem>>, vector<1x8x8xf32>,
    %694 = vector.extract_strided_slice %677 {offsets = [0, 0], sizes = [8, 8], strides = [1, 1]} : vector<16x32xf32> to vector<8x8xf32>
    %cst_334 = arith.constant dense<0.000000e+00> : vector<8x8xf32>
    %695 = tpu.matmul %690, %694, %cst_334 {dimension_numbers = #tpu.dot_dimension_numbers<[1], [0], [0], [1], [0, 0, 1, 1], [], []>} : vector<8x8xf32>, vector<8x8xf32>, vector<8x8xf32> -> vector<8x8xf32>
    %c0_335 = arith.constant 0 : index
    %c0_336 = arith.constant 0 : index
    %696 = vector.load %arg11[%c0_335, %c0_336] : memref<32x32xf32, #tpu.memory_space<vmem>>, vector<8x32xf32>
    %cst_337 = arith.constant dense<0.000000e+00> : vector<8x32xf32>
    %697 = tpu.matmul %695, %696, %cst_337 {dimension_numbers = #tpu.dot_dimension_numbers<[1], [0], [0], [1], [0, 0, 1, 1], [], []>} : vector<8x8xf32>, vector<8x32xf32>, vector<8x32xf32> -> vector<8x32xf32>
    %698 = arith.addf %678, %697 : vector<8x32xf32>
    %699 = vector.extract_strided_slice %6 {offsets = [0, 8], sizes = [8, 8], strides = [1, 1]} : vector<16x32xf32> to vector<8x8xf32>
    %700 = vector.extract_strided_slice %676 {offsets = [0, 8], sizes = [8, 8], strides = [1, 1]} : vector<16x32xf32> to vector<8x8xf32>
    %cst_338 = arith.constant dense<0.000000e+00> : vector<8x8xf32>
    %701 = tpu.matmul %699, %700, %cst_338 {dimension_numbers = #tpu.dot_dimension_numbers<[1], [1], [0], [0], [0, 0, 1, 0], [], []>} : vector<8x8xf32>, vector<8x8xf32>, vector<8x8xf32> -> vector<8x8xf32>
    %cst_339 = arith.constant dense<0xFF800000> : vector<8xf32>
    %702 = vector.multi_reduction <maximumf>, %701, %cst_339 [1] : vector<8x8xf32> to vector<8xf32>
    %703 = vector.shape_cast %702 : vector<8xf32> to vector<8x1xf32>
    %704 = vector.broadcast %703 : vector<8x1xf32> to vector<8x8xf32>
    %705 = arith.subf %701, %704 : vector<8x8xf32>
    %706 = math.exp %705 : vector<8x8xf32>
    %cst_340 = arith.constant dense<0.000000e+00> : vector<8xf32>
    %707 = vector.multi_reduction <add>, %706, %cst_340 [1] : vector<8x8xf32> to vector<8xf32>
    %708 = vector.shape_cast %707 : vector<8xf32> to vector<8x1xf32>
    %709 = vector.broadcast %708 : vector<8x1xf32> to vector<8x8xf32>
    %710 = arith.divf %706, %709 : vector<8x8xf32>
    %c0_341 = arith.constant 0 : index
    %c0_342 = arith.constant 0 : index
    %c104 = arith.constant 104 : index
    %711 = vector.load %arg24[%c0_341, %c0_342, %c104] : memref<2x8x128xf32, #tpu.memory_space<vmem>>, vector<1x8x8xf32>
    %712 = vector.shape_cast %711 : vector<1x8x8xf32> to vector<8x8xf32>
    %713 = vector.shape_cast %710 : vector<8x8xf32> to vector<1x8x8xf32>
    tpu.vector_store %arg24[%c0_341, %c0_342, %c104], %713 {strides = array<i32>} : memref<2x8x128xf32, #tpu.memory_space<vmem>>, vector<1x8x8xf32>,
    %714 = vector.extract_strided_slice %677 {offsets = [0, 8], sizes = [8, 8], strides = [1, 1]} : vector<16x32xf32> to vector<8x8xf32>
    %cst_343 = arith.constant dense<0.000000e+00> : vector<8x8xf32>
    %715 = tpu.matmul %710, %714, %cst_343 {dimension_numbers = #tpu.dot_dimension_numbers<[1], [0], [0], [1], [0, 0, 1, 1], [], []>} : vector<8x8xf32>, vector<8x8xf32>, vector<8x8xf32> -> vector<8x8xf32>
    %c8_344 = arith.constant 8 : index
    %c0_345 = arith.constant 0 : index
    %716 = vector.load %arg11[%c8_344, %c0_345] : memref<32x32xf32, #tpu.memory_space<vmem>>, vector<8x32xf32>
    %cst_346 = arith.constant dense<0.000000e+00> : vector<8x32xf32>
    %717 = tpu.matmul %715, %716, %cst_346 {dimension_numbers = #tpu.dot_dimension_numbers<[1], [0], [0], [1], [0, 0, 1, 1], [], []>} : vector<8x8xf32>, vector<8x32xf32>, vector<8x32xf32> -> vector<8x32xf32>
    %718 = arith.addf %698, %717 : vector<8x32xf32>
    %719 = vector.extract_strided_slice %6 {offsets = [0, 16], sizes = [8, 8], strides = [1, 1]} : vector<16x32xf32> to vector<8x8xf32>
    %720 = vector.extract_strided_slice %676 {offsets = [0, 16], sizes = [8, 8], strides = [1, 1]} : vector<16x32xf32> to vector<8x8xf32>
    %cst_347 = arith.constant dense<0.000000e+00> : vector<8x8xf32>
    %721 = tpu.matmul %719, %720, %cst_347 {dimension_numbers = #tpu.dot_dimension_numbers<[1], [1], [0], [0], [0, 0, 1, 0], [], []>} : vector<8x8xf32>, vector<8x8xf32>, vector<8x8xf32> -> vector<8x8xf32>
    %cst_348 = arith.constant dense<0xFF800000> : vector<8xf32>
    %722 = vector.multi_reduction <maximumf>, %721, %cst_348 [1] : vector<8x8xf32> to vector<8xf32>
    %723 = vector.shape_cast %722 : vector<8xf32> to vector<8x1xf32>
    %724 = vector.broadcast %723 : vector<8x1xf32> to vector<8x8xf32>
    %725 = arith.subf %721, %724 : vector<8x8xf32>
    %726 = math.exp %725 : vector<8x8xf32>
    %cst_349 = arith.constant dense<0.000000e+00> : vector<8xf32>
    %727 = vector.multi_reduction <add>, %726, %cst_349 [1] : vector<8x8xf32> to vector<8xf32>
    %728 = vector.shape_cast %727 : vector<8xf32> to vector<8x1xf32>
    %729 = vector.broadcast %728 : vector<8x1xf32> to vector<8x8xf32>
    %730 = arith.divf %726, %729 : vector<8x8xf32>
    %c0_350 = arith.constant 0 : index
    %c0_351 = arith.constant 0 : index
    %c112 = arith.constant 112 : index
    %731 = vector.load %arg24[%c0_350, %c0_351, %c112] : memref<2x8x128xf32, #tpu.memory_space<vmem>>, vector<1x8x8xf32>
    %732 = vector.shape_cast %731 : vector<1x8x8xf32> to vector<8x8xf32>
    %733 = vector.shape_cast %730 : vector<8x8xf32> to vector<1x8x8xf32>
    tpu.vector_store %arg24[%c0_350, %c0_351, %c112], %733 {strides = array<i32>} : memref<2x8x128xf32, #tpu.memory_space<vmem>>, vector<1x8x8xf32>,
    %734 = vector.extract_strided_slice %677 {offsets = [0, 16], sizes = [8, 8], strides = [1, 1]} : vector<16x32xf32> to vector<8x8xf32>
    %cst_352 = arith.constant dense<0.000000e+00> : vector<8x8xf32>
    %735 = tpu.matmul %730, %734, %cst_352 {dimension_numbers = #tpu.dot_dimension_numbers<[1], [0], [0], [1], [0, 0, 1, 1], [], []>} : vector<8x8xf32>, vector<8x8xf32>, vector<8x8xf32> -> vector<8x8xf32>
    %c16_353 = arith.constant 16 : index
    %c0_354 = arith.constant 0 : index
    %736 = vector.load %arg11[%c16_353, %c0_354] : memref<32x32xf32, #tpu.memory_space<vmem>>, vector<8x32xf32>
    %cst_355 = arith.constant dense<0.000000e+00> : vector<8x32xf32>
    %737 = tpu.matmul %735, %736, %cst_355 {dimension_numbers = #tpu.dot_dimension_numbers<[1], [0], [0], [1], [0, 0, 1, 1], [], []>} : vector<8x8xf32>, vector<8x32xf32>, vector<8x32xf32> -> vector<8x32xf32>
    %738 = arith.addf %718, %737 : vector<8x32xf32>
    %739 = vector.extract_strided_slice %6 {offsets = [0, 24], sizes = [8, 8], strides = [1, 1]} : vector<16x32xf32> to vector<8x8xf32>
    %740 = vector.extract_strided_slice %676 {offsets = [0, 24], sizes = [8, 8], strides = [1, 1]} : vector<16x32xf32> to vector<8x8xf32>
    %cst_356 = arith.constant dense<0.000000e+00> : vector<8x8xf32>
    %741 = tpu.matmul %739, %740, %cst_356 {dimension_numbers = #tpu.dot_dimension_numbers<[1], [1], [0], [0], [0, 0, 1, 0], [], []>} : vector<8x8xf32>, vector<8x8xf32>, vector<8x8xf32> -> vector<8x8xf32>
    %cst_357 = arith.constant dense<0xFF800000> : vector<8xf32>
    %742 = vector.multi_reduction <maximumf>, %741, %cst_357 [1] : vector<8x8xf32> to vector<8xf32>
    %743 = vector.shape_cast %742 : vector<8xf32> to vector<8x1xf32>
    %744 = vector.broadcast %743 : vector<8x1xf32> to vector<8x8xf32>
    %745 = arith.subf %741, %744 : vector<8x8xf32>
    %746 = math.exp %745 : vector<8x8xf32>
    %cst_358 = arith.constant dense<0.000000e+00> : vector<8xf32>
    %747 = vector.multi_reduction <add>, %746, %cst_358 [1] : vector<8x8xf32> to vector<8xf32>
    %748 = vector.shape_cast %747 : vector<8xf32> to vector<8x1xf32>
    %749 = vector.broadcast %748 : vector<8x1xf32> to vector<8x8xf32>
    %750 = arith.divf %746, %749 : vector<8x8xf32>
    %c0_359 = arith.constant 0 : index
    %c0_360 = arith.constant 0 : index
    %c120 = arith.constant 120 : index
    %751 = vector.load %arg24[%c0_359, %c0_360, %c120] : memref<2x8x128xf32, #tpu.memory_space<vmem>>, vector<1x8x8xf32>
    %752 = vector.shape_cast %751 : vector<1x8x8xf32> to vector<8x8xf32>
    %753 = vector.shape_cast %750 : vector<8x8xf32> to vector<1x8x8xf32>
    tpu.vector_store %arg24[%c0_359, %c0_360, %c120], %753 {strides = array<i32>} : memref<2x8x128xf32, #tpu.memory_space<vmem>>, vector<1x8x8xf32>,
    %754 = vector.extract_strided_slice %677 {offsets = [0, 24], sizes = [8, 8], strides = [1, 1]} : vector<16x32xf32> to vector<8x8xf32>
    %cst_361 = arith.constant dense<0.000000e+00> : vector<8x8xf32>
    %755 = tpu.matmul %750, %754, %cst_361 {dimension_numbers = #tpu.dot_dimension_numbers<[1], [0], [0], [1], [0, 0, 1, 1], [], []>} : vector<8x8xf32>, vector<8x8xf32>, vector<8x8xf32> -> vector<8x8xf32>
    %c24_362 = arith.constant 24 : index
    %c0_363 = arith.constant 0 : index
    %756 = vector.load %arg11[%c24_362, %c0_363] : memref<32x32xf32, #tpu.memory_space<vmem>>, vector<8x32xf32>
    %cst_364 = arith.constant dense<0.000000e+00> : vector<8x32xf32>
    %757 = tpu.matmul %755, %756, %cst_364 {dimension_numbers = #tpu.dot_dimension_numbers<[1], [0], [0], [1], [0, 0, 1, 1], [], []>} : vector<8x8xf32>, vector<8x32xf32>, vector<8x32xf32> -> vector<8x32xf32>
    %758 = arith.addf %738, %757 : vector<8x32xf32>
    %cst_365 = arith.constant 0.000000e+00 : f32
    %759 = vector.broadcast %cst_365 : f32 to vector<8x32xf32>
    %760 = vector.extract_strided_slice %6 {offsets = [8, 0], sizes = [8, 8], strides = [1, 1]} : vector<16x32xf32> to vector<8x8xf32>
    %761 = vector.extract_strided_slice %676 {offsets = [8, 0], sizes = [8, 8], strides = [1, 1]} : vector<16x32xf32> to vector<8x8xf32>
    %cst_366 = arith.constant dense<0.000000e+00> : vector<8x8xf32>
    %762 = tpu.matmul %760, %761, %cst_366 {dimension_numbers = #tpu.dot_dimension_numbers<[1], [1], [0], [0], [0, 0, 1, 0], [], []>} : vector<8x8xf32>, vector<8x8xf32>, vector<8x8xf32> -> vector<8x8xf32>
    %cst_367 = arith.constant dense<0xFF800000> : vector<8xf32>
    %763 = vector.multi_reduction <maximumf>, %762, %cst_367 [1] : vector<8x8xf32> to vector<8xf32>
    %764 = vector.shape_cast %763 : vector<8xf32> to vector<8x1xf32>
    %765 = vector.broadcast %764 : vector<8x1xf32> to vector<8x8xf32>
    %766 = arith.subf %762, %765 : vector<8x8xf32>
    %767 = math.exp %766 : vector<8x8xf32>
    %cst_368 = arith.constant dense<0.000000e+00> : vector<8xf32>
    %768 = vector.multi_reduction <add>, %767, %cst_368 [1] : vector<8x8xf32> to vector<8xf32>
    %769 = vector.shape_cast %768 : vector<8xf32> to vector<8x1xf32>
    %770 = vector.broadcast %769 : vector<8x1xf32> to vector<8x8xf32>
    %771 = arith.divf %767, %770 : vector<8x8xf32>
    %c1_369 = arith.constant 1 : index
    %c0_370 = arith.constant 0 : index
    %c96_371 = arith.constant 96 : index
    %772 = vector.load %arg24[%c1_369, %c0_370, %c96_371] : memref<2x8x128xf32, #tpu.memory_space<vmem>>, vector<1x8x8xf32>
    %773 = vector.shape_cast %772 : vector<1x8x8xf32> to vector<8x8xf32>
    %774 = vector.shape_cast %771 : vector<8x8xf32> to vector<1x8x8xf32>
    tpu.vector_store %arg24[%c1_369, %c0_370, %c96_371], %774 {strides = array<i32>} : memref<2x8x128xf32, #tpu.memory_space<vmem>>, vector<1x8x8xf32>,
    %775 = vector.extract_strided_slice %677 {offsets = [8, 0], sizes = [8, 8], strides = [1, 1]} : vector<16x32xf32> to vector<8x8xf32>
    %cst_372 = arith.constant dense<0.000000e+00> : vector<8x8xf32>
    %776 = tpu.matmul %771, %775, %cst_372 {dimension_numbers = #tpu.dot_dimension_numbers<[1], [0], [0], [1], [0, 0, 1, 1], [], []>} : vector<8x8xf32>, vector<8x8xf32>, vector<8x8xf32> -> vector<8x8xf32>
    %c0_373 = arith.constant 0 : index
    %c0_374 = arith.constant 0 : index
    %777 = vector.load %arg11[%c0_373, %c0_374] : memref<32x32xf32, #tpu.memory_space<vmem>>, vector<8x32xf32>
    %cst_375 = arith.constant dense<0.000000e+00> : vector<8x32xf32>
    %778 = tpu.matmul %776, %777, %cst_375 {dimension_numbers = #tpu.dot_dimension_numbers<[1], [0], [0], [1], [0, 0, 1, 1], [], []>} : vector<8x8xf32>, vector<8x32xf32>, vector<8x32xf32> -> vector<8x32xf32>
    %779 = arith.addf %759, %778 : vector<8x32xf32>
    %780 = vector.extract_strided_slice %6 {offsets = [8, 8], sizes = [8, 8], strides = [1, 1]} : vector<16x32xf32> to vector<8x8xf32>
    %781 = vector.extract_strided_slice %676 {offsets = [8, 8], sizes = [8, 8], strides = [1, 1]} : vector<16x32xf32> to vector<8x8xf32>
    %cst_376 = arith.constant dense<0.000000e+00> : vector<8x8xf32>
    %782 = tpu.matmul %780, %781, %cst_376 {dimension_numbers = #tpu.dot_dimension_numbers<[1], [1], [0], [0], [0, 0, 1, 0], [], []>} : vector<8x8xf32>, vector<8x8xf32>, vector<8x8xf32> -> vector<8x8xf32>
    %cst_377 = arith.constant dense<0xFF800000> : vector<8xf32>
    %783 = vector.multi_reduction <maximumf>, %782, %cst_377 [1] : vector<8x8xf32> to vector<8xf32>
    %784 = vector.shape_cast %783 : vector<8xf32> to vector<8x1xf32>
    %785 = vector.broadcast %784 : vector<8x1xf32> to vector<8x8xf32>
    %786 = arith.subf %782, %785 : vector<8x8xf32>
    %787 = math.exp %786 : vector<8x8xf32>
    %cst_378 = arith.constant dense<0.000000e+00> : vector<8xf32>
    %788 = vector.multi_reduction <add>, %787, %cst_378 [1] : vector<8x8xf32> to vector<8xf32>
    %789 = vector.shape_cast %788 : vector<8xf32> to vector<8x1xf32>
    %790 = vector.broadcast %789 : vector<8x1xf32> to vector<8x8xf32>
    %791 = arith.divf %787, %790 : vector<8x8xf32>
    %c1_379 = arith.constant 1 : index
    %c0_380 = arith.constant 0 : index
    %c104_381 = arith.constant 104 : index
    %792 = vector.load %arg24[%c1_379, %c0_380, %c104_381] : memref<2x8x128xf32, #tpu.memory_space<vmem>>, vector<1x8x8xf32>
    %793 = vector.shape_cast %792 : vector<1x8x8xf32> to vector<8x8xf32>
    %794 = vector.shape_cast %791 : vector<8x8xf32> to vector<1x8x8xf32>
    tpu.vector_store %arg24[%c1_379, %c0_380, %c104_381], %794 {strides = array<i32>} : memref<2x8x128xf32, #tpu.memory_space<vmem>>, vector<1x8x8xf32>,
    %795 = vector.extract_strided_slice %677 {offsets = [8, 8], sizes = [8, 8], strides = [1, 1]} : vector<16x32xf32> to vector<8x8xf32>
    %cst_382 = arith.constant dense<0.000000e+00> : vector<8x8xf32>
    %796 = tpu.matmul %791, %795, %cst_382 {dimension_numbers = #tpu.dot_dimension_numbers<[1], [0], [0], [1], [0, 0, 1, 1], [], []>} : vector<8x8xf32>, vector<8x8xf32>, vector<8x8xf32> -> vector<8x8xf32>
    %c8_383 = arith.constant 8 : index
    %c0_384 = arith.constant 0 : index
    %797 = vector.load %arg11[%c8_383, %c0_384] : memref<32x32xf32, #tpu.memory_space<vmem>>, vector<8x32xf32>
    %cst_385 = arith.constant dense<0.000000e+00> : vector<8x32xf32>
    %798 = tpu.matmul %796, %797, %cst_385 {dimension_numbers = #tpu.dot_dimension_numbers<[1], [0], [0], [1], [0, 0, 1, 1], [], []>} : vector<8x8xf32>, vector<8x32xf32>, vector<8x32xf32> -> vector<8x32xf32>
    %799 = arith.addf %779, %798 : vector<8x32xf32>
    %800 = vector.extract_strided_slice %6 {offsets = [8, 16], sizes = [8, 8], strides = [1, 1]} : vector<16x32xf32> to vector<8x8xf32>
    %801 = vector.extract_strided_slice %676 {offsets = [8, 16], sizes = [8, 8], strides = [1, 1]} : vector<16x32xf32> to vector<8x8xf32>
    %cst_386 = arith.constant dense<0.000000e+00> : vector<8x8xf32>
    %802 = tpu.matmul %800, %801, %cst_386 {dimension_numbers = #tpu.dot_dimension_numbers<[1], [1], [0], [0], [0, 0, 1, 0], [], []>} : vector<8x8xf32>, vector<8x8xf32>, vector<8x8xf32> -> vector<8x8xf32>
    %cst_387 = arith.constant dense<0xFF800000> : vector<8xf32>
    %803 = vector.multi_reduction <maximumf>, %802, %cst_387 [1] : vector<8x8xf32> to vector<8xf32>
    %804 = vector.shape_cast %803 : vector<8xf32> to vector<8x1xf32>
    %805 = vector.broadcast %804 : vector<8x1xf32> to vector<8x8xf32>
    %806 = arith.subf %802, %805 : vector<8x8xf32>
    %807 = math.exp %806 : vector<8x8xf32>
    %cst_388 = arith.constant dense<0.000000e+00> : vector<8xf32>
    %808 = vector.multi_reduction <add>, %807, %cst_388 [1] : vector<8x8xf32> to vector<8xf32>
    %809 = vector.shape_cast %808 : vector<8xf32> to vector<8x1xf32>
    %810 = vector.broadcast %809 : vector<8x1xf32> to vector<8x8xf32>
    %811 = arith.divf %807, %810 : vector<8x8xf32>
    %c1_389 = arith.constant 1 : index
    %c0_390 = arith.constant 0 : index
    %c112_391 = arith.constant 112 : index
    %812 = vector.load %arg24[%c1_389, %c0_390, %c112_391] : memref<2x8x128xf32, #tpu.memory_space<vmem>>, vector<1x8x8xf32>
    %813 = vector.shape_cast %812 : vector<1x8x8xf32> to vector<8x8xf32>
    %814 = vector.shape_cast %811 : vector<8x8xf32> to vector<1x8x8xf32>
    tpu.vector_store %arg24[%c1_389, %c0_390, %c112_391], %814 {strides = array<i32>} : memref<2x8x128xf32, #tpu.memory_space<vmem>>, vector<1x8x8xf32>,
    %815 = vector.extract_strided_slice %677 {offsets = [8, 16], sizes = [8, 8], strides = [1, 1]} : vector<16x32xf32> to vector<8x8xf32>
    %cst_392 = arith.constant dense<0.000000e+00> : vector<8x8xf32>
    %816 = tpu.matmul %811, %815, %cst_392 {dimension_numbers = #tpu.dot_dimension_numbers<[1], [0], [0], [1], [0, 0, 1, 1], [], []>} : vector<8x8xf32>, vector<8x8xf32>, vector<8x8xf32> -> vector<8x8xf32>
    %c16_393 = arith.constant 16 : index
    %c0_394 = arith.constant 0 : index
    %817 = vector.load %arg11[%c16_393, %c0_394] : memref<32x32xf32, #tpu.memory_space<vmem>>, vector<8x32xf32>
    %cst_395 = arith.constant dense<0.000000e+00> : vector<8x32xf32>
    %818 = tpu.matmul %816, %817, %cst_395 {dimension_numbers = #tpu.dot_dimension_numbers<[1], [0], [0], [1], [0, 0, 1, 1], [], []>} : vector<8x8xf32>, vector<8x32xf32>, vector<8x32xf32> -> vector<8x32xf32>
    %819 = arith.addf %799, %818 : vector<8x32xf32>
    %820 = vector.extract_strided_slice %6 {offsets = [8, 24], sizes = [8, 8], strides = [1, 1]} : vector<16x32xf32> to vector<8x8xf32>
    %821 = vector.extract_strided_slice %676 {offsets = [8, 24], sizes = [8, 8], strides = [1, 1]} : vector<16x32xf32> to vector<8x8xf32>
    %cst_396 = arith.constant dense<0.000000e+00> : vector<8x8xf32>
    %822 = tpu.matmul %820, %821, %cst_396 {dimension_numbers = #tpu.dot_dimension_numbers<[1], [1], [0], [0], [0, 0, 1, 0], [], []>} : vector<8x8xf32>, vector<8x8xf32>, vector<8x8xf32> -> vector<8x8xf32>
    %cst_397 = arith.constant dense<0xFF800000> : vector<8xf32>
    %823 = vector.multi_reduction <maximumf>, %822, %cst_397 [1] : vector<8x8xf32> to vector<8xf32>
    %824 = vector.shape_cast %823 : vector<8xf32> to vector<8x1xf32>
    %825 = vector.broadcast %824 : vector<8x1xf32> to vector<8x8xf32>
    %826 = arith.subf %822, %825 : vector<8x8xf32>
    %827 = math.exp %826 : vector<8x8xf32>
    %cst_398 = arith.constant dense<0.000000e+00> : vector<8xf32>
    %828 = vector.multi_reduction <add>, %827, %cst_398 [1] : vector<8x8xf32> to vector<8xf32>
    %829 = vector.shape_cast %828 : vector<8xf32> to vector<8x1xf32>
    %830 = vector.broadcast %829 : vector<8x1xf32> to vector<8x8xf32>
    %831 = arith.divf %827, %830 : vector<8x8xf32>
    %c1_399 = arith.constant 1 : index
    %c0_400 = arith.constant 0 : index
    %c120_401 = arith.constant 120 : index
    %832 = vector.load %arg24[%c1_399, %c0_400, %c120_401] : memref<2x8x128xf32, #tpu.memory_space<vmem>>, vector<1x8x8xf32>
    %833 = vector.shape_cast %832 : vector<1x8x8xf32> to vector<8x8xf32>
    %834 = vector.shape_cast %831 : vector<8x8xf32> to vector<1x8x8xf32>
    tpu.vector_store %arg24[%c1_399, %c0_400, %c120_401], %834 {strides = array<i32>} : memref<2x8x128xf32, #tpu.memory_space<vmem>>, vector<1x8x8xf32>,
    %835 = vector.extract_strided_slice %677 {offsets = [8, 24], sizes = [8, 8], strides = [1, 1]} : vector<16x32xf32> to vector<8x8xf32>
    %cst_402 = arith.constant dense<0.000000e+00> : vector<8x8xf32>
    %836 = tpu.matmul %831, %835, %cst_402 {dimension_numbers = #tpu.dot_dimension_numbers<[1], [0], [0], [1], [0, 0, 1, 1], [], []>} : vector<8x8xf32>, vector<8x8xf32>, vector<8x8xf32> -> vector<8x8xf32>
    %c24_403 = arith.constant 24 : index
    %c0_404 = arith.constant 0 : index
    %837 = vector.load %arg11[%c24_403, %c0_404] : memref<32x32xf32, #tpu.memory_space<vmem>>, vector<8x32xf32>
    %cst_405 = arith.constant dense<0.000000e+00> : vector<8x32xf32>
    %838 = tpu.matmul %836, %837, %cst_405 {dimension_numbers = #tpu.dot_dimension_numbers<[1], [0], [0], [1], [0, 0, 1, 1], [], []>} : vector<8x8xf32>, vector<8x32xf32>, vector<8x32xf32> -> vector<8x32xf32>
    %839 = arith.addf %819, %838 : vector<8x32xf32>
    %840 = tpu.concatenate %758, %839 in 0 : vector<8x32xf32>, vector<8x32xf32> -> vector<16x32xf32>
    %c0_406 = arith.constant 0 : index
    %c0_407 = arith.constant 0 : index
    %841 = vector.load %arg12[%c0_406, %c0_407] : memref<1x32xf32, #tpu.memory_space<vmem>>, vector<1x32xf32>
    %842 = vector.broadcast %841 : vector<1x32xf32> to vector<16x32xf32>
    %843 = arith.addf %840, %842 : vector<16x32xf32>
    %cst_408 = arith.constant 2.000000e+00 : f32
    %844 = vector.broadcast %cst_408 : f32 to vector<16x32xf32>
    %845 = arith.mulf %844, %843 : vector<16x32xf32>
    %cst_409 = arith.constant dense<0.000000e+00> : vector<16xf32>
    %846 = vector.multi_reduction <add>, %845, %cst_409 [1] : vector<16x32xf32> to vector<16xf32>
    %847 = vector.shape_cast %846 : vector<16xf32> to vector<16x1xf32>
    %cst_410 = arith.constant 3.200000e+01 : f32
    %848 = vector.broadcast %cst_410 : f32 to vector<16x1xf32>
    %849 = arith.divf %847, %848 : vector<16x1xf32>
    %850 = vector.broadcast %849 : vector<16x1xf32> to vector<16x32xf32>
    %851 = arith.subf %845, %850 : vector<16x32xf32>
    %852 = arith.mulf %851, %851 : vector<16x32xf32>
    %cst_411 = arith.constant dense<0.000000e+00> : vector<16xf32>
    %853 = vector.multi_reduction <add>, %852, %cst_411 [1] : vector<16x32xf32> to vector<16xf32>
    %854 = vector.shape_cast %853 : vector<16xf32> to vector<16x1xf32>
    %cst_412 = arith.constant 3.200000e+01 : f32
    %855 = vector.broadcast %cst_412 : f32 to vector<16x1xf32>
    %856 = arith.divf %854, %855 : vector<16x1xf32>
    %857 = vector.broadcast %849 : vector<16x1xf32> to vector<16x32xf32>
    %858 = arith.subf %845, %857 : vector<16x32xf32>
    %cst_413 = arith.constant 9.99999974E-6 : f32
    %859 = vector.broadcast %cst_413 : f32 to vector<16x1xf32>
    %860 = arith.addf %856, %859 : vector<16x1xf32>
    %861 = math.rsqrt %860 : vector<16x1xf32>
    %862 = vector.broadcast %861 : vector<16x1xf32> to vector<16x32xf32>
    %863 = arith.mulf %858, %862 : vector<16x32xf32>
    %c0_414 = arith.constant 0 : index
    %c0_415 = arith.constant 0 : index
    %864 = vector.load %arg21[%c0_414, %c0_415] : memref<1x32xf32, #tpu.memory_space<vmem>>, vector<1x32xf32>
    %865 = vector.broadcast %864 : vector<1x32xf32> to vector<16x32xf32>
    %866 = arith.mulf %863, %865 : vector<16x32xf32>
    %c0_416 = arith.constant 0 : index
    %c0_417 = arith.constant 0 : index
    %867 = vector.load %arg22[%c0_416, %c0_417] : memref<1x32xf32, #tpu.memory_space<vmem>>, vector<1x32xf32>
    %868 = vector.broadcast %867 : vector<1x32xf32> to vector<16x32xf32>
    %869 = arith.addf %866, %868 : vector<16x32xf32>
    %c0_418 = arith.constant 0 : index
    %c0_419 = arith.constant 0 : index
    %870 = vector.load %arg13[%c0_418, %c0_419] : memref<32x128xf32, #tpu.memory_space<vmem>>, vector<32x128xf32>
    %cst_420 = arith.constant dense<0.000000e+00> : vector<16x128xf32>
    %871 = tpu.matmul %869, %870, %cst_420 {dimension_numbers = #tpu.dot_dimension_numbers<[1], [0], [0], [1], [0, 0, 1, 1], [], []>} : vector<16x32xf32>, vector<32x128xf32>, vector<16x128xf32> -> vector<16x128xf32>
    %c0_421 = arith.constant 0 : index
    %c0_422 = arith.constant 0 : index
    %872 = vector.load %arg14[%c0_421, %c0_422] : memref<1x128xf32, #tpu.memory_space<vmem>>, vector<1x128xf32>
    %873 = vector.broadcast %872 : vector<1x128xf32> to vector<16x128xf32>
    %874 = arith.addf %871, %873 : vector<16x128xf32>
    %cst_423 = arith.constant 0.000000e+00 : f32
    %875 = vector.broadcast %cst_423 : f32 to vector<16x128xf32>
    %876 = arith.cmpf oge, %874, %875 : vector<16x128xf32>
    %cst_424 = arith.constant 0.00999999977 : f32
    %877 = vector.broadcast %cst_424 : f32 to vector<16x128xf32>
    %878 = arith.mulf %877, %874 : vector<16x128xf32>
    %879 = arith.select %876, %874, %878 : vector<16x128xi1>, vector<16x128xf32>
    %c0_425 = arith.constant 0 : index
    %c0_426 = arith.constant 0 : index
    %880 = vector.load %arg15[%c0_425, %c0_426] : memref<128x32xf32, #tpu.memory_space<vmem>>, vector<128x32xf32>
    %cst_427 = arith.constant dense<0.000000e+00> : vector<16x32xf32>
    %881 = tpu.matmul %879, %880, %cst_427 {dimension_numbers = #tpu.dot_dimension_numbers<[1], [0], [0], [1], [0, 0, 1, 1], [], []>} : vector<16x128xf32>, vector<128x32xf32>, vector<16x32xf32> -> vector<16x32xf32>
    %c0_428 = arith.constant 0 : index
    %c0_429 = arith.constant 0 : index
    %882 = vector.load %arg16[%c0_428, %c0_429] : memref<1x32xf32, #tpu.memory_space<vmem>>, vector<1x32xf32>
    %883 = vector.broadcast %882 : vector<1x32xf32> to vector<16x32xf32>
    %884 = arith.addf %881, %883 : vector<16x32xf32>
    %cst_430 = arith.constant 2.000000e+00 : f32
    %885 = vector.broadcast %cst_430 : f32 to vector<16x32xf32>
    %886 = arith.mulf %885, %884 : vector<16x32xf32>
    %c0_431 = arith.constant 0 : index
    %c0_432 = arith.constant 0 : index
    %887 = vector.load %arg23[%c0_431, %c0_432] : memref<16x32xf32, #tpu.memory_space<vmem>>, vector<16x32xf32>
    tpu.vector_store %arg23[%c0_431, %c0_432], %886 {strides = array<i32>} : memref<16x32xf32, #tpu.memory_space<vmem>>, vector<16x32xf32>,
    return
  }
  func.func @transform_0(%arg0: i32) -> (i32, i32) {
    %c0_i32 = arith.constant 0 : i32
    %c0_i32_0 = arith.constant 0 : i32
    return %arg0, %c0_i32 : i32, i32
  }
  func.func @transform_1(%arg0: i32) -> (i32, i32) {
    %c0_i32 = arith.constant 0 : i32
    %c0_i32_0 = arith.constant 0 : i32
    return %arg0, %c0_i32 : i32, i32
  }
  func.func @transform_2(%arg0: i32) -> (i32, i32) {
    %c0_i32 = arith.constant 0 : i32
    %c0_i32_0 = arith.constant 0 : i32
    %c0_i32_1 = arith.constant 0 : i32
    return %c0_i32, %c0_i32_0 : i32, i32
  }
  func.func @transform_3(%arg0: i32) -> (i32, i32) {
    %c0_i32 = arith.constant 0 : i32
    %c0_i32_0 = arith.constant 0 : i32
    %c0_i32_1 = arith.constant 0 : i32
    return %c0_i32, %c0_i32_0 : i32, i32
  }
  func.func @transform_4(%arg0: i32) -> (i32, i32) {
    %c0_i32 = arith.constant 0 : i32
    %c0_i32_0 = arith.constant 0 : i32
    %c0_i32_1 = arith.constant 0 : i32
    return %c0_i32, %c0_i32_0 : i32, i32
  }
  func.func @transform_5(%arg0: i32) -> (i32, i32) {
    %c0_i32 = arith.constant 0 : i32
    %c0_i32_0 = arith.constant 0 : i32
    %c0_i32_1 = arith.constant 0 : i32
    return %c0_i32, %c0_i32_0 : i32, i32
  }
  func.func @transform_6(%arg0: i32) -> (i32, i32) {
    %c0_i32 = arith.constant 0 : i32
    %c0_i32_0 = arith.constant 0 : i32
    %c0_i32_1 = arith.constant 0 : i32
    return %c0_i32, %c0_i32_0 : i32, i32
  }
  func.func @transform_7(%arg0: i32) -> (i32, i32) {
    %c0_i32 = arith.constant 0 : i32
    %c0_i32_0 = arith.constant 0 : i32
    %c0_i32_1 = arith.constant 0 : i32
    return %c0_i32, %c0_i32_0 : i32, i32
  }
  func.func @transform_8(%arg0: i32) -> (i32, i32) {
    %c0_i32 = arith.constant 0 : i32
    %c0_i32_0 = arith.constant 0 : i32
    %c0_i32_1 = arith.constant 0 : i32
    return %c0_i32, %c0_i32_0 : i32, i32
  }
  func.func @transform_9(%arg0: i32) -> (i32, i32) {
    %c0_i32 = arith.constant 0 : i32
    %c0_i32_0 = arith.constant 0 : i32
    %c0_i32_1 = arith.constant 0 : i32
    return %c0_i32, %c0_i32_0 : i32, i32
  }
  func.func @transform_10(%arg0: i32) -> (i32, i32) {
    %c0_i32 = arith.constant 0 : i32
    %c0_i32_0 = arith.constant 0 : i32
    %c0_i32_1 = arith.constant 0 : i32
    return %c0_i32, %c0_i32_0 : i32, i32
  }
  func.func @transform_11(%arg0: i32) -> (i32, i32) {
    %c0_i32 = arith.constant 0 : i32
    %c0_i32_0 = arith.constant 0 : i32
    %c0_i32_1 = arith.constant 0 : i32
    return %c0_i32, %c0_i32_0 : i32, i32
  }
  func.func @transform_12(%arg0: i32) -> (i32, i32) {
    %c0_i32 = arith.constant 0 : i32
    %c0_i32_0 = arith.constant 0 : i32
    %c0_i32_1 = arith.constant 0 : i32
    return %c0_i32, %c0_i32_0 : i32, i32
  }
  func.func @transform_13(%arg0: i32) -> (i32, i32) {
    %c0_i32 = arith.constant 0 : i32
    %c0_i32_0 = arith.constant 0 : i32
    %c0_i32_1 = arith.constant 0 : i32
    return %c0_i32, %c0_i32_0 : i32, i32
  }
  func.func @transform_14(%arg0: i32) -> (i32, i32) {
    %c0_i32 = arith.constant 0 : i32
    %c0_i32_0 = arith.constant 0 : i32
    %c0_i32_1 = arith.constant 0 : i32
    return %c0_i32, %c0_i32_0 : i32, i32
  }
  func.func @transform_15(%arg0: i32) -> (i32, i32) {
    %c0_i32 = arith.constant 0 : i32
    %c0_i32_0 = arith.constant 0 : i32
    %c0_i32_1 = arith.constant 0 : i32
    return %c0_i32, %c0_i32_0 : i32, i32
  }
  func.func @transform_16(%arg0: i32) -> (i32, i32) {
    %c0_i32 = arith.constant 0 : i32
    %c0_i32_0 = arith.constant 0 : i32
    %c0_i32_1 = arith.constant 0 : i32
    return %c0_i32, %c0_i32_0 : i32, i32
  }
  func.func @transform_17(%arg0: i32) -> (i32, i32) {
    %c0_i32 = arith.constant 0 : i32
    %c0_i32_0 = arith.constant 0 : i32
    %c0_i32_1 = arith.constant 0 : i32
    return %c0_i32, %c0_i32_0 : i32, i32
  }
  func.func @transform_18(%arg0: i32) -> (i32, i32) {
    %c0_i32 = arith.constant 0 : i32
    %c0_i32_0 = arith.constant 0 : i32
    %c0_i32_1 = arith.constant 0 : i32
    return %c0_i32, %c0_i32_0 : i32, i32
  }
  func.func @transform_19(%arg0: i32) -> (i32, i32) {
    %c0_i32 = arith.constant 0 : i32
    %c0_i32_0 = arith.constant 0 : i32
    %c0_i32_1 = arith.constant 0 : i32
    return %c0_i32, %c0_i32_0 : i32, i32
  }
  func.func @transform_20(%arg0: i32) -> (i32, i32) {
    %c0_i32 = arith.constant 0 : i32
    %c0_i32_0 = arith.constant 0 : i32
    %c0_i32_1 = arith.constant 0 : i32
    return %c0_i32, %c0_i32_0 : i32, i32
  }
  func.func @transform_21(%arg0: i32) -> (i32, i32) {
    %c0_i32 = arith.constant 0 : i32
    %c0_i32_0 = arith.constant 0 : i32
    %c0_i32_1 = arith.constant 0 : i32
    return %c0_i32, %c0_i32_0 : i32, i32
  }
  func.func @transform_22(%arg0: i32) -> (i32, i32) {
    %c0_i32 = arith.constant 0 : i32
    %c0_i32_0 = arith.constant 0 : i32
    return %arg0, %c0_i32 : i32, i32
  }
  func.func @transform_23(%arg0: i32) -> (i32, i32, i32) {
    %c0_i32 = arith.constant 0 : i32
    %c0_i32_0 = arith.constant 0 : i32
    %c0_i32_1 = arith.constant 0 : i32
    return %arg0, %c0_i32, %c0_i32_0 : i32, i32, i32
  }
}

</mosaic_0001>

<bundles_post_ra>
// kernel: transformer_decoder.1
= control target key start
LH: loop header
LB: loop body
LE: loop exit
PB: predicated region body
PF: predicated region fallthrough
CT: control target
= control target key end

     0   :  { %s12656_s0 = inlined_call_operand.hbm [shape: f32[16,32], index: 0, kind: input, shape index: {}]   ;;  %s12657_s1 = inlined_call_operand.hbm [shape: f32[16,32], index: 1, kind: input, shape index: {}]   ;;  %s12658_s2 = inlined_call_operand.vmem [shape: f32[32,96], index: 2, kind: input, shape index: {}]   ;;  %s12659_s3 = inlined_call_operand.hbm [shape: f32[1,96], index: 3, kind: input, shape index: {}]   ;;  %s12660_s4 = inlined_call_operand.vmem [shape: f32[32,32], index: 4, kind: input, shape index: {}]   ;;  %s12661_s5 = inlined_call_operand.hbm [shape: f32[1,32], index: 5, kind: input, shape index: {}]   ;;  %s12662_s6 = inlined_call_operand.vmem [shape: f32[32,32], index: 6, kind: input, shape index: {}]   ;;  %s12663_s7 = inlined_call_operand.hbm [shape: f32[1,32], index: 7, kind: input, shape index: {}]   ;;  %s12664_s8 = inlined_call_operand.vmem [shape: f32[32,64], index: 8, kind: input, shape index: {}]   ;;  %s12665_s9 = inlined_call_operand.hbm [shape: f32[1,64], index: 9, kind: input, shape index: {}]   ;;  %s12666_s10 = inlined_call_operand.vmem [shape: f32[32,32], index: 10, kind: input, shape index: {}]   ;;  %s12667_s11 = inlined_call_operand.hbm [shape: f32[1,32], index: 11, kind: input, shape index: {}]   ;;  %s12668_s12 = inlined_call_operand.vmem [shape: f32[32,128], index: 12, kind: input, shape index: {}]   ;;  %s12669_s13 = inlined_call_operand.hbm [shape: f32[1,128], index: 13, kind: input, shape index: {}]   ;;  %s12670_s14 = inlined_call_operand.vmem [shape: f32[128,32], index: 14, kind: input, shape index: {}]   ;;  %s12671_s15 = inlined_call_operand.hbm [shape: f32[1,32], index: 15, kind: input, shape index: {}]   ;;  %s12672_s16 = inlined_call_operand.hbm [shape: f32[1,32], index: 16, kind: input, shape index: {}]   ;;  %s12673_s17 = inlined_call_operand.hbm [shape: f32[1,32], index: 17, kind: input, shape index: {}]   ;;  %s12674_s18 = inlined_call_operand.hbm [shape: f32[1,32], index: 18, kind: input, shape index: {}]   ;;  %s12675_s19 = inlined_call_operand.hbm [shape: f32[1,32], index: 19, kind: input, shape index: {}]   ;;  %s12676_s20 = inlined_call_operand.hbm [shape: f32[1,32], index: 20, kind: input, shape index: {}]   ;;  %s12677_s21 = inlined_call_operand.hbm [shape: f32[1,32], index: 21, kind: input, shape index: {}]   ;;  %s12678_s22 = inlined_call_operand.hbm [shape: f32[16,32], index: 22, kind: output, shape index: {0}]   ;;  %s12679_s23 = inlined_call_operand.vmem [shape: f32[2,8,128], index: 23, kind: output, shape index: {1}]  }
   0x1   :  { %12692 = sst [smem:[#allocation36_spill]] %s12656_s0 }
   0x2   :  { %12693 = sst [smem:[#allocation37_spill]] %s12657_s1 }
   0x3   :  { %12694 = sst [smem:[#allocation38_spill]] %s12658_s2 }
   0x4   :  { %12695 = sst [smem:[#allocation39_spill]] %s12659_s3 }
   0x5   :  { %12696 = sst [smem:[#allocation40_spill]] %s12660_s4 }
   0x6   :  { %12697 = sst [smem:[#allocation41_spill]] %s12661_s5 }
   0x7   :  { %12698 = sst [smem:[#allocation42_spill]] %s12662_s6 }
   0x8   :  { %12699 = sst [smem:[#allocation43_spill]] %s12663_s7 }
   0x9   :  { %29 = vsyncpa [#allocation3], 0 }
   0xa   :  { %30 = vsyncpa [#allocation6], 0 }
   0xb   :  { %31 = vsyncpa [#allocation9], 0 }
   0xc   :  { %32 = vsyncpa [#allocation12], 0 }
   0xd   :  { %33 = vsyncpa [#allocation15], 0 }
   0xe   :  { %34 = vsyncpa [#allocation18], 0 }
   0xf   :  { %35 = vsyncpa [#allocation21], 0 }
  0x10   :  { %36 = vsyncpa [#allocation24], 0 }
  0x11   :  { %37 = vsyncpa [#allocation4], 0  ;;  %s10968_s4 = smov [#allocation5]   ;;  %s10969_s24 = smov [#allocation8]  }
  0x12   :  { %s55_s30 = sshll.u32 %s10968_s4, 4  ;;  %s82_s25 = sshll.u32 %s10969_s24, 4  ;;  %s56_s30 = int_to_ptr.vmem [resolvable:$true] %s55_s30  ;;  %s11122_s25 = int_to_ptr.vmem [resolvable:$true] %s82_s25 }
  0x13   :  { %s12700_s26 = sld [smem:[#allocation37_spill]] }
  0x19   :  { %s10598_s2 = scalar_lea.hbm %s12700_s26, 256 }
  0x1a   :  { %p10599_p0 = scmp.ne.s32.totalorder %s12700_s26, %s10598_s2  ;;  %p10602_p1 = scmp.lt.u32.totalorder %s10598_s2, %s12700_s26 }
  0x1c   :  { %p10604_p2 = pnand %p10602_p1, %p10599_p0 }
  0x1e   :  { %10607 = shalt.err (!%p10604_p2)
}
  0x1f   :  { %s10608_s29 = scalar_lea.vmem %s56_s30, 256  ;;  %p10613_p4 = scmp.lt.s32.totalorder %s56_s30, %s56_s30 }
  0x20   :  { %p10609_p3 = scmp.ne.s32.totalorder %s56_s30, %s10608_s29  ;;  %p10614_p5 = scmp.lt.s32.totalorder %s10608_s29, %s10608_s29 }
  0x22   :  { %p10615_p6 = por %p10614_p5, %p10613_p4 }
  0x24   :  { %p10616_p7 = pnand %p10615_p6, %p10609_p3 }
  0x26   :  { %10619 = shalt.err (!%p10616_p7)
}
  0x27   :  { %s12688_s3 = smov 128   ;;  %s12690_s0 = smov 8  }
  0x28   :  { %61 = dma.hbm_to_vmem [thread:$0]  %s12700_s26, 256, %s56_s30, [#allocation6], %s12688_s3, %s12688_s3, %s12690_s0  }
  0x29   :  { %s12701_s2 = sld [smem:[#allocation41_spill]] }
  0x2f   :  { %s10620_s6 = scalar_lea.hbm %s12701_s2, 16 }
  0x30   :  { %p10621_p8 = scmp.ne.s32.totalorder %s12701_s2, %s10620_s6  ;;  %p10624_p9 = scmp.lt.u32.totalorder %s10620_s6, %s12701_s2 }
  0x32   :  { %p10626_p10 = pnand %p10624_p9, %p10621_p8 }
  0x34   :  { %10629 = shalt.err (!%p10626_p10)
}
  0x35   :  { %s10630_s4 = scalar_lea.vmem %s11122_s25, 16  ;;  %s10634_s30 = scalar_lea.vmem %s11122_s25, 32 }
  0x36   :  { %p10631_p11 = scmp.ne.s32.totalorder %s11122_s25, %s10630_s4  ;;  %p10635_p12 = scmp.lt.s32.totalorder %s11122_s25, %s11122_s25 }
  0x37   :  { %p10636_p13 = scmp.lt.s32.totalorder %s10634_s30, %s10630_s4 }
  0x39   :  { %p10637_p0 = por %p10636_p13, %p10635_p12 }
  0x3b   :  { %p10638_p1 = pnand %p10637_p0, %p10631_p11 }
  0x3d   :  { %10641 = shalt.err (!%p10638_p1)
}
  0x3e   :  { %85 = dma.hbm_to_vmem [thread:$0]  %s12701_s2, 16, %s11122_s25, [#allocation9]  }
  0x3f   :  { %s10972_s5 = smov [#allocation11]   ;;  %s10973_s6 = smov [#allocation14]  }
  0x40   :  { %s106_s1 = sshll.u32 %s10972_s5, 4  ;;  %s130_s27 = sshll.u32 %s10973_s6, 4  ;;  %s107_s1 = int_to_ptr.vmem [resolvable:$true] %s106_s1  ;;  %s131_s27 = int_to_ptr.vmem [resolvable:$true] %s130_s27 }
  0x41   :  { %s10642_s29 = scalar_lea.hbm %s12665_s9, 16 }
  0x42   :  { %p10643_p2 = scmp.ne.s32.totalorder %s12665_s9, %s10642_s29  ;;  %p10646_p3 = scmp.lt.u32.totalorder %s10642_s29, %s12665_s9 }
  0x44   :  { %p10648_p4 = pnand %p10646_p3, %p10643_p2 }
  0x46   :  { %10651 = shalt.err (!%p10648_p4)
}
  0x47   :  { %s10652_s25 = scalar_lea.vmem %s107_s1, 16  ;;  %s10656_s2 = scalar_lea.vmem %s107_s1, 32 }
  0x48   :  { %p10653_p5 = scmp.ne.s32.totalorder %s107_s1, %s10652_s25  ;;  %p10657_p6 = scmp.lt.s32.totalorder %s107_s1, %s107_s1 }
  0x49   :  { %p10658_p7 = scmp.lt.s32.totalorder %s10656_s2, %s10652_s25 }
  0x4b   :  { %p10659_p8 = por %p10658_p7, %p10657_p6 }
  0x4d   :  { %p10660_p9 = pnand %p10659_p8, %p10653_p5 }
  0x4f   :  { %10663 = shalt.err (!%p10660_p9)
}
  0x50   :  { %109 = dma.hbm_to_vmem [thread:$0]  %s12665_s9, 16, %s107_s1, [#allocation12]  }
  0x51   :  { %s10664_s6 = scalar_lea.hbm %s12669_s13, 16 }
  0x52   :  { %p10665_p10 = scmp.ne.s32.totalorder %s12669_s13, %s10664_s6  ;;  %p10668_p11 = scmp.lt.u32.totalorder %s10664_s6, %s12669_s13 }
  0x54   :  { %p10670_p12 = pnand %p10668_p11, %p10665_p10 }
  0x56   :  { %10673 = shalt.err (!%p10670_p12)
}
  0x57   :  { %s10674_s4 = scalar_lea.vmem %s131_s27, 16  ;;  %s10678_s30 = scalar_lea.vmem %s131_s27, 32 }
  0x58   :  { %p10675_p13 = scmp.ne.s32.totalorder %s131_s27, %s10674_s4  ;;  %p10679_p0 = scmp.lt.s32.totalorder %s131_s27, %s131_s27 }
  0x59   :  { %p10680_p1 = scmp.lt.s32.totalorder %s10678_s30, %s10674_s4 }
  0x5b   :  { %p10681_p2 = por %p10680_p1, %p10679_p0 }
  0x5d   :  { %p10682_p3 = pnand %p10681_p2, %p10675_p13 }
  0x5f   :  { %10685 = shalt.err (!%p10682_p3)
}
  0x60   :  { %133 = dma.hbm_to_vmem [thread:$0]  %s12669_s13, 16, %s131_s27, [#allocation15]  }
  0x61   :  { %s10974_s25 = smov [#allocation17]   ;;  %s10975_s26 = smov [#allocation20]  }
  0x62   :  { %s152_s2 = sshll.u32 %s10974_s25, 4  ;;  %s172_s24 = sshll.u32 %s10975_s26, 4  ;;  %s153_s2 = int_to_ptr.vmem [resolvable:$true] %s152_s2  ;;  %s173_s24 = int_to_ptr.vmem [resolvable:$true] %s172_s24 }
  0x63   :  { %s10686_s6 = scalar_lea.hbm %s12672_s16, 16 }
  0x64   :  { %p10687_p4 = scmp.ne.s32.totalorder %s12672_s16, %s10686_s6  ;;  %p10690_p5 = scmp.lt.u32.totalorder %s10686_s6, %s12672_s16 }
  0x66   :  { %p10692_p6 = pnand %p10690_p5, %p10687_p4 }
  0x68   :  { %10695 = shalt.err (!%p10692_p6)
}
  0x69   :  { %s10696_s13 = scalar_lea.vmem %s153_s2, 16  ;;  %s10700_s27 = scalar_lea.vmem %s153_s2, 32 }
  0x6a   :  { %p10697_p7 = scmp.ne.s32.totalorder %s153_s2, %s10696_s13  ;;  %p10701_p8 = scmp.lt.s32.totalorder %s153_s2, %s153_s2 }
  0x6b   :  { %p10702_p9 = scmp.lt.s32.totalorder %s10700_s27, %s10696_s13 }
  0x6d   :  { %p10703_p10 = por %p10702_p9, %p10701_p8 }
  0x6f   :  { %p10704_p11 = pnand %p10703_p10, %p10697_p7 }
  0x71   :  { %10707 = shalt.err (!%p10704_p11)
}
  0x72   :  { %155 = dma.hbm_to_vmem [thread:$0]  %s12672_s16, 16, %s153_s2, [#allocation18]  }
  0x73   :  { %s10708_s25 = scalar_lea.hbm %s12674_s18, 16 }
  0x74   :  { %p10709_p12 = scmp.ne.s32.totalorder %s12674_s18, %s10708_s25  ;;  %p10712_p13 = scmp.lt.u32.totalorder %s10708_s25, %s12674_s18 }
  0x76   :  { %p10714_p0 = pnand %p10712_p13, %p10709_p12 }
  0x78   :  { %10717 = shalt.err (!%p10714_p0)
}
  0x79   :  { %s10718_s0 = scalar_lea.vmem %s173_s24, 16  ;;  %s10722_s7 = scalar_lea.vmem %s173_s24, 32 }
  0x7a   :  { %p10719_p1 = scmp.ne.s32.totalorder %s173_s24, %s10718_s0  ;;  %p10723_p2 = scmp.lt.s32.totalorder %s173_s24, %s173_s24 }
  0x7b   :  { %p10724_p3 = scmp.lt.s32.totalorder %s10722_s7, %s10718_s0 }
  0x7d   :  { %p10725_p4 = por %p10724_p3, %p10723_p2 }
  0x7f   :  { %p10726_p5 = pnand %p10725_p4, %p10719_p1 }
  0x81   :  { %10729 = shalt.err (!%p10726_p5)
}
  0x82   :  { %175 = dma.hbm_to_vmem [thread:$0]  %s12674_s18, 16, %s173_s24, [#allocation21]  }
  0x83   :  { %s10976_s28 = smov [#allocation23]   ;;  %s10977_s13 = smov [#allocation2]  }
  0x84   :  { %s192_s29 = sshll.u32 %s10976_s28, 4  ;;  %s43_s27 = sshll.u32 %s10977_s13, 4  ;;  %s193_s29 = int_to_ptr.vmem [resolvable:$true] %s192_s29  ;;  %s11205_s27 = int_to_ptr.vmem [resolvable:$true] %s43_s27 }
  0x85   :  { %s10730_s9 = scalar_lea.hbm %s12676_s20, 16 }
  0x86   :  { %p10731_p6 = scmp.ne.s32.totalorder %s12676_s20, %s10730_s9  ;;  %p10734_p7 = scmp.lt.u32.totalorder %s10730_s9, %s12676_s20 }
  0x88   :  { %p10736_p8 = pnand %p10734_p7, %p10731_p6 }
  0x8a   :  { %10739 = shalt.err (!%p10736_p8)
}
  0x8b   :  { %s10740_s18 = scalar_lea.vmem %s193_s29, 16  ;;  %s10744_s24 = scalar_lea.vmem %s193_s29, 32 }
  0x8c   :  { %p10741_p9 = scmp.ne.s32.totalorder %s193_s29, %s10740_s18  ;;  %p10745_p10 = scmp.lt.s32.totalorder %s193_s29, %s193_s29 }
  0x8d   :  { %p10746_p11 = scmp.lt.s32.totalorder %s10744_s24, %s10740_s18 }
  0x8f   :  { %p10747_p12 = por %p10746_p11, %p10745_p10 }
  0x91   :  { %p10748_p13 = pnand %p10747_p12, %p10741_p9 }
  0x93   :  { %10751 = shalt.err (!%p10748_p13)
}
  0x94   :  { %195 = dma.hbm_to_vmem [thread:$0]  %s12676_s20, 16, %s193_s29, [#allocation24]  }
  0x95   :  { %s12702_s16 = sld [smem:[#allocation36_spill]] }
  0x9b   :  { %s10752_s2 = scalar_lea.hbm %s12702_s16, 256 }
  0x9c   :  { %p10753_p0 = scmp.ne.s32.totalorder %s12702_s16, %s10752_s2  ;;  %p10756_p1 = scmp.lt.u32.totalorder %s10752_s2, %s12702_s16 }
  0x9e   :  { %p10758_p2 = pnand %p10756_p1, %p10753_p0 }
  0xa0   :  { %10761 = shalt.err (!%p10758_p2)
}
  0xa1   :  { %s10762_s9 = scalar_lea.vmem %s11205_s27, 256  ;;  %p10767_p4 = scmp.lt.s32.totalorder %s11205_s27, %s11205_s27 }
  0xa2   :  { %p10763_p3 = scmp.ne.s32.totalorder %s11205_s27, %s10762_s9  ;;  %p10768_p5 = scmp.lt.s32.totalorder %s10762_s9, %s10762_s9 }
  0xa4   :  { %p10769_p6 = por %p10768_p5, %p10767_p4 }
  0xa6   :  { %p10770_p7 = pnand %p10769_p6, %p10763_p3 }
  0xa8   :  { %10773 = shalt.err (!%p10770_p7)
}
  0xa9   :  { %s12703_s20 = smov 8   ;;  %s12704_s29 = smov 128  }
  0xaa   :  { %49 = dma.hbm_to_vmem [thread:$0]  %s12702_s16, 256, %s11205_s27, [#allocation3], %s12704_s29, %s12704_s29, %s12703_s20  }
  0xab   :  { %s10978_s26 = smov [#allocation7]   ;;  %s10979_s18 = smov [#allocation10]  }
  0xac   :  { %s70_s3 = sshll.u32 %s10978_s26, 4  ;;  %s94_s24 = sshll.u32 %s10979_s18, 4  ;;  %s71_s3 = int_to_ptr.vmem [resolvable:$true] %s70_s3  ;;  %s95_s24 = int_to_ptr.vmem [resolvable:$true] %s94_s24 }
  0xad   :  { %s12705_s0 = sld [smem:[#allocation39_spill]] }
  0xb3   :  { %s10774_s7 = scalar_lea.hbm %s12705_s0, 16 }
  0xb4   :  { %p10775_p8 = scmp.ne.s32.totalorder %s12705_s0, %s10774_s7  ;;  %p10778_p9 = scmp.lt.u32.totalorder %s10774_s7, %s12705_s0 }
  0xb6   :  { %p10780_p10 = pnand %p10778_p9, %p10775_p8 }
  0xb8   :  { %10783 = shalt.err (!%p10780_p10)
}
  0xb9   :  { %s10784_s27 = scalar_lea.vmem %s71_s3, 16  ;;  %s10788_s16 = scalar_lea.vmem %s71_s3, 32 }
  0xba   :  { %p10785_p11 = scmp.ne.s32.totalorder %s71_s3, %s10784_s27  ;;  %p10789_p12 = scmp.lt.s32.totalorder %s71_s3, %s71_s3 }
  0xbb   :  { %p10790_p13 = scmp.lt.s32.totalorder %s10788_s16, %s10784_s27 }
  0xbd   :  { %p10791_p0 = por %p10790_p13, %p10789_p12 }
  0xbf   :  { %p10792_p1 = pnand %p10791_p0, %p10785_p11 }
  0xc1   :  { %10795 = shalt.err (!%p10792_p1)
}
  0xc2   :  { %73 = dma.hbm_to_vmem [thread:$0]  %s12705_s0, 16, %s71_s3, [#allocation6]  }
  0xc3   :  { %s12706_s26 = sld [smem:[#allocation43_spill]] }
  0xc9   :  { %s10796_s18 = scalar_lea.hbm %s12706_s26, 16 }
  0xca   :  { %p10797_p2 = scmp.ne.s32.totalorder %s12706_s26, %s10796_s18  ;;  %p10800_p3 = scmp.lt.u32.totalorder %s10796_s18, %s12706_s26 }
  0xcc   :  { %p10802_p4 = pnand %p10800_p3, %p10797_p2 }
  0xce   :  { %10805 = shalt.err (!%p10802_p4)
}
  0xcf   :  { %s10806_s28 = scalar_lea.vmem %s95_s24, 16  ;;  %s10810_s13 = scalar_lea.vmem %s95_s24, 32 }
  0xd0   :  { %p10807_p5 = scmp.ne.s32.totalorder %s95_s24, %s10806_s28  ;;  %p10811_p6 = scmp.lt.s32.totalorder %s95_s24, %s95_s24 }
  0xd1   :  { %p10812_p7 = scmp.lt.s32.totalorder %s10810_s13, %s10806_s28 }
  0xd3   :  { %p10813_p8 = por %p10812_p7, %p10811_p6 }
  0xd5   :  { %p10814_p9 = pnand %p10813_p8, %p10807_p5 }
  0xd7   :  { %10817 = shalt.err (!%p10814_p9)
}
  0xd8   :  { %97 = dma.hbm_to_vmem [thread:$0]  %s12706_s26, 16, %s95_s24, [#allocation9]  }
  0xd9   :  { %s10980_s4 = smov [#allocation13]   ;;  %s10981_s16 = smov [#allocation16]  }
  0xda   :  { %s118_s27 = sshll.u32 %s10980_s4, 4  ;;  %s142_s30 = sshll.u32 %s10981_s16, 4  ;;  %s119_s27 = int_to_ptr.vmem [resolvable:$true] %s118_s27  ;;  %s143_s30 = int_to_ptr.vmem [resolvable:$true] %s142_s30 }
  0xdb   :  { %s10818_s25 = scalar_lea.hbm %s12667_s11, 16 }
  0xdc   :  { %p10819_p10 = scmp.ne.s32.totalorder %s12667_s11, %s10818_s25  ;;  %p10822_p11 = scmp.lt.u32.totalorder %s10818_s25, %s12667_s11 }
  0xde   :  { %p10824_p12 = pnand %p10822_p11, %p10819_p10 }
  0xe0   :  { %10827 = shalt.err (!%p10824_p12)
}
  0xe1   :  { %s10828_s24 = scalar_lea.vmem %s119_s27, 16  ;;  %s10832_s26 = scalar_lea.vmem %s119_s27, 32 }
  0xe2   :  { %p10829_p13 = scmp.ne.s32.totalorder %s119_s27, %s10828_s24  ;;  %p10833_p0 = scmp.lt.s32.totalorder %s119_s27, %s119_s27 }
  0xe3   :  { %p10834_p1 = scmp.lt.s32.totalorder %s10832_s26, %s10828_s24 }
  0xe5   :  { %p10835_p2 = por %p10834_p1, %p10833_p0 }
  0xe7   :  { %p10836_p3 = pnand %p10835_p2, %p10829_p13 }
  0xe9   :  { %10839 = shalt.err (!%p10836_p3)
}
  0xea   :  { %121 = dma.hbm_to_vmem [thread:$0]  %s12667_s11, 16, %s119_s27, [#allocation12]  }
  0xeb   :  { %s10840_s0 = scalar_lea.hbm %s12671_s15, 16 }
  0xec   :  { %p10841_p4 = scmp.ne.s32.totalorder %s12671_s15, %s10840_s0  ;;  %p10844_p5 = scmp.lt.u32.totalorder %s10840_s0, %s12671_s15 }
  0xee   :  { %p10846_p6 = pnand %p10844_p5, %p10841_p4 }
  0xf0   :  { %10849 = shalt.err (!%p10846_p6)
}
  0xf1   :  { %s10850_s25 = scalar_lea.vmem %s143_s30, 16  ;;  %s10854_s18 = scalar_lea.vmem %s143_s30, 32 }
  0xf2   :  { %p10851_p7 = scmp.ne.s32.totalorder %s143_s30, %s10850_s25  ;;  %p10855_p8 = scmp.lt.s32.totalorder %s143_s30, %s143_s30 }
  0xf3   :  { %p10856_p9 = scmp.lt.s32.totalorder %s10854_s18, %s10850_s25 }
  0xf5   :  { %p10857_p10 = por %p10856_p9, %p10855_p8 }
  0xf7   :  { %p10858_p11 = pnand %p10857_p10, %p10851_p7 }
  0xf9   :  { %10861 = shalt.err (!%p10858_p11)
}
  0xfa   :  { %145 = dma.hbm_to_vmem [thread:$0]  %s12671_s15, 16, %s143_s30, [#allocation15]  }
  0xfb   :  { %s10982_s5 = smov [#allocation19]   ;;  %s10983_s7 = smov [#allocation22]  }
  0xfc   :  { %s162_s6 = sshll.u32 %s10982_s5, 4  ;;  %s182_s24 = sshll.u32 %s10983_s7, 4  ;;  %s163_s6 = int_to_ptr.vmem [resolvable:$true] %s162_s6  ;;  %s183_s24 = int_to_ptr.vmem [resolvable:$true] %s182_s24 }
  0xfd   :  { %s10862_s28 = scalar_lea.hbm %s12673_s17, 16 }
  0xfe   :  { %p10863_p12 = scmp.ne.s32.totalorder %s12673_s17, %s10862_s28  ;;  %p10866_p13 = scmp.lt.u32.totalorder %s10862_s28, %s12673_s17 }
 0x100   :  { %p10868_p0 = pnand %p10866_p13, %p10863_p12 }
 0x102   :  { %10871 = shalt.err (!%p10868_p0)
}
 0x103   :  { %s10872_s15 = scalar_lea.vmem %s163_s6, 16  ;;  %s10876_s30 = scalar_lea.vmem %s163_s6, 32 }
 0x104   :  { %p10873_p1 = scmp.ne.s32.totalorder %s163_s6, %s10872_s15  ;;  %p10877_p2 = scmp.lt.s32.totalorder %s163_s6, %s163_s6 }
 0x105   :  { %p10878_p3 = scmp.lt.s32.totalorder %s10876_s30, %s10872_s15 }
 0x107   :  { %p10879_p4 = por %p10878_p3, %p10877_p2 }
 0x109   :  { %p10880_p5 = pnand %p10879_p4, %p10873_p1 }
 0x10b   :  { %10883 = shalt.err (!%p10880_p5)
}
 0x10c   :  { %165 = dma.hbm_to_vmem [thread:$0]  %s12673_s17, 16, %s163_s6, [#allocation18]  }
 0x10d   :  { %s10884_s18 = scalar_lea.hbm %s12675_s19, 16 }
 0x10e   :  { %p10885_p6 = scmp.ne.s32.totalorder %s12675_s19, %s10884_s18  ;;  %p10888_p7 = scmp.lt.u32.totalorder %s10884_s18, %s12675_s19 }
 0x110   :  { %p10890_p8 = pnand %p10888_p7, %p10885_p6 }
 0x112   :  { %10893 = shalt.err (!%p10890_p8)
}
 0x113   :  { %s10894_s26 = scalar_lea.vmem %s183_s24, 16  ;;  %s10898_s2 = scalar_lea.vmem %s183_s24, 32 }
 0x114   :  { %p10895_p9 = scmp.ne.s32.totalorder %s183_s24, %s10894_s26  ;;  %p10899_p10 = scmp.lt.s32.totalorder %s183_s24, %s183_s24 }
 0x115   :  { %p10900_p11 = scmp.lt.s32.totalorder %s10898_s2, %s10894_s26 }
 0x117   :  { %p10901_p12 = por %p10900_p11, %p10899_p10 }
 0x119   :  { %p10902_p13 = pnand %p10901_p12, %p10895_p9 }
 0x11b   :  { %10905 = shalt.err (!%p10902_p13)
}
 0x11c   :  { %185 = dma.hbm_to_vmem [thread:$0]  %s12675_s19, 16, %s183_s24, [#allocation21]  }
 0x11d   :  { %s10984_s28 = smov [#allocation25]   ;;  %s10906_s4 = scalar_lea.hbm %s12677_s21, 16 }
 0x11e   :  { %s202_s13 = sshll.u32 %s10984_s28, 4  ;;  %p10907_p0 = scmp.ne.s32.totalorder %s12677_s21, %s10906_s4  ;;  %s203_s13 = int_to_ptr.vmem [resolvable:$true] %s202_s13 }
 0x11f   :  { %p10910_p1 = scmp.lt.u32.totalorder %s10906_s4, %s12677_s21 }
 0x121   :  { %p10912_p2 = pnand %p10910_p1, %p10907_p0 }
 0x123   :  { %10915 = shalt.err (!%p10912_p2)
}
 0x124   :  { %s10916_s1 = scalar_lea.vmem %s203_s13, 16  ;;  %s10920_s19 = scalar_lea.vmem %s203_s13, 32 }
 0x125   :  { %p10917_p3 = scmp.ne.s32.totalorder %s203_s13, %s10916_s1  ;;  %p10921_p4 = scmp.lt.s32.totalorder %s203_s13, %s203_s13 }
 0x126   :  { %p10922_p5 = scmp.lt.s32.totalorder %s10920_s19, %s10916_s1 }
 0x128   :  { %p10923_p6 = por %p10922_p5, %p10921_p4 }
 0x12a   :  { %p10924_p7 = pnand %p10923_p6, %p10917_p3 }
 0x12c   :  { %10927 = shalt.err (!%p10924_p7)
}
 0x12d   :  { %205 = dma.hbm_to_vmem [thread:$0]  %s12677_s21, 16, %s203_s13, [#allocation24]  }
 0x12e   :  { %10950 = dma.done.wait [#allocation3], 256  }
 0x12f   :  { %10951 = vsyncadd [#allocation3], 4294967040 }
 0x130   :  { %10952 = dma.done.wait [#allocation6], 272  }
 0x131   :  { %10953 = vsyncadd [#allocation6], 4294967024 }
 0x132   :  { %10954 = dma.done.wait [#allocation9], 32  }
 0x133   :  { %10955 = vsyncadd [#allocation9], 4294967264 }
 0x134   :  { %10956 = dma.done.wait [#allocation12], 32  }
 0x135   :  { %10957 = vsyncadd [#allocation12], 4294967264 }
 0x136   :  { %10958 = dma.done.wait [#allocation15], 32  }
 0x137   :  { %10959 = vsyncadd [#allocation15], 4294967264 }
 0x138   :  { %10960 = dma.done.wait [#allocation18], 32  }
 0x139   :  { %10961 = vsyncadd [#allocation18], 4294967264 }
 0x13a   :  { %10962 = dma.done.wait [#allocation21], 32  }
 0x13b   :  { %10963 = vsyncadd [#allocation21], 4294967264 }
 0x13c   :  { %10964 = dma.done.wait [#allocation24], 32  }
 0x13d   :  { %10965 = vsyncadd [#allocation24], 4294967264  ;;  %vm266_vm0 = vcmask 261120   ;;  %v251_v0 = vld [vmem:[#allocation2] sm:$0xff]  ;;  %v252_v1 = vld [vmem:[#allocation2 + $0x8] sm:$0xff]  ;;  %s12707_s11 = sld [smem:[#allocation42_spill]] }
 0x13e   :  { %v348_v2 = vsel %vm266_vm0, %v251_v0, 0.0  ;;  %v351_v3 = vsel %vm266_vm0, %v252_v1, 0.0  ;;  %v253_v19 = vld [vmem:[#allocation5] sm:$0xff]  ;;  %s12708_s13 = sld [smem:[#allocation38_spill]]  ;;  %v254_v26 = vld [vmem:[#allocation5 + $0x8] sm:$0xff]  ;;  %v10985_v48 = vmov 0.0  }
 0x13f   :  { %349 = vadd.xlane.f32.xlu0 %v348_v2  ;;  %9673 = vmatprep.mubr.msk.f32.mxu0 %vm266_vm0, %v253_v19  ;;  %v9215_v35 = vld [vmem:[#allocation17] ss:$0 sm:$0xff]  ;;  %v9216_v37 = vld [vmem:[#allocation19] ss:$0 sm:$0xff]  ;;  %v11355_v44 = vld [vmem:[#allocation10] ss:$0 sm:$0xff] }
 0x140   :  { %9702 = vmatprep.subr.mxu1 %v10985_v48  ;;  %vm10986_vm1 = vmmov 0   ;;  %v9217_v49 = vld [vmem:[#allocation7] ss:$0 sm:$0xff]  ;;  %s10987_s9 = smov 96   ;;  %s10988_s1 = smov 88   ;;  %vm488_vm2 = vcmask 64512  }
 0x141   :  { %9704 = vmatprep.mubr.msk.f32.mxu1 %vm10986_vm1, %v10985_v48  ;;  %s10989_s19 = smov 64   ;;  %s10990_s24 = smov 120   ;;  %vm745_vm5 = vcmask 130112   ;;  %vm1062_vm6 = vcmask 195712   ;;  %vm1307_vm7 = vcmask 261312   ;;  %vm2668_vm8 = vcmask 326912  }
 0x142   :  { %s10991_s18 = smov 56   ;;  %s10993_s27 = smov 80   ;;  %vm2839_vm9 = vcmask 392512   ;;  %vm3156_vm10 = vcmask 458112   ;;  %vm3401_vm11 = vcmask 523712   ;;  %vm5006_vm12 = vcmask 589312  }
 0x143   :  { %352 = vadd.xlane.f32.xlu0 %v351_v3  ;;  %v255_v14 = vld [vmem:[%s12707_s11] sm:$0xff]  ;;  %v256_v15 = vld [vmem:[%s12707_s11 + $0x8] sm:$0xff]  ;;  %v257_v17 = vld [vmem:[%s12707_s11 + $0x10] sm:$0xff]  ;;  %s12709_s26 = sld [smem:[#allocation40_spill]]  ;;  %s10994_s6 = smov 72   ;;  %vm5177_vm13 = vcmask 654912  }
 0x144   :  { %v10292_v16 = vpack.c.bf16 %v256_v15, %v255_v14  ;;  %v258_v18 = vld [vmem:[%s12707_s11 + $0x18] sm:$0xff]  ;;  %v393_v21 = vld [vmem:[%s12708_s13] sm:$0xff]  ;;  %v394_v22 = vld [vmem:[%s12708_s13 + $0x8] sm:$0xff]  ;;  %s10992_s11 = smov 112   ;;  %s10995_s28 = smov 104   ;;  %vm5494_vm14 = vcmask 720512  }
 0x145   :  { %v10296_v20 = vpack.c.bf16 %v258_v18, %v257_v17  ;;  %v10300_v23 = vpack.c.bf16 %v394_v22, %v393_v21  ;;  %v395_v24 = vld [vmem:[%s12708_s13 + $0x10] sm:$0xff]  ;;  %v396_v25 = vld [vmem:[%s12708_s13 + $0x18] sm:$0xff]  ;;  %s10996_s3 = smov 48   ;;  %s10997_s15 = smov 40   ;;  %vm5739_vm15 = vcmask 786112  }
 0x146   :  { %10293 = vmatprep.subr.bf16.mxu0 %v10292_v16  ;;  %v10304_v27 = vpack.c.bf16 %v396_v25, %v395_v24  ;;  %s10999_s17 = smov 24  }
 0x147   :  { %10295 = vmatpush3.bf16.msra.mxu0 %v10292_v16 }
 0x148   :  { %10297 = vmatprep.subr.bf16.mxu0 %v10296_v20 }
 0x149   :  { %v11413_v16 = vld [vmem:[%s12709_s26 + $0x8] sm:$0xff] }
 0x14b   :  { %10299 = vmatpush3.bf16.msra.mxu0 %v10296_v20  ;;  %v11422_v20 = vld [vmem:[%s12709_s26] sm:$0xff] }
 0x14c   :  { %10301 = vmatprep.subr.bf16.mxu0 %v10300_v23 }
 0x14e   :  { %9674 = vmatmul.mubr.msk.f32.vlgmr.msra.gmra.mrb[0].mxu0 %vm266_vm0, %v254_v26 }
 0x14f   :  { %10303 = vmatpush3.bf16.msra.mxu0 %v10300_v23 }
 0x150   :  { %10305 = vmatprep.subr.bf16.mxu0 %v10304_v27 }
 0x153   :  { %10307 = vmatpush3.bf16.msra.mxu0 %v10304_v27 }
 0x154   :  { %9687 = vmatprep.subr.mxu0 %v10985_v48 }
 0x1cc   :  { %v350_v4 = vpop.xlane.xlu0 %349 }
 0x1cd   :  { %v355_v5 = vmul.f32 0.03125, %v350_v4 }
 0x1cf   :  { %v357_v6 = vsub.f32 %v251_v0, %v355_v5 }
 0x1d0   :  { %v353_v7 = vpop.xlane.xlu0 %352 }
 0x1d1   :  { %v356_v8 = vmul.f32 0.03125, %v353_v7  ;;  %v359_v9 = vmul.f32 %v357_v6, %v357_v6 }
 0x1d3   :  { %v358_v10 = vsub.f32 %v252_v1, %v356_v8  ;;  %v361_v11 = vsel %vm266_vm0, %v359_v9, 0.0 }
 0x1d4   :  { %362 = vadd.xlane.f32.xlu1 %v361_v11 }
 0x1d5   :  { %v360_v12 = vmul.f32 %v358_v10, %v358_v10 }
 0x1d7   :  { %v364_v13 = vsel %vm266_vm0, %v360_v12, 0.0 }
 0x1d8   :  { %365 = vadd.xlane.f32.xlu1 %v364_v13 }
 0x221   :  { %v9675_v45 = vpop.f32.mrb[0].mxu0 }
 0x222   :  { %v11358_v46 = vadd.f32 %v9675_v45, %v11355_v44  ;;  %v11360_v47 = vpop.f32.mrb[1].mxu0  ;;  %v11466_v45 = vld [vmem:[%s12709_s26 + $0x10] sm:$0xff] }
 0x261   :  { %v363_v28 = vpop.xlane.xlu1 %362 }
 0x262   :  { %v367_v29 = vmul.f32 0.03125, %v363_v28 }
 0x264   :  { %v369_v30 = vadd.f32 1e-05, %v367_v29 }
 0x265   :  { %v366_v31 = vpop.xlane.xlu1 %365 }
 0x266   :  { %10446 = vrsqrt.f32 %v369_v30  ;;  %v368_v32 = vmul.f32 0.03125, %v366_v31 }
 0x268   :  { %v370_v33 = vadd.f32 1e-05, %v368_v32 }
 0x26a   :  { %10448 = vrsqrt.f32 %v370_v33 }
 0x270   :  { %v10447_v34 = vpop.eup %10446 }
 0x271   :  { %v373_v36 = vmul.f32 %v10447_v34, %v357_v6 }
 0x273   :  { %v382_v38 = vmul.f32 %v9215_v35, %v373_v36 }
 0x274   :  { %v10449_v39 = vpop.eup %10448 }
 0x275   :  { %v374_v40 = vmul.f32 %v10449_v39, %v358_v10  ;;  %v391_v41 = vadd.f32 %v9216_v37, %v382_v38 }
 0x277   :  { %v383_v42 = vmul.f32 %v9215_v35, %v374_v40  ;;  %9684 = vmatprep.mubr.msk.f32.mxu0 %vm266_vm0, %v391_v41 }
 0x279   :  { %v392_v43 = vadd.f32 %v9216_v37, %v383_v42 }
 0x27b   :  { %9685 = vmatmul.mubr.msk.f32.vlgmr.msra.gmra.mrb[2].mxu0 %vm266_vm0, %v392_v43 }
 0x27c   :  { %9689 = vmatprep.mubr.msk.f32.mxu0 %vm10986_vm1, %v10985_v48 }
 0x34e   :  { %v9686_v50 = vpop.f32.mrb[2].mxu0 }
 0x34f   :  { %v11368_v51 = vadd.f32 %v9686_v50, %v9217_v49  ;;  %v476_v52 = vpop.f32.mrb[3].mxu0 }
 0x350   :  { %v11370_v53 = vadd.f32 %v9217_v49, %v476_v52 }
 0x352   :  { %486 = vrot.lane.b32.xlu0 %v11370_v53, %s10987_s9 }
 0x356   :  { %654 = vrot.lane.b32.xlu0 %v11370_v53, %s10988_s1 }
 0x3c4   :  { %v487_v54 = vpop.permute.xlu0 %486 }
 0x3c5   :  { %9688 = vmatpush3.xpose.msk.msra.mxu0 %vm488_vm2, %v487_v54 }
 0x3c6   :  { %9692 = vmatprep.subr.mxu0 %v10985_v48 }
 0x3c8   :  { %9690 = vmatmul.mubr.msk.f32.vlgmr.msra.gmra.mrb[4].mxu0 %vm488_vm2, %v11370_v53  ;;  %v655_v3 = vpop.permute.xlu0 %654 }
 0x3c9   :  { %9694 = vmatprep.mubr.msk.f32.mxu0 %vm10986_vm1, %v10985_v48 }
 0x49b   :  { %v559_v55 = vpop.f32.mrb[4].mxu0 }
 0x49c   :  { %v9691_v56 = vpop.f32.mrb[5].mxu0  ;;  %v563_v57 = vsel %vm488_vm2, %v559_v55, -inf }
 0x49d   :  { %564 = vmax.xlane.f32.xlu1 %v563_v57 }
 0x4ae   :  { %575 = vrot.lane.b32.xlu1 %v11370_v53, %s10989_s19 }
 0x52a   :  { %v565_v58 = vpop.xlane.xlu1 %564 }
 0x52b   :  { %v566_v59 = vsub.f32 %v559_v55, %v565_v58 }
 0x52d   :  { %v567_v60 = vmul.f32 1.442695, %v566_v59 }
 0x52e   :  { %v576_v61 = vpop.permute.xlu1 %575 }
 0x52f   :  { %10450 = vpow2.f32 %v567_v60  ;;  %9693 = vmatpush3.msra.mxu0 %v576_v61 }
 0x530   :  { %9697 = vmatprep.subr.mxu0 %v10985_v48 }
 0x539   :  { %v10451_v62 = vpop.eup %10450 }
 0x53a   :  { %v569_v63 = vsel %vm488_vm2, %v10451_v62, 0.0 }
 0x53b   :  { %570 = vadd.xlane.f32.xlu1 %v569_v63 }
 0x54c   :  { %652 = vrot.lane.b32.xlu1 %v11370_v53, %s10990_s24 }
 0x5c8   :  { %v571_v0 = vpop.xlane.xlu1 %570 }
 0x5c9   :  { %10452 = vrcp.f32 %v571_v0 }
 0x5cc   :  { %v653_v4 = vpop.permute.xlu1 %652 }
 0x5d3   :  { %v10453_v1 = vpop.eup %10452 }
 0x5d4   :  { %v573_v2 = vmul.f32 %v10453_v1, %v10451_v62 }
 0x5d6   :  { %9695 = vmatmul.mubr.msk.f32.vlgmr.msra.gmra.mrb[6].mxu0 %vm488_vm2, %v573_v2  ;;  %574 = vst.msk [vmem:[%s12679_s23] sm:$0xff] %vm488_vm2, %v573_v2 }
 0x5d7   :  { %9698 = vmatpush3.xpose.msk.msra.mxu0 %vm488_vm2, %v655_v3  ;;  %9699 = vmatprep.mubr.msk.f32.mxu0 %vm10986_vm1, %v10985_v48 }
 0x5d8   :  { %9707 = vmatprep.subr.mxu0 %v10985_v48 }
 0x5da   :  { %9700 = vmatmul.mubr.msk.f32.vlgmr.msra.gmra.mrb[8].mxu0 %vm488_vm2, %v653_v4 }
 0x5db   :  { %9709 = vmatprep.mubr.msk.f32.mxu0 %vm10986_vm1, %v10985_v48  ;;  %9708 = vmatpush3.msra.mxu0 %v11413_v16 }
 0x5dc   :  { %9717 = vmatprep.subr.mxu0 %v10985_v48 }
 0x6a9   :  { %v647_v5 = vpop.f32.mrb[6].mxu0 }
 0x6aa   :  { %v9696_v6 = vpop.f32.mrb[7].mxu0 }
 0x6ab   :  { %v11504_v6 = vld [vmem:[%s12709_s26 + $0x18] sm:$0xff] }
 0x6ad   :  { %v726_v7 = vpop.f32.mrb[8].mxu0 }
 0x6ae   :  { %v9701_v8 = vpop.f32.mrb[9].mxu0  ;;  %v730_v9 = vsel %vm488_vm2, %v726_v7, -inf }
 0x6af   :  { %731 = vmax.xlane.f32.xlu0 %v730_v9 }
 0x6c5   :  { %747 = vrot.lane.b32.xlu0 %v11370_v53, %s10991_s18 }
 0x6c9   :  { %969 = vrot.lane.b32.xlu0 %v11370_v53, %s10992_s11 }
 0x73c   :  { %v732_v10 = vpop.xlane.xlu0 %731 }
 0x73d   :  { %v733_v11 = vsub.f32 %v726_v7, %v732_v10 }
 0x73f   :  { %v734_v12 = vmul.f32 1.442695, %v733_v11 }
 0x740   :  { %v748_v13 = vpop.permute.xlu0 %747 }
 0x741   :  { %10454 = vpow2.f32 %v734_v12  ;;  %9703 = vmatpush3.msra.mxu1 %v748_v13 }
 0x742   :  { %9712 = vmatprep.subr.mxu1 %v10985_v48 }
 0x744   :  { %v970_v24 = vpop.permute.xlu0 %969 }
 0x74b   :  { %v10455_v14 = vpop.eup %10454 }
 0x74c   :  { %v736_v15 = vsel %vm488_vm2, %v10455_v14, 0.0 }
 0x74d   :  { %737 = vadd.xlane.f32.xlu1 %v736_v15 }
 0x75e   :  { %971 = vrot.lane.b32.xlu1 %v11370_v53, %s10993_s27 }
 0x7da   :  { %v738_v17 = vpop.xlane.xlu1 %737 }
 0x7db   :  { %10456 = vrcp.f32 %v738_v17 }
 0x7de   :  { %v972_v22 = vpop.permute.xlu1 %971 }
 0x7e5   :  { %v10457_v18 = vpop.eup %10456 }
 0x7e6   :  { %v11417_v19 = vmul.f32 %v10457_v18, %v10455_v14 }
 0x7e8   :  { %9705 = vmatmul.mubr.msk.f32.vlgmr.msra.gmra.mrb[0].mxu1 %vm488_vm2, %v11417_v19 }
 0x7e9   :  { %9713 = vmatpush3.msra.mxu1 %v11422_v20  ;;  %9714 = vmatprep.mubr.msk.f32.mxu1 %vm10986_vm1, %v10985_v48 }
 0x7ea   :  { %9722 = vmatprep.subr.mxu1 %v10985_v48 }
 0x7ec   :  { %9715 = vmatmul.mubr.msk.f32.vlgmr.msra.gmra.mrb[2].mxu1 %vm488_vm2, %v647_v5 }
 0x7ed   :  { %9724 = vmatprep.mubr.msk.f32.mxu1 %vm10986_vm1, %v10985_v48 }
 0x8bb   :  { %v818_v21 = vpop.f32.mrb[0].mxu1 }
 0x8bc   :  { %v9706_v23 = vpop.f32.mrb[1].mxu1  ;;  %9710 = vmatmul.mubr.msk.f32.vlgmr.msra.gmra.mrb[10].mxu0 %vm488_vm2, %v818_v21 }
 0x8bd   :  { %9718 = vmatpush3.xpose.msk.msra.mxu0 %vm488_vm2, %v972_v22  ;;  %9719 = vmatprep.mubr.msk.f32.mxu0 %vm10986_vm1, %v10985_v48 }
 0x8be   :  { %9727 = vmatprep.subr.mxu0 %v10985_v48 }
 0x8bf   :  { %v965_v25 = vpop.f32.mrb[2].mxu1 }
 0x8c0   :  { %v9716_v26 = vpop.f32.mrb[3].mxu1  ;;  %9720 = vmatmul.mubr.msk.f32.vlgmr.msra.gmra.mrb[12].mxu0 %vm488_vm2, %v970_v24 }
 0x8c1   :  { %9729 = vmatprep.mubr.msk.f32.mxu0 %vm10986_vm1, %v10985_v48  ;;  %9728 = vmatpush3.msra.mxu0 %v11466_v45 }
 0x8c2   :  { %9737 = vmatprep.subr.mxu0 %v10985_v48 }
 0x98f   :  { %v892_v27 = vpop.f32.mrb[10].mxu0 }
 0x990   :  { %v966_v28 = vadd.f32 %v965_v25, %v892_v27  ;;  %v9711_v29 = vpop.f32.mrb[11].mxu0 }
 0x993   :  { %v1043_v30 = vpop.f32.mrb[12].mxu0 }
 0x994   :  { %v9721_v31 = vpop.f32.mrb[13].mxu0  ;;  %v1047_v32 = vsel %vm488_vm2, %v1043_v30, -inf }
 0x995   :  { %1048 = vmax.xlane.f32.xlu1 %v1047_v32 }
 0x9a6   :  { %1216 = vrot.lane.b32.xlu1 %v11370_v53, %s10994_s6 }
 0x9aa   :  { %1214 = vrot.lane.b32.xlu1 %v11370_v53, %s10995_s28 }
 0x9ae   :  { %1460 = vrot.lane.b32.xlu1 %v11368_v51, %s10987_s9 }
 0xa22   :  { %v1049_v33 = vpop.xlane.xlu1 %1048 }
 0xa23   :  { %v1050_v34 = vsub.f32 %v1043_v30, %v1049_v33 }
 0xa25   :  { %v1051_v35 = vmul.f32 1.442695, %v1050_v34 }
 0xa26   :  { %v1217_v41 = vpop.permute.xlu1 %1216 }
 0xa27   :  { %10458 = vpow2.f32 %v1051_v35 }
 0xa2a   :  { %v1215_v43 = vpop.permute.xlu1 %1214 }
 0xa2e   :  { %v1461_v0 = vpop.permute.xlu1 %1460 }
 0xa31   :  { %v10459_v36 = vpop.eup %10458 }
 0xa32   :  { %v1053_v37 = vsel %vm488_vm2, %v10459_v36, 0.0 }
 0xa33   :  { %1054 = vadd.xlane.f32.xlu0 %v1053_v37 }
 0xa49   :  { %1064 = vrot.lane.b32.xlu0 %v11370_v53, %s10996_s3 }
 0xac0   :  { %v1055_v38 = vpop.xlane.xlu0 %1054 }
 0xac1   :  { %10460 = vrcp.f32 %v1055_v38 }
 0xac4   :  { %v1065_v39 = vpop.permute.xlu0 %1064 }
 0xac5   :  { %9723 = vmatpush3.msra.mxu1 %v1065_v39 }
 0xac6   :  { %9732 = vmatprep.subr.mxu1 %v10985_v48 }
 0xacb   :  { %v10461_v40 = vpop.eup %10460 }
 0xacc   :  { %v11452_v42 = vmul.f32 %v10461_v40, %v10459_v36 }
 0xace   :  { %9725 = vmatmul.mubr.msk.f32.vlgmr.msra.gmra.mrb[4].mxu1 %vm488_vm2, %v11452_v42 }
 0xacf   :  { %9733 = vmatpush3.xpose.msk.msra.mxu1 %vm488_vm2, %v1217_v41  ;;  %9734 = vmatprep.mubr.msk.f32.mxu1 %vm10986_vm1, %v10985_v48 }
 0xad0   :  { %9742 = vmatprep.subr.mxu1 %v10985_v48 }
 0xad2   :  { %9735 = vmatmul.mubr.msk.f32.vlgmr.msra.gmra.mrb[6].mxu1 %vm488_vm2, %v1215_v43 }
 0xad3   :  { %9744 = vmatprep.mubr.msk.f32.mxu1 %vm10986_vm1, %v10985_v48  ;;  %9743 = vmatpush3.msra.mxu1 %v11504_v6 }
 0xad4   :  { %9752 = vmatprep.subr.mxu1 %v10985_v48 }
 0xba1   :  { %v1135_v49 = vpop.f32.mrb[4].mxu1 }
 0xba2   :  { %v9726_v50 = vpop.f32.mrb[5].mxu1  ;;  %9730 = vmatmul.mubr.msk.f32.vlgmr.msra.gmra.mrb[14].mxu0 %vm488_vm2, %v1135_v49 }
 0xba3   :  { %9739 = vmatprep.mubr.msk.f32.mxu0 %vm10986_vm1, %v10985_v48 }
 0xba5   :  { %v1288_v52 = vpop.f32.mrb[6].mxu1 }
 0xba6   :  { %v9736_v54 = vpop.f32.mrb[7].mxu1  ;;  %v1292_v55 = vsel %vm488_vm2, %v1288_v52, -inf }
 0xba7   :  { %1293 = vmax.xlane.f32.xlu0 %v1292_v55 }
 0xbbd   :  { %1309 = vrot.lane.b32.xlu0 %v11370_v53, %s10997_s15 }
 0xbc1   :  { %1628 = vrot.lane.b32.xlu0 %v11368_v51, %s10988_s1 }
 0xc34   :  { %v1294_v56 = vpop.xlane.xlu0 %1293 }
 0xc35   :  { %v1295_v57 = vsub.f32 %v1288_v52, %v1294_v56 }
 0xc37   :  { %v1296_v58 = vmul.f32 1.442695, %v1295_v57 }
 0xc38   :  { %v1310_v59 = vpop.permute.xlu0 %1309 }
 0xc39   :  { %10462 = vpow2.f32 %v1296_v58  ;;  %9738 = vmatpush3.msra.mxu0 %v1310_v59 }
 0xc3a   :  { %9747 = vmatprep.subr.mxu0 %v10985_v48 }
 0xc3c   :  { %v1629_v4 = vpop.permute.xlu0 %1628 }
 0xc43   :  { %v10463_v60 = vpop.eup %10462 }
 0xc44   :  { %v1298_v61 = vsel %vm488_vm2, %v10463_v60, 0.0 }
 0xc45   :  { %1299 = vadd.xlane.f32.xlu1 %v1298_v61 }
 0xc56   :  { %1626 = vrot.lane.b32.xlu1 %v11368_v51, %s10990_s24 }
 0xc75   :  { %v1209_v62 = vpop.f32.mrb[14].mxu0 }
 0xc76   :  { %v1213_v53 = vadd.f32 %v1209_v62, %v966_v28  ;;  %v9731_v63 = vpop.f32.mrb[15].mxu0 }
 0xcd2   :  { %v1300_v1 = vpop.xlane.xlu1 %1299 }
 0xcd3   :  { %10464 = vrcp.f32 %v1300_v1 }
 0xcd6   :  { %v1627_v5 = vpop.permute.xlu1 %1626 }
 0xcdd   :  { %v10465_v2 = vpop.eup %10464 }
 0xcde   :  { %v11482_v3 = vmul.f32 %v10465_v2, %v10463_v60 }
 0xce0   :  { %9740 = vmatmul.mubr.msk.f32.vlgmr.msra.gmra.mrb[16].mxu0 %vm488_vm2, %v11482_v3 }
 0xce1   :  { %9748 = vmatpush3.xpose.msk.msra.mxu0 %vm488_vm2, %v1461_v0  ;;  %9749 = vmatprep.mubr.msk.f32.mxu0 %vm10986_vm1, %v10985_v48 }
 0xce2   :  { %9757 = vmatprep.subr.mxu0 %v10985_v48 }
 0xce4   :  { %9750 = vmatmul.mubr.msk.f32.vlgmr.msra.gmra.mrb[18].mxu0 %vm488_vm2, %v11368_v51 }
 0xce5   :  { %9758 = vmatpush3.xpose.msk.msra.mxu0 %vm488_vm2, %v1629_v4  ;;  %9759 = vmatprep.mubr.msk.f32.mxu0 %vm10986_vm1, %v10985_v48 }
 0xce6   :  { %9767 = vmatprep.subr.mxu0 %v10985_v48 }
 0xce8   :  { %9760 = vmatmul.mubr.msk.f32.vlgmr.msra.gmra.mrb[20].mxu0 %vm488_vm2, %v1627_v5  ;;  %v9256_v5 = vld [vmem:[#allocation8] ss:$0 sm:$0xff] }
 0xce9   :  { %9768 = vmatpush3.msra.mxu0 %v11413_v16  ;;  %9769 = vmatprep.mubr.msk.f32.mxu0 %vm10986_vm1, %v10985_v48 }
 0xcea   :  { %9777 = vmatprep.subr.mxu0 %v10985_v48 }
 0xdb3   :  { %v1380_v7 = vpop.f32.mrb[16].mxu0 }
 0xdb4   :  { %v9741_v8 = vpop.f32.mrb[17].mxu0  ;;  %9745 = vmatmul.mubr.msk.f32.vlgmr.msra.gmra.mrb[8].mxu1 %vm488_vm2, %v1380_v7 }
 0xdb5   :  { %9754 = vmatprep.mubr.msk.f32.mxu1 %vm10986_vm1, %v10985_v48 }
 0xdb7   :  { %v1532_v9 = vpop.f32.mrb[18].mxu0 }
 0xdb8   :  { %v9751_v10 = vpop.f32.mrb[19].mxu0  ;;  %v1536_v11 = vsel %vm488_vm2, %v1532_v9, -inf }
 0xdb9   :  { %1537 = vmax.xlane.f32.xlu0 %v1536_v11 }
 0xdbb   :  { %v1700_v12 = vpop.f32.mrb[20].mxu0 }
 0xdbc   :  { %v9761_v13 = vpop.f32.mrb[21].mxu0  ;;  %v1704_v14 = vsel %vm488_vm2, %v1700_v12, -inf }
 0xdbd   :  { %1705 = vmax.xlane.f32.xlu1 %v1704_v14 }
 0xdce   :  { %1720 = vrot.lane.b32.xlu1 %v11368_v51, %s10991_s18 }
 0xdd2   :  { %1944 = vrot.lane.b32.xlu1 %v11368_v51, %s10993_s27 }
 0xdd6   :  { %1942 = vrot.lane.b32.xlu1 %v11368_v51, %s10992_s11 }
 0xe46   :  { %v1538_v15 = vpop.xlane.xlu0 %1537 }
 0xe47   :  { %v1539_v16 = vsub.f32 %v1532_v9, %v1538_v15 }
 0xe49   :  { %v1540_v17 = vmul.f32 1.442695, %v1539_v16 }
 0xe4a   :  { %v1706_v18 = vpop.xlane.xlu1 %1705 }
 0xe4b   :  { %10466 = vpow2.f32 %v1540_v17  ;;  %v1707_v21 = vsub.f32 %v1700_v12, %v1706_v18 }
 0xe4d   :  { %v1708_v22 = vmul.f32 1.442695, %v1707_v21  ;;  %v11588_v21 = vadd.f32 %v11355_v44, %v11360_v47 }
 0xe4e   :  { %v1721_v35 = vpop.permute.xlu1 %1720 }
 0xe4f   :  { %10468 = vpow2.f32 %v1708_v22 }
 0xe52   :  { %v1945_v40 = vpop.permute.xlu1 %1944 }
 0xe55   :  { %v10467_v23 = vpop.eup %10466 }
 0xe56   :  { %v1542_v24 = vsel %vm488_vm2, %v10467_v23, 0.0 }
 0xe57   :  { %1543 = vadd.xlane.f32.xlu0 %v1542_v24 }
 0xe59   :  { %v10469_v25 = vpop.eup %10468 }
 0xe5a   :  { %v1710_v26 = vsel %vm488_vm2, %v10469_v25, 0.0 }
 0xe5b   :  { %1711 = vadd.xlane.f32.xlu0 %v1710_v26 }
 0xe71   :  { %1549 = vrot.lane.b32.xlu0 %v11368_v51, %s10989_s19 }
 0xe87   :  { %v1454_v27 = vpop.f32.mrb[8].mxu1 }
 0xe88   :  { %v11523_v28 = vadd.f32 %v1454_v27, %v1213_v53  ;;  %v9746_v29 = vpop.f32.mrb[9].mxu1 }
 0xe8a   :  { %v2437_v8 = vadd.f32 %v9256_v5, %v11523_v28 }
 0xee4   :  { %v1544_v30 = vpop.xlane.xlu0 %1543 }
 0xee5   :  { %10470 = vrcp.f32 %v1544_v30 }
 0xee8   :  { %v1712_v31 = vpop.xlane.xlu0 %1711 }
 0xee9   :  { %10472 = vrcp.f32 %v1712_v31 }
 0xeec   :  { %v1550_v32 = vpop.permute.xlu0 %1549 }
 0xeed   :  { %9753 = vmatpush3.msra.mxu1 %v1550_v32 }
 0xeee   :  { %9762 = vmatprep.subr.mxu1 %v10985_v48 }
 0xeef   :  { %v10471_v33 = vpop.eup %10470 }
 0xef0   :  { %v1546_v34 = vmul.f32 %v10471_v33, %v10467_v23 }
 0xef2   :  { %9755 = vmatmul.mubr.msk.f32.vlgmr.msra.gmra.mrb[10].mxu1 %vm488_vm2, %v1546_v34  ;;  %9238 = vst.msk [vmem:[%s12679_s23 + $0x8] sm:$0xff] %vm488_vm2, %v1546_v34 }
 0xef3   :  { %v10473_v36 = vpop.eup %10472  ;;  %9763 = vmatpush3.msra.mxu1 %v1721_v35  ;;  %9764 = vmatprep.mubr.msk.f32.mxu1 %vm10986_vm1, %v10985_v48 }
 0xef4   :  { %v11533_v37 = vmul.f32 %v10473_v36, %v10469_v25  ;;  %9772 = vmatprep.subr.mxu1 %v10985_v48 }
 0xef6   :  { %9765 = vmatmul.mubr.msk.f32.vlgmr.msra.gmra.mrb[12].mxu1 %vm488_vm2, %v11533_v37 }
 0xef7   :  { %9773 = vmatpush3.msra.mxu1 %v11422_v20  ;;  %9774 = vmatprep.mubr.msk.f32.mxu1 %vm10986_vm1, %v10985_v48  ;;  %v1943_v20 = vpop.permute.xlu1 %1942 }
 0xef8   :  { %9782 = vmatprep.subr.mxu1 %v10985_v48 }
 0xfc5   :  { %v1621_v38 = vpop.f32.mrb[10].mxu1 }
 0xfc6   :  { %v9756_v39 = vpop.f32.mrb[11].mxu1  ;;  %9775 = vmatmul.mubr.msk.f32.vlgmr.msra.gmra.mrb[14].mxu1 %vm488_vm2, %v1621_v38 }
 0xfc7   :  { %9784 = vmatprep.mubr.msk.f32.mxu1 %vm10986_vm1, %v10985_v48 }
 0xfc9   :  { %v1791_v41 = vpop.f32.mrb[12].mxu1 }
 0xfca   :  { %v9766_v43 = vpop.f32.mrb[13].mxu1  ;;  %9770 = vmatmul.mubr.msk.f32.vlgmr.msra.gmra.mrb[22].mxu0 %vm488_vm2, %v1791_v41 }
 0xfcb   :  { %9778 = vmatpush3.xpose.msk.msra.mxu0 %vm488_vm2, %v1945_v40  ;;  %9779 = vmatprep.mubr.msk.f32.mxu0 %vm10986_vm1, %v10985_v48 }
 0xfcc   :  { %9787 = vmatprep.subr.mxu0 %v10985_v48 }
 0xfce   :  { %9780 = vmatmul.mubr.msk.f32.vlgmr.msra.gmra.mrb[24].mxu0 %vm488_vm2, %v1943_v20 }
 0xfcf   :  { %9788 = vmatpush3.msra.mxu0 %v11466_v45  ;;  %9789 = vmatprep.mubr.msk.f32.mxu0 %vm10986_vm1, %v10985_v48 }
 0xfd0   :  { %9797 = vmatprep.subr.mxu0 %v10985_v48 }
0x1099   :  { %v1938_v49 = vpop.f32.mrb[14].mxu1 }
0x109a   :  { %v9776_v50 = vpop.f32.mrb[15].mxu1 }
0x109d   :  { %v1865_v52 = vpop.f32.mrb[22].mxu0 }
0x109e   :  { %v1939_v54 = vadd.f32 %v1938_v49, %v1865_v52  ;;  %v9771_v55 = vpop.f32.mrb[23].mxu0 }
0x10a1   :  { %v2016_v56 = vpop.f32.mrb[24].mxu0 }
0x10a2   :  { %v9781_v57 = vpop.f32.mrb[25].mxu0  ;;  %v2020_v58 = vsel %vm488_vm2, %v2016_v56, -inf }
0x10a3   :  { %2021 = vmax.xlane.f32.xlu0 %v2020_v58  ;;  %v9258_v58 = vld [vmem:[#allocation22] ss:$0 sm:$0xff] }
0x10b9   :  { %2036 = vrot.lane.b32.xlu0 %v11368_v51, %s10996_s3 }
0x10bd   :  { %2186 = vrot.lane.b32.xlu0 %v11368_v51, %s10995_s28 }
0x1130   :  { %v2022_v45 = vpop.xlane.xlu0 %2021 }
0x1131   :  { %v2023_v59 = vsub.f32 %v2016_v56, %v2022_v45  ;;  %v9257_v56 = vld [vmem:[#allocation20] ss:$0 sm:$0xff] }
0x1133   :  { %v2024_v60 = vmul.f32 1.442695, %v2023_v59 }
0x1134   :  { %v2037_v61 = vpop.permute.xlu0 %2036 }
0x1135   :  { %10474 = vpow2.f32 %v2024_v60  ;;  %9783 = vmatpush3.msra.mxu1 %v2037_v61  ;;  %v2485_v60 = vld [vmem:[%s12664_s8] sm:$0xff]  ;;  %v2486_v61 = vld [vmem:[%s12664_s8 + $0x8] sm:$0xff] }
0x1136   :  { %9792 = vmatprep.subr.mxu1 %v10985_v48 }
0x1138   :  { %v2187_v4 = vpop.permute.xlu0 %2186 }
0x113f   :  { %v10475_v62 = vpop.eup %10474 }
0x1140   :  { %v2026_v53 = vsel %vm488_vm2, %v10475_v62, 0.0 }
0x1141   :  { %2027 = vadd.xlane.f32.xlu1 %v2026_v53  ;;  %v2487_v53 = vld [vmem:[%s12664_s8 + $0x10] sm:$0xff] }
0x1152   :  { %2188 = vrot.lane.b32.xlu1 %v11368_v51, %s10994_s6 }
0x11ce   :  { %v2028_v63 = vpop.xlane.xlu1 %2027 }
0x11cf   :  { %10476 = vrcp.f32 %v2028_v63  ;;  %v2488_v63 = vld [vmem:[%s12664_s8 + $0x18] sm:$0xff] }
0x11d2   :  { %v2189_v2 = vpop.permute.xlu1 %2188 }
0x11d9   :  { %v10477_v0 = vpop.eup %10476 }
0x11da   :  { %v11564_v1 = vmul.f32 %v10477_v0, %v10475_v62  ;;  %v10308_v62 = vpack.c.bf16 %v2486_v61, %v2485_v60  ;;  %v10312_v0 = vpack.c.bf16 %v2488_v63, %v2487_v53 }
0x11dc   :  { %9785 = vmatmul.mubr.msk.f32.vlgmr.msra.gmra.mrb[16].mxu1 %vm488_vm2, %v11564_v1 }
0x11dd   :  { %9793 = vmatpush3.xpose.msk.msra.mxu1 %vm488_vm2, %v2189_v2  ;;  %9794 = vmatprep.mubr.msk.f32.mxu1 %vm10986_vm1, %v10985_v48 }
0x11de   :  { %9802 = vmatprep.subr.mxu1 %v10985_v48 }
0x11e0   :  { %9795 = vmatmul.mubr.msk.f32.vlgmr.msra.gmra.mrb[18].mxu1 %vm488_vm2, %v2187_v4 }
0x11e1   :  { %9803 = vmatpush3.msra.mxu1 %v11504_v6  ;;  %9804 = vmatprep.mubr.msk.f32.mxu1 %vm10986_vm1, %v10985_v48  ;;  %v2439_v6 = vmul.f32 2.0, %v2437_v8 }
0x11e2   :  { %9818 = vmatprep.subr.mxu1 %v10985_v48 }
0x11e3   :  { %v2441_v13 = vsel %vm266_vm0, %v2439_v6, 0.0 }
0x12af   :  { %v2107_v7 = vpop.f32.mrb[16].mxu1 }
0x12b0   :  { %v9786_v9 = vpop.f32.mrb[17].mxu1  ;;  %9790 = vmatmul.mubr.msk.f32.vlgmr.msra.gmra.mrb[26].mxu0 %vm488_vm2, %v2107_v7 }
0x12b1   :  { %9799 = vmatprep.mubr.msk.f32.mxu0 %vm10986_vm1, %v10985_v48 }
0x12b3   :  { %v2260_v10 = vpop.f32.mrb[18].mxu1 }
0x12b4   :  { %v9796_v11 = vpop.f32.mrb[19].mxu1  ;;  %v2264_v12 = vsel %vm488_vm2, %v2260_v10, -inf }
0x12b5   :  { %2265 = vmax.xlane.f32.xlu1 %v2264_v12  ;;  %v9259_v11 = vld [vmem:[#allocation11] ss:$0 sm:$0xff] }
0x12b9   :  { %2442 = vadd.xlane.f32.xlu1 %v2441_v13 }
0x1342   :  { %v2266_v14 = vpop.xlane.xlu1 %2265 }
0x1343   :  { %v2267_v15 = vsub.f32 %v2260_v10, %v2266_v14 }
0x1345   :  { %v2268_v16 = vmul.f32 1.442695, %v2267_v15 }
0x1346   :  { %v2443_v44 = vpop.xlane.xlu1 %2442 }
0x1347   :  { %10478 = vpow2.f32 %v2268_v16  ;;  %v2447_v47 = vmul.f32 0.03125, %v2443_v44 }
0x1349   :  { %v2449_v33 = vsub.f32 %v2439_v6, %v2447_v47 }
0x134b   :  { %v2451_v38 = vmul.f32 %v2449_v33, %v2449_v33 }
0x134d   :  { %v2453_v39 = vsel %vm266_vm0, %v2451_v38, 0.0 }
0x1351   :  { %v10479_v17 = vpop.eup %10478 }
0x1352   :  { %v2270_v18 = vsel %vm488_vm2, %v10479_v17, 0.0 }
0x1353   :  { %2271 = vadd.xlane.f32.xlu0 %v2270_v18 }
0x1369   :  { %2280 = vrot.lane.b32.xlu0 %v11368_v51, %s10997_s15 }
0x136d   :  { %2746 = vrot.lane.b32.xlu0 %v11588_v21, %s10990_s24 }
0x1383   :  { %v2181_v22 = vpop.f32.mrb[26].mxu0 }
0x1384   :  { %v2185_v23 = vadd.f32 %v2181_v22, %v1939_v54  ;;  %v9791_v24 = vpop.f32.mrb[27].mxu0 }
0x13e0   :  { %v2272_v25 = vpop.xlane.xlu0 %2271 }
0x13e1   :  { %10480 = vrcp.f32 %v2272_v25 }
0x13e4   :  { %v2281_v26 = vpop.permute.xlu0 %2280 }
0x13e5   :  { %9798 = vmatpush3.msra.mxu0 %v2281_v26 }
0x13e6   :  { %10309 = vmatprep.subr.bf16.mxu0 %v10308_v62 }
0x13e8   :  { %v11634_v16 = vpop.permute.xlu0 %2746 }
0x13eb   :  { %v10481_v27 = vpop.eup %10480 }
0x13ec   :  { %v11592_v28 = vmul.f32 %v10481_v27, %v10479_v17 }
0x13ee   :  { %9800 = vmatmul.mubr.msk.f32.vlgmr.msra.gmra.mrb[28].mxu0 %vm488_vm2, %v11592_v28 }
0x13ef   :  { %10311 = vmatpush3.bf16.msra.mxu0 %v10308_v62 }
0x13f0   :  { %10313 = vmatprep.subr.bf16.mxu0 %v10312_v0 }
0x13f3   :  { %10315 = vmatpush3.bf16.msra.mxu0 %v10312_v0 }
0x13f4   :  { %9828 = vmatprep.subr.mxu0 %v10985_v48 }
0x14c1   :  { %v2351_v51 = vpop.f32.mrb[28].mxu0 }
0x14c2   :  { %v9801_v29 = vpop.f32.mrb[29].mxu0  ;;  %9805 = vmatmul.mubr.msk.f32.vlgmr.msra.gmra.mrb[20].mxu1 %vm488_vm2, %v2351_v51 }
0x14c3   :  { %9820 = vmatprep.mubr.msk.f32.mxu1 %vm10986_vm1, %v10985_v48 }
0x1595   :  { %v2425_v30 = vpop.f32.mrb[20].mxu1 }
0x1596   :  { %v2429_v31 = vadd.f32 %v2425_v30, %v2185_v23  ;;  %v9806_v32 = vpop.f32.mrb[21].mxu1 }
0x1598   :  { %v2438_v34 = vadd.f32 %v9256_v5, %v2429_v31 }
0x159a   :  { %v2440_v35 = vmul.f32 2.0, %v2438_v34 }
0x159c   :  { %v2444_v36 = vsel %vm266_vm0, %v2440_v35, 0.0 }
0x159d   :  { %2445 = vadd.xlane.f32.xlu1 %v2444_v36 }
0x15a1   :  { %2454 = vadd.xlane.f32.xlu1 %v2453_v39 }
0x162a   :  { %v2446_v40 = vpop.xlane.xlu1 %2445 }
0x162b   :  { %v2448_v41 = vmul.f32 0.03125, %v2446_v40 }
0x162d   :  { %v2450_v43 = vsub.f32 %v2440_v35, %v2448_v41 }
0x162e   :  { %v2455_v20 = vpop.xlane.xlu1 %2454 }
0x162f   :  { %v2459_v49 = vmul.f32 0.03125, %v2455_v20  ;;  %v2452_v50 = vmul.f32 %v2450_v43, %v2450_v43  ;;  %v11669_v20 = vld [vmem:[%s12666_s10] sm:$0xff] }
0x1631   :  { %v2461_v52 = vadd.f32 1e-05, %v2459_v49  ;;  %v2456_v54 = vsel %vm266_vm0, %v2452_v50, 0.0  ;;  %v11675_v49 = vld [vmem:[%s12666_s10 + $0x8] sm:$0xff] }
0x1632   :  { %2457 = vadd.xlane.f32.xlu1 %v2456_v54 }
0x1633   :  { %10482 = vrsqrt.f32 %v2461_v52 }
0x163d   :  { %v10483_v55 = vpop.eup %10482 }
0x163e   :  { %v2465_v57 = vmul.f32 %v10483_v55, %v2449_v33 }
0x1640   :  { %v2474_v45 = vmul.f32 %v9257_v56, %v2465_v57 }
0x1642   :  { %v2483_v59 = vadd.f32 %v9258_v58, %v2474_v45 }
0x1644   :  { %9815 = vmatprep.mubr.msk.f32.mxu0 %vm266_vm0, %v2483_v59 }
0x16bf   :  { %v2458_v2 = vpop.xlane.xlu1 %2457 }
0x16c0   :  { %v2460_v4 = vmul.f32 0.03125, %v2458_v2 }
0x16c2   :  { %v2462_v5 = vadd.f32 1e-05, %v2460_v4 }
0x16c4   :  { %10484 = vrsqrt.f32 %v2462_v5 }
0x16ce   :  { %v10485_v7 = vpop.eup %10484 }
0x16cf   :  { %v2466_v8 = vmul.f32 %v10485_v7, %v2450_v43 }
0x16d1   :  { %v2475_v9 = vmul.f32 %v9257_v56, %v2466_v8 }
0x16d3   :  { %v2484_v10 = vadd.f32 %v9258_v58, %v2475_v9 }
0x16d5   :  { %9816 = vmatmul.mubr.msk.f32.vlgmr.msra.gmra.mrb[30].mxu0 %vm266_vm0, %v2484_v10 }
0x16d6   :  { %9830 = vmatprep.mubr.msk.f32.mxu0 %vm10986_vm1, %v10985_v48 }
0x17a8   :  { %v9817_v12 = vpop.f32.mrb[30].mxu0 }
0x17a9   :  { %v11619_v6 = vadd.f32 %v9817_v12, %v9259_v11  ;;  %v2568_v13 = vpop.f32.mrb[31].mxu0 }
0x17aa   :  { %v11621_v14 = vadd.f32 %v9259_v11, %v2568_v13 }
0x17ac   :  { %2748 = vrot.lane.b32.xlu1 %v11621_v14, %s10990_s24  ;;  %9819 = vmatpush3.xpose.msk.msra.mxu1 %vm488_vm2, %v11621_v14 }
0x17ad   :  { %9823 = vmatprep.subr.mxu1 %v10985_v48 }
0x17af   :  { %9821 = vmatmul.mubr.msk.f32.vlgmr.msra.gmra.mrb[22].mxu1 %vm488_vm2, %v11588_v21 }
0x17b0   :  { %9825 = vmatprep.mubr.msk.f32.mxu1 %vm10986_vm1, %v10985_v48 }
0x181e   :  { %v2749_v15 = vpop.permute.xlu1 %2748 }
0x181f   :  { %9829 = vmatpush3.xpose.msk.msra.mxu0 %vm488_vm2, %v2749_v15  ;;  %v11720_v15 = vld [vmem:[%s12666_s10 + $0x10] sm:$0xff] }
0x1820   :  { %9838 = vmatprep.subr.mxu0 %v10985_v48 }
0x1822   :  { %9831 = vmatmul.mubr.msk.f32.vlgmr.msra.gmra.mrb[32].mxu0 %vm488_vm2, %v11634_v16 }
0x1823   :  { %9840 = vmatprep.mubr.msk.f32.mxu0 %vm10986_vm1, %v10985_v48  ;;  %9839 = vmatpush3.msra.mxu0 %v11675_v49 }
0x1824   :  { %9848 = vmatprep.subr.mxu0 %v10985_v48 }
0x1882   :  { %v2649_v17 = vpop.f32.mrb[22].mxu1 }
0x1883   :  { %v9822_v18 = vpop.f32.mrb[23].mxu1  ;;  %v2653_v22 = vsel %vm488_vm2, %v2649_v17, -inf }
0x1884   :  { %2654 = vmax.xlane.f32.xlu0 %v2653_v22 }
0x18f5   :  { %v2820_v23 = vpop.f32.mrb[32].mxu0 }
0x18f6   :  { %v9832_v24 = vpop.f32.mrb[33].mxu0  ;;  %v2824_v25 = vsel %vm488_vm2, %v2820_v23, -inf }
0x18f7   :  { %2825 = vmax.xlane.f32.xlu1 %v2824_v25 }
0x1908   :  { %2841 = vrot.lane.b32.xlu1 %v11621_v14, %s10988_s1 }
0x190c   :  { %3063 = vrot.lane.b32.xlu1 %v11588_v21, %s10992_s11 }
0x1911   :  { %v2655_v26 = vpop.xlane.xlu0 %2654 }
0x1912   :  { %v2656_v27 = vsub.f32 %v2649_v17, %v2655_v26 }
0x1914   :  { %v2657_v51 = vmul.f32 1.442695, %v2656_v27 }
0x1916   :  { %10486 = vpow2.f32 %v2657_v51 }
0x1920   :  { %v10487_v29 = vpop.eup %10486 }
0x1921   :  { %v2659_v44 = vsel %vm488_vm2, %v10487_v29, 0.0 }
0x1922   :  { %2660 = vadd.xlane.f32.xlu0 %v2659_v44 }
0x1984   :  { %v2826_v47 = vpop.xlane.xlu1 %2825 }
0x1985   :  { %v2827_v30 = vsub.f32 %v2820_v23, %v2826_v47 }
0x1987   :  { %v2828_v31 = vmul.f32 1.442695, %v2827_v30 }
0x1988   :  { %v2842_v40 = vpop.permute.xlu1 %2841 }
0x1989   :  { %10488 = vpow2.f32 %v2828_v31 }
0x198c   :  { %v11688_v57 = vpop.permute.xlu1 %3063 }
0x1993   :  { %v10489_v32 = vpop.eup %10488 }
0x1994   :  { %v2830_v33 = vsel %vm488_vm2, %v10489_v32, 0.0 }
0x1995   :  { %2831 = vadd.xlane.f32.xlu0 %v2830_v33 }
0x19ab   :  { %2670 = vrot.lane.b32.xlu0 %v11621_v14, %s10987_s9 }
0x19af   :  { %3065 = vrot.lane.b32.xlu0 %v11621_v14, %s10992_s11  ;;  %v2661_v34 = vpop.xlane.xlu0 %2660 }
0x19b0   :  { %10490 = vrcp.f32 %v2661_v34 }
0x19ba   :  { %v10491_v36 = vpop.eup %10490 }
0x19bb   :  { %v11652_v39 = vmul.f32 %v10491_v36, %v10487_v29  ;;  %v11762_v36 = vld [vmem:[%s12666_s10 + $0x18] sm:$0xff] }
0x1a22   :  { %v2832_v35 = vpop.xlane.xlu0 %2831 }
0x1a23   :  { %10492 = vrcp.f32 %v2832_v35 }
0x1a26   :  { %v2671_v38 = vpop.permute.xlu0 %2670 }
0x1a27   :  { %9824 = vmatpush3.msra.mxu1 %v2671_v38 }
0x1a28   :  { %9826 = vmatmul.mubr.msk.f32.vlgmr.msra.gmra.mrb[24].mxu1 %vm488_vm2, %v11652_v39  ;;  %9833 = vmatprep.subr.mxu1 %v10985_v48 }
0x1a29   :  { %9834 = vmatpush3.msra.mxu1 %v2842_v40  ;;  %9835 = vmatprep.mubr.msk.f32.mxu1 %vm10986_vm1, %v10985_v48 }
0x1a2a   :  { %9843 = vmatprep.subr.mxu1 %v10985_v48  ;;  %v3066_v55 = vpop.permute.xlu0 %3065 }
0x1a2d   :  { %v10493_v41 = vpop.eup %10492 }
0x1a2e   :  { %v11660_v43 = vmul.f32 %v10493_v41, %v10489_v32 }
0x1a30   :  { %9836 = vmatmul.mubr.msk.f32.vlgmr.msra.gmra.mrb[26].mxu1 %vm488_vm2, %v11660_v43 }
0x1a31   :  { %9845 = vmatprep.mubr.msk.f32.mxu1 %vm10986_vm1, %v10985_v48  ;;  %9844 = vmatpush3.msra.mxu1 %v11669_v20 }
0x1a32   :  { %9853 = vmatprep.subr.mxu1 %v10985_v48 }
0x1afb   :  { %v2741_v50 = vpop.f32.mrb[24].mxu1 }
0x1afc   :  { %v9827_v52 = vpop.f32.mrb[25].mxu1  ;;  %9846 = vmatmul.mubr.msk.f32.vlgmr.msra.gmra.mrb[28].mxu1 %vm488_vm2, %v2741_v50 }
0x1afd   :  { %9855 = vmatprep.mubr.msk.f32.mxu1 %vm10986_vm1, %v10985_v48 }
0x1b03   :  { %v2912_v54 = vpop.f32.mrb[26].mxu1 }
0x1b04   :  { %v9837_v56 = vpop.f32.mrb[27].mxu1  ;;  %9841 = vmatmul.mubr.msk.f32.vlgmr.msra.gmra.mrb[34].mxu0 %vm488_vm2, %v2912_v54 }
0x1b05   :  { %9849 = vmatpush3.xpose.msk.msra.mxu0 %vm488_vm2, %v3066_v55  ;;  %9850 = vmatprep.mubr.msk.f32.mxu0 %vm10986_vm1, %v10985_v48 }
0x1b06   :  { %9858 = vmatprep.subr.mxu0 %v10985_v48 }
0x1b08   :  { %9851 = vmatmul.mubr.msk.f32.vlgmr.msra.gmra.mrb[36].mxu0 %vm488_vm2, %v11688_v57 }
0x1b09   :  { %9860 = vmatprep.mubr.msk.f32.mxu0 %vm10986_vm1, %v10985_v48  ;;  %9859 = vmatpush3.msra.mxu0 %v11720_v15 }
0x1b0a   :  { %9868 = vmatprep.subr.mxu0 %v10985_v48 }
0x1bcf   :  { %v3059_v58 = vpop.f32.mrb[28].mxu1 }
0x1bd0   :  { %v9847_v45 = vpop.f32.mrb[29].mxu1 }
0x1bd7   :  { %v2986_v59 = vpop.f32.mrb[34].mxu0 }
0x1bd8   :  { %v3060_v60 = vadd.f32 %v3059_v58, %v2986_v59  ;;  %v9842_v61 = vpop.f32.mrb[35].mxu0 }
0x1bdb   :  { %v3137_v62 = vpop.f32.mrb[36].mxu0 }
0x1bdc   :  { %v9852_v53 = vpop.f32.mrb[37].mxu0  ;;  %v3141_v63 = vsel %vm488_vm2, %v3137_v62, -inf }
0x1bdd   :  { %3142 = vmax.xlane.f32.xlu0 %v3141_v63 }
0x1bf3   :  { %3158 = vrot.lane.b32.xlu0 %v11621_v14, %s10993_s27 }
0x1bf7   :  { %3308 = vrot.lane.b32.xlu0 %v11588_v21, %s10995_s28 }
0x1c6a   :  { %v3143_v0 = vpop.xlane.xlu0 %3142 }
0x1c6b   :  { %v3144_v2 = vsub.f32 %v3137_v62, %v3143_v0 }
0x1c6d   :  { %v3145_v4 = vmul.f32 1.442695, %v3144_v2 }
0x1c6e   :  { %v3159_v5 = vpop.permute.xlu0 %3158 }
0x1c6f   :  { %10494 = vpow2.f32 %v3145_v4  ;;  %9854 = vmatpush3.msra.mxu1 %v3159_v5 }
0x1c70   :  { %9863 = vmatprep.subr.mxu1 %v10985_v48 }
0x1c72   :  { %v11711_v13 = vpop.permute.xlu0 %3308 }
0x1c79   :  { %v10495_v7 = vpop.eup %10494 }
0x1c7a   :  { %v3147_v8 = vsel %vm488_vm2, %v10495_v7, 0.0 }
0x1c7b   :  { %3148 = vadd.xlane.f32.xlu1 %v3147_v8 }
0x1c8c   :  { %3310 = vrot.lane.b32.xlu1 %v11621_v14, %s10995_s28 }
0x1d08   :  { %v3149_v9 = vpop.xlane.xlu1 %3148 }
0x1d09   :  { %10496 = vrcp.f32 %v3149_v9 }
0x1d0c   :  { %v3311_v12 = vpop.permute.xlu1 %3310 }
0x1d13   :  { %v10497_v10 = vpop.eup %10496 }
0x1d14   :  { %v11703_v11 = vmul.f32 %v10497_v10, %v10495_v7 }
0x1d16   :  { %9856 = vmatmul.mubr.msk.f32.vlgmr.msra.gmra.mrb[30].mxu1 %vm488_vm2, %v11703_v11 }
0x1d17   :  { %9864 = vmatpush3.xpose.msk.msra.mxu1 %vm488_vm2, %v3311_v12  ;;  %9865 = vmatprep.mubr.msk.f32.mxu1 %vm10986_vm1, %v10985_v48 }
0x1d18   :  { %9873 = vmatprep.subr.mxu1 %v10985_v48 }
0x1d1a   :  { %9866 = vmatmul.mubr.msk.f32.vlgmr.msra.gmra.mrb[32].mxu1 %vm488_vm2, %v11711_v13 }
0x1d1b   :  { %9875 = vmatprep.mubr.msk.f32.mxu1 %vm10986_vm1, %v10985_v48  ;;  %9874 = vmatpush3.msra.mxu1 %v11762_v36 }
0x1d1c   :  { %9883 = vmatprep.subr.mxu1 %v10985_v48 }
0x1de9   :  { %v3229_v17 = vpop.f32.mrb[30].mxu1 }
0x1dea   :  { %v9857_v18 = vpop.f32.mrb[31].mxu1  ;;  %9861 = vmatmul.mubr.msk.f32.vlgmr.msra.gmra.mrb[38].mxu0 %vm488_vm2, %v3229_v17 }
0x1deb   :  { %9870 = vmatprep.mubr.msk.f32.mxu0 %vm10986_vm1, %v10985_v48 }
0x1ded   :  { %v3382_v22 = vpop.f32.mrb[32].mxu1 }
0x1dee   :  { %v9867_v23 = vpop.f32.mrb[33].mxu1  ;;  %v3386_v24 = vsel %vm488_vm2, %v3382_v22, -inf }
0x1def   :  { %3387 = vmax.xlane.f32.xlu1 %v3386_v24 }
0x1e00   :  { %3723 = vrot.lane.b32.xlu1 %v11619_v6, %s10990_s24 }
0x1e04   :  { %3721 = vrot.lane.b32.xlu1 %v11358_v46, %s10990_s24 }
0x1e7c   :  { %v3388_v25 = vpop.xlane.xlu1 %3387 }
0x1e7d   :  { %v3389_v26 = vsub.f32 %v3382_v22, %v3388_v25 }
0x1e7f   :  { %v3390_v27 = vmul.f32 1.442695, %v3389_v26 }
0x1e80   :  { %v3724_v35 = vpop.permute.xlu1 %3723 }
0x1e81   :  { %10498 = vpow2.f32 %v3390_v27 }
0x1e8b   :  { %v10499_v51 = vpop.eup %10498 }
0x1e8c   :  { %v3392_v29 = vsel %vm488_vm2, %v10499_v51, 0.0 }
0x1e8d   :  { %3393 = vadd.xlane.f32.xlu0 %v3392_v29 }
0x1ea3   :  { %3403 = vrot.lane.b32.xlu0 %v11621_v14, %s10994_s6  ;;  %v11751_v14 = vpop.permute.xlu1 %3721 }
0x1ebd   :  { %v3303_v44 = vpop.f32.mrb[38].mxu0 }
0x1ebe   :  { %v3307_v47 = vadd.f32 %v3303_v44, %v3060_v60  ;;  %v9862_v30 = vpop.f32.mrb[39].mxu0 }
0x1f1a   :  { %v3394_v31 = vpop.xlane.xlu0 %3393 }
0x1f1b   :  { %10500 = vrcp.f32 %v3394_v31 }
0x1f1e   :  { %v3404_v32 = vpop.permute.xlu0 %3403 }
0x1f1f   :  { %9869 = vmatpush3.msra.mxu0 %v3404_v32 }
0x1f20   :  { %9878 = vmatprep.subr.mxu0 %v10985_v48 }
0x1f25   :  { %v10501_v33 = vpop.eup %10500 }
0x1f26   :  { %v11736_v34 = vmul.f32 %v10501_v33, %v10499_v51 }
0x1f28   :  { %9871 = vmatmul.mubr.msk.f32.vlgmr.msra.gmra.mrb[40].mxu0 %vm488_vm2, %v11736_v34 }
0x1f29   :  { %9879 = vmatpush3.xpose.msk.msra.mxu0 %vm488_vm2, %v11619_v6  ;;  %9880 = vmatprep.mubr.msk.f32.mxu0 %vm10986_vm1, %v10985_v48 }
0x1f2a   :  { %9888 = vmatprep.subr.mxu0 %v10985_v48 }
0x1f2c   :  { %9881 = vmatmul.mubr.msk.f32.vlgmr.msra.gmra.mrb[42].mxu0 %vm488_vm2, %v11358_v46 }
0x1f2d   :  { %9889 = vmatpush3.xpose.msk.msra.mxu0 %vm488_vm2, %v3724_v35  ;;  %9890 = vmatprep.mubr.msk.f32.mxu0 %vm10986_vm1, %v10985_v48 }
0x1f2e   :  { %9898 = vmatprep.subr.mxu0 %v10985_v48 }
0x1f30   :  { %9891 = vmatmul.mubr.msk.f32.vlgmr.msra.gmra.mrb[44].mxu0 %vm488_vm2, %v11751_v14 }
0x1f31   :  { %9899 = vmatpush3.msra.mxu0 %v11675_v49  ;;  %9900 = vmatprep.mubr.msk.f32.mxu0 %vm10986_vm1, %v10985_v48 }
0x1f32   :  { %9908 = vmatprep.subr.mxu0 %v10985_v48 }
0x1ffb   :  { %v3474_v38 = vpop.f32.mrb[40].mxu0 }
0x1ffc   :  { %v9872_v40 = vpop.f32.mrb[41].mxu0  ;;  %9876 = vmatmul.mubr.msk.f32.vlgmr.msra.gmra.mrb[34].mxu1 %vm488_vm2, %v3474_v38 }
0x1ffd   :  { %9885 = vmatprep.mubr.msk.f32.mxu1 %vm10986_vm1, %v10985_v48 }
0x1fff   :  { %v3625_v41 = vpop.f32.mrb[42].mxu0 }
0x2000   :  { %v9882_v49 = vpop.f32.mrb[43].mxu0  ;;  %v3629_v50 = vsel %vm488_vm2, %v3625_v41, -inf }
0x2001   :  { %3630 = vmax.xlane.f32.xlu0 %v3629_v50 }
0x2003   :  { %v3795_v52 = vpop.f32.mrb[44].mxu0 }
0x2004   :  { %v9892_v54 = vpop.f32.mrb[45].mxu0  ;;  %v3799_v55 = vsel %vm488_vm2, %v3795_v52, -inf }
0x2005   :  { %3800 = vmax.xlane.f32.xlu1 %v3799_v55 }
0x2016   :  { %3815 = vrot.lane.b32.xlu1 %v11619_v6, %s10988_s1 }
0x201a   :  { %4039 = vrot.lane.b32.xlu1 %v11619_v6, %s10992_s11 }
0x201e   :  { %4037 = vrot.lane.b32.xlu1 %v11358_v46, %s10992_s11 }
0x208e   :  { %v3631_v56 = vpop.xlane.xlu0 %3630 }
0x208f   :  { %v3632_v58 = vsub.f32 %v3625_v41, %v3631_v56 }
0x2091   :  { %v3633_v45 = vmul.f32 1.442695, %v3632_v58  ;;  %v9298_v58 = vld [vmem:[#allocation13] ss:$0 sm:$0xff] }
0x2092   :  { %v3801_v59 = vpop.xlane.xlu1 %3800 }
0x2093   :  { %10502 = vpow2.f32 %v3633_v45  ;;  %v3802_v60 = vsub.f32 %v3795_v52, %v3801_v59 }
0x2095   :  { %v3803_v61 = vmul.f32 1.442695, %v3802_v60 }
0x2096   :  { %v3816_v17 = vpop.permute.xlu1 %3815 }
0x2097   :  { %10504 = vpow2.f32 %v3803_v61 }
0x209a   :  { %v4040_v25 = vpop.permute.xlu1 %4039 }
0x209d   :  { %v10503_v62 = vpop.eup %10502 }
0x209e   :  { %v3635_v53 = vsel %vm488_vm2, %v10503_v62, 0.0 }
0x209f   :  { %3636 = vadd.xlane.f32.xlu0 %v3635_v53 }
0x20a1   :  { %v10505_v63 = vpop.eup %10504 }
0x20a2   :  { %v3805_v0 = vsel %vm488_vm2, %v10505_v63, 0.0 }
0x20a3   :  { %3806 = vadd.xlane.f32.xlu0 %v3805_v0 }
0x20b9   :  { %3645 = vrot.lane.b32.xlu0 %v11619_v6, %s10987_s9 }
0x20cf   :  { %v3548_v2 = vpop.f32.mrb[34].mxu1 }
0x20d0   :  { %v11781_v4 = vadd.f32 %v3548_v2, %v3307_v47  ;;  %v9877_v5 = vpop.f32.mrb[35].mxu1 }
0x20d2   :  { %v4532_v59 = vadd.f32 %v9298_v58, %v11781_v4 }
0x212c   :  { %v3637_v7 = vpop.xlane.xlu0 %3636 }
0x212d   :  { %10506 = vrcp.f32 %v3637_v7 }
0x2130   :  { %v3807_v8 = vpop.xlane.xlu0 %3806 }
0x2131   :  { %10508 = vrcp.f32 %v3807_v8 }
0x2134   :  { %v3646_v9 = vpop.permute.xlu0 %3645 }
0x2135   :  { %9884 = vmatpush3.msra.mxu1 %v3646_v9 }
0x2136   :  { %9893 = vmatprep.subr.mxu1 %v10985_v48 }
0x2137   :  { %v10507_v10 = vpop.eup %10506 }
0x2138   :  { %v11784_v12 = vmul.f32 %v10507_v10, %v10503_v62 }
0x213a   :  { %9886 = vmatmul.mubr.msk.f32.vlgmr.msra.gmra.mrb[36].mxu1 %vm488_vm2, %v11784_v12 }
0x213b   :  { %v10509_v18 = vpop.eup %10508  ;;  %9894 = vmatpush3.msra.mxu1 %v3816_v17  ;;  %9895 = vmatprep.mubr.msk.f32.mxu1 %vm10986_vm1, %v10985_v48 }
0x213c   :  { %v11790_v22 = vmul.f32 %v10509_v18, %v10505_v63  ;;  %9903 = vmatprep.subr.mxu1 %v10985_v48  ;;  %v4534_v63 = vmul.f32 2.0, %v4532_v59 }
0x213e   :  { %9896 = vmatmul.mubr.msk.f32.vlgmr.msra.gmra.mrb[38].mxu1 %vm488_vm2, %v11790_v22 }
0x213f   :  { %9904 = vmatpush3.msra.mxu1 %v11669_v20  ;;  %9905 = vmatprep.mubr.msk.f32.mxu1 %vm10986_vm1, %v10985_v48  ;;  %v11807_v20 = vpop.permute.xlu1 %4037 }
0x2140   :  { %9913 = vmatprep.subr.mxu1 %v10985_v48 }
0x220d   :  { %v3716_v23 = vpop.f32.mrb[36].mxu1 }
0x220e   :  { %v9887_v24 = vpop.f32.mrb[37].mxu1  ;;  %9906 = vmatmul.mubr.msk.f32.vlgmr.msra.gmra.mrb[40].mxu1 %vm488_vm2, %v3716_v23 }
0x220f   :  { %9915 = vmatprep.mubr.msk.f32.mxu1 %vm10986_vm1, %v10985_v48 }
0x2211   :  { %v3886_v26 = vpop.f32.mrb[38].mxu1 }
0x2212   :  { %v9897_v27 = vpop.f32.mrb[39].mxu1  ;;  %9901 = vmatmul.mubr.msk.f32.vlgmr.msra.gmra.mrb[46].mxu0 %vm488_vm2, %v3886_v26 }
0x2213   :  { %9909 = vmatpush3.xpose.msk.msra.mxu0 %vm488_vm2, %v4040_v25  ;;  %9910 = vmatprep.mubr.msk.f32.mxu0 %vm10986_vm1, %v10985_v48 }
0x2214   :  { %9918 = vmatprep.subr.mxu0 %v10985_v48 }
0x2216   :  { %9911 = vmatmul.mubr.msk.f32.vlgmr.msra.gmra.mrb[48].mxu0 %vm488_vm2, %v11807_v20 }
0x2217   :  { %9919 = vmatpush3.msra.mxu0 %v11720_v15  ;;  %9920 = vmatprep.mubr.msk.f32.mxu0 %vm10986_vm1, %v10985_v48 }
0x2218   :  { %9928 = vmatprep.subr.mxu0 %v10985_v48 }
0x22e1   :  { %v4033_v51 = vpop.f32.mrb[40].mxu1 }
0x22e2   :  { %v9907_v29 = vpop.f32.mrb[41].mxu1 }
0x22e5   :  { %v3960_v44 = vpop.f32.mrb[46].mxu0 }
0x22e6   :  { %v4034_v47 = vadd.f32 %v4033_v51, %v3960_v44  ;;  %v9902_v30 = vpop.f32.mrb[47].mxu0 }
0x22e9   :  { %v4111_v31 = vpop.f32.mrb[48].mxu0 }
0x22ea   :  { %v9912_v32 = vpop.f32.mrb[49].mxu0  ;;  %v4115_v33 = vsel %vm488_vm2, %v4111_v31, -inf }
0x22eb   :  { %4116 = vmax.xlane.f32.xlu0 %v4115_v33 }
0x2301   :  { %4131 = vrot.lane.b32.xlu0 %v11619_v6, %s10993_s27 }
0x2305   :  { %4281 = vrot.lane.b32.xlu0 %v11358_v46, %s10995_s28 }
0x2378   :  { %v4117_v15 = vpop.xlane.xlu0 %4116 }
0x2379   :  { %v4118_v35 = vsub.f32 %v4111_v31, %v4117_v15 }
0x237b   :  { %v4119_v38 = vmul.f32 1.442695, %v4118_v35 }
0x237c   :  { %v4132_v40 = vpop.permute.xlu0 %4131 }
0x237d   :  { %10510 = vpow2.f32 %v4119_v38  ;;  %9914 = vmatpush3.msra.mxu1 %v4132_v40 }
0x237e   :  { %9923 = vmatprep.subr.mxu1 %v10985_v48 }
0x2380   :  { %v11832_v56 = vpop.permute.xlu0 %4281 }
0x2387   :  { %v10511_v41 = vpop.eup %10510 }
0x2388   :  { %v4121_v49 = vsel %vm488_vm2, %v10511_v41, 0.0 }
0x2389   :  { %4122 = vadd.xlane.f32.xlu1 %v4121_v49 }
0x239a   :  { %4283 = vrot.lane.b32.xlu1 %v11619_v6, %s10995_s28 }
0x2416   :  { %v4123_v50 = vpop.xlane.xlu1 %4122 }
0x2417   :  { %10512 = vrcp.f32 %v4123_v50 }
0x241a   :  { %v4284_v55 = vpop.permute.xlu1 %4283 }
0x2421   :  { %v10513_v52 = vpop.eup %10512 }
0x2422   :  { %v11824_v54 = vmul.f32 %v10513_v52, %v10511_v41 }
0x2424   :  { %9916 = vmatmul.mubr.msk.f32.vlgmr.msra.gmra.mrb[42].mxu1 %vm488_vm2, %v11824_v54 }
0x2425   :  { %9924 = vmatpush3.xpose.msk.msra.mxu1 %vm488_vm2, %v4284_v55  ;;  %9925 = vmatprep.mubr.msk.f32.mxu1 %vm10986_vm1, %v10985_v48 }
0x2426   :  { %9933 = vmatprep.subr.mxu1 %v10985_v48 }
0x2428   :  { %9926 = vmatmul.mubr.msk.f32.vlgmr.msra.gmra.mrb[44].mxu1 %vm488_vm2, %v11832_v56 }
0x2429   :  { %9934 = vmatpush3.msra.mxu1 %v11762_v36  ;;  %9935 = vmatprep.mubr.msk.f32.mxu1 %vm10986_vm1, %v10985_v48  ;;  %v4536_v36 = vsel %vm266_vm0, %v4534_v63, 0.0 }
0x24f7   :  { %v4202_v45 = vpop.f32.mrb[42].mxu1 }
0x24f8   :  { %v9917_v60 = vpop.f32.mrb[43].mxu1  ;;  %9921 = vmatmul.mubr.msk.f32.vlgmr.msra.gmra.mrb[50].mxu0 %vm488_vm2, %v4202_v45  ;;  %v9299_v45 = vld [vmem:[#allocation23] ss:$0 sm:$0xff] }
0x24f9   :  { %9930 = vmatprep.mubr.msk.f32.mxu0 %vm10986_vm1, %v10985_v48  ;;  %v9300_v60 = vld [vmem:[#allocation25] ss:$0 sm:$0xff] }
0x24fb   :  { %v4355_v61 = vpop.f32.mrb[44].mxu1 }
0x24fc   :  { %v9927_v62 = vpop.f32.mrb[45].mxu1  ;;  %v4359_v53 = vsel %vm488_vm2, %v4355_v61, -inf }
0x24fd   :  { %4360 = vmax.xlane.f32.xlu1 %v4359_v53  ;;  %v4580_v53 = vld [vmem:[%s12668_s12] sm:$0xff] }
0x2501   :  { %4537 = vadd.xlane.f32.xlu1 %v4536_v36 }
0x258a   :  { %v4361_v0 = vpop.xlane.xlu1 %4360 }
0x258b   :  { %v4362_v2 = vsub.f32 %v4355_v61, %v4361_v0  ;;  %v4582_v0 = vld [vmem:[%s12668_s12 + $0x10] sm:$0xff] }
0x258d   :  { %v4363_v5 = vmul.f32 1.442695, %v4362_v2  ;;  %v4583_v2 = vld [vmem:[%s12668_s12 + $0x18] sm:$0xff] }
0x258e   :  { %v4538_v27 = vpop.xlane.xlu1 %4537 }
0x258f   :  { %10514 = vpow2.f32 %v4363_v5  ;;  %v4542_v51 = vmul.f32 0.03125, %v4538_v27  ;;  %v10320_v5 = vpack.c.bf16 %v4583_v2, %v4582_v0  ;;  %v4685_v27 = vld [vmem:[%s12670_s14 + $0x38] sm:$0xff] }
0x2599   :  { %v10515_v4 = vpop.eup %10514 }
0x259a   :  { %v4365_v7 = vsel %vm488_vm2, %v10515_v4, 0.0 }
0x259b   :  { %4366 = vadd.xlane.f32.xlu0 %v4365_v7  ;;  %v4679_v7 = vld [vmem:[%s12670_s14 + $0x8] sm:$0xff] }
0x25b1   :  { %4375 = vrot.lane.b32.xlu0 %v11619_v6, %s10994_s6 }
0x25cb   :  { %v4276_v8 = vpop.f32.mrb[50].mxu0 }
0x25cc   :  { %v4280_v9 = vadd.f32 %v4276_v8, %v4034_v47  ;;  %v9922_v10 = vpop.f32.mrb[51].mxu0  ;;  %v4544_v47 = vsub.f32 %v4534_v63, %v4542_v51  ;;  %v4581_v63 = vld [vmem:[%s12668_s12 + $0x8] sm:$0xff]  ;;  %v4680_v8 = vld [vmem:[%s12670_s14 + $0x10] sm:$0xff] }
0x25cd   :  { %v10316_v36 = vpack.c.bf16 %v4581_v63, %v4580_v53  ;;  %v4681_v10 = vld [vmem:[%s12670_s14 + $0x18] sm:$0xff] }
0x25ce   :  { %v4546_v33 = vmul.f32 %v4544_v47, %v4544_v47 }
0x25d0   :  { %v4548_v15 = vsel %vm266_vm0, %v4546_v33, 0.0 }
0x2628   :  { %v4367_v17 = vpop.xlane.xlu0 %4366 }
0x2629   :  { %10516 = vrcp.f32 %v4367_v17  ;;  %v10328_v17 = vpack.c.bf16 %v4681_v10, %v4680_v8 }
0x262c   :  { %v4376_v18 = vpop.permute.xlu0 %4375 }
0x262d   :  { %9929 = vmatpush3.msra.mxu0 %v4376_v18  ;;  %v4682_v18 = vld [vmem:[%s12670_s14 + $0x20] sm:$0xff] }
0x262e   :  { %10317 = vmatprep.subr.bf16.mxu0 %v10316_v36 }
0x2633   :  { %v10517_v23 = vpop.eup %10516 }
0x2634   :  { %v11848_v24 = vmul.f32 %v10517_v23, %v10515_v4  ;;  %v4678_v4 = vld [vmem:[%s12670_s14] sm:$0xff]  ;;  %v4683_v23 = vld [vmem:[%s12670_s14 + $0x28] sm:$0xff] }
0x2636   :  { %9931 = vmatmul.mubr.msk.f32.vlgmr.msra.gmra.mrb[52].mxu0 %vm488_vm2, %v11848_v24 }
0x2637   :  { %10319 = vmatpush3.bf16.msra.mxu0 %v10316_v36 }
0x2638   :  { %10321 = vmatprep.subr.bf16.mxu0 %v10320_v5 }
0x263b   :  { %10323 = vmatpush3.bf16.msra.mxu0 %v10320_v5  ;;  %v9304_v5 = vld [vmem:[#allocation16] ss:$0 sm:$0xff] }
0x2709   :  { %v4446_v25 = vpop.f32.mrb[52].mxu0 }
0x270a   :  { %v9932_v26 = vpop.f32.mrb[53].mxu0  ;;  %9936 = vmatmul.mubr.msk.f32.vlgmr.msra.gmra.mrb[46].mxu1 %vm488_vm2, %v4446_v25  ;;  %v10332_v25 = vpack.c.bf16 %v4683_v23, %v4682_v18 }
0x270b   :  { %v4684_v26 = vld [vmem:[%s12670_s14 + $0x30] sm:$0xff] }
0x270c   :  { %v10336_v51 = vpack.c.bf16 %v4685_v27, %v4684_v26 }
0x27dd   :  { %v4520_v6 = vpop.f32.mrb[46].mxu1 }
0x27de   :  { %v4524_v29 = vadd.f32 %v4520_v6, %v4280_v9  ;;  %v9937_v44 = vpop.f32.mrb[47].mxu1  ;;  %v10324_v9 = vpack.c.bf16 %v4679_v7, %v4678_v4  ;;  %v4686_v6 = vld [vmem:[%s12670_s14 + $0x40] sm:$0xff] }
0x27e0   :  { %v4533_v30 = vadd.f32 %v9298_v58, %v4524_v29  ;;  %10325 = vmatprep.subr.bf16.mxu1 %v10324_v9  ;;  %v4687_v29 = vld [vmem:[%s12670_s14 + $0x48] sm:$0xff] }
0x27e1   :  { %10327 = vmatpush3.bf16.msra.mxu1 %v10324_v9  ;;  %v10340_v44 = vpack.c.bf16 %v4687_v29, %v4686_v6 }
0x27e2   :  { %v4535_v31 = vmul.f32 2.0, %v4533_v30  ;;  %10329 = vmatprep.subr.bf16.mxu1 %v10328_v17  ;;  %v4689_v30 = vld [vmem:[%s12670_s14 + $0x58] sm:$0xff] }
0x27e4   :  { %v4539_v32 = vsel %vm266_vm0, %v4535_v31, 0.0 }
0x27e5   :  { %4540 = vadd.xlane.f32.xlu1 %v4539_v32  ;;  %10331 = vmatpush3.bf16.msra.mxu1 %v10328_v17 }
0x27e6   :  { %10333 = vmatprep.subr.bf16.mxu1 %v10332_v25 }
0x27e9   :  { %4549 = vadd.xlane.f32.xlu1 %v4548_v15  ;;  %10335 = vmatpush3.bf16.msra.mxu1 %v10332_v25 }
0x27ea   :  { %10337 = vmatprep.subr.bf16.mxu1 %v10336_v51 }
0x27ed   :  { %10339 = vmatpush3.bf16.msra.mxu1 %v10336_v51 }
0x27ee   :  { %10341 = vmatprep.subr.bf16.mxu1 %v10340_v44 }
0x27f1   :  { %10343 = vmatpush3.bf16.msra.mxu1 %v10340_v44 }
0x2872   :  { %v4541_v35 = vpop.xlane.xlu1 %4540 }
0x2873   :  { %v4543_v38 = vmul.f32 0.03125, %v4541_v35 }
0x2875   :  { %v4545_v40 = vsub.f32 %v4535_v31, %v4543_v38 }
0x2876   :  { %v4550_v41 = vpop.xlane.xlu1 %4549 }
0x2877   :  { %v4554_v49 = vmul.f32 0.03125, %v4550_v41  ;;  %v4547_v50 = vmul.f32 %v4545_v40, %v4545_v40 }
0x2879   :  { %v4556_v52 = vadd.f32 1e-05, %v4554_v49  ;;  %v4551_v55 = vsel %vm266_vm0, %v4547_v50, 0.0  ;;  %v4690_v50 = vld [vmem:[%s12670_s14 + $0x60] sm:$0xff] }
0x287a   :  { %4552 = vadd.xlane.f32.xlu1 %v4551_v55 }
0x287b   :  { %10518 = vrsqrt.f32 %v4556_v52  ;;  %v4691_v52 = vld [vmem:[%s12670_s14 + $0x68] sm:$0xff] }
0x287c   :  { %v10348_v55 = vpack.c.bf16 %v4691_v52, %v4690_v50 }
0x2885   :  { %v10519_v58 = vpop.eup %10518 }
0x2886   :  { %v4560_v59 = vmul.f32 %v10519_v58, %v4544_v47  ;;  %v4688_v47 = vld [vmem:[%s12670_s14 + $0x50] sm:$0xff] }
0x2887   :  { %v10344_v31 = vpack.c.bf16 %v4689_v30, %v4688_v47  ;;  %v4692_v58 = vld [vmem:[%s12670_s14 + $0x70] sm:$0xff] }
0x2888   :  { %v4569_v61 = vmul.f32 %v9299_v45, %v4560_v59  ;;  %v9301_v59 = vld [vmem:[#allocation14] ss:$0 sm:$0xff] }
0x2889   :  { %10345 = vmatprep.subr.bf16.mxu1 %v10344_v31 }
0x288a   :  { %v4578_v62 = vadd.f32 %v9300_v60, %v4569_v61  ;;  %10347 = vmatpush3.bf16.msra.mxu1 %v10344_v31 }
0x288b   :  { %10349 = vmatprep.subr.bf16.mxu1 %v10348_v55 }
0x288c   :  { %9946 = vmatprep.mubr.msk.f32.mxu0 %vm266_vm0, %v4578_v62 }
0x288e   :  { %10351 = vmatpush3.bf16.msra.mxu1 %v10348_v55 }
0x2907   :  { %v4553_v32 = vpop.xlane.xlu1 %4552 }
0x2908   :  { %v4555_v33 = vmul.f32 0.03125, %v4553_v32  ;;  %v4822_v32 = vld [vmem:[%s12708_s13] sm:$0xff] }
0x290a   :  { %v4557_v15 = vadd.f32 1e-05, %v4555_v33  ;;  %v4823_v33 = vld [vmem:[%s12708_s13 + $0x8] sm:$0xff] }
0x290c   :  { %10520 = vrsqrt.f32 %v4557_v15  ;;  %v4824_v15 = vld [vmem:[%s12708_s13 + $0x10] sm:$0xff] }
0x2916   :  { %v10521_v35 = vpop.eup %10520 }
0x2917   :  { %v4561_v38 = vmul.f32 %v10521_v35, %v4545_v40  ;;  %v4693_v40 = vld [vmem:[%s12670_s14 + $0x78] sm:$0xff]  ;;  %v10356_v35 = vpack.c.bf16 %v4823_v33, %v4822_v32  ;;  %v11977_v33 = vld [vmem:[%s12709_s26] sm:$0xff] }
0x2919   :  { %v4570_v41 = vmul.f32 %v9299_v45, %v4561_v38  ;;  %v10352_v45 = vpack.c.bf16 %v4693_v40, %v4692_v58  ;;  %v4825_v38 = vld [vmem:[%s12708_s13 + $0x18] sm:$0xff]  ;;  %10357 = vmatprep.subr.bf16.mxu0 %v10356_v35  ;;  %s11000_s13 = smov 32  }
0x291b   :  { %v4579_v49 = vadd.f32 %v9300_v60, %v4570_v41  ;;  %10353 = vmatprep.subr.bf16.mxu1 %v10352_v45  ;;  %v10360_v41 = vpack.c.bf16 %v4825_v38, %v4824_v15 }
0x291c   :  { %10355 = vmatpush3.bf16.msra.mxu1 %v10352_v45 }
0x291d   :  { %9947 = vmatmul.mubr.msk.f32.vlgmr.msra.gmra.mrb[54].mxu0 %vm266_vm0, %v4579_v49  ;;  %10020 = vmatprep.subr.mxu1 %v10985_v48 }
0x291e   :  { %10359 = vmatpush3.bf16.msra.mxu0 %v10356_v35 }
0x291f   :  { %10361 = vmatprep.subr.bf16.mxu0 %v10360_v41 }
0x2922   :  { %10363 = vmatpush3.bf16.msra.mxu0 %v10360_v41 }
0x2923   :  { %9995 = vmatprep.subr.mxu0 %v10985_v48 }
0x29f0   :  { %v9948_v60 = vpop.f32.mrb[54].mxu0 }
0x29f1   :  { %v4669_v61 = vadd.f32 %v9948_v60, %v9301_v59  ;;  %v4663_v62 = vpop.f32.mrb[55].mxu0 }
0x29f2   :  { %v4664_v53 = vadd.f32 %v9301_v59, %v4663_v62  ;;  %v9305_v59 = vld [vmem:[#allocation17] ss:$0 sm:$0xff] }
0x29f3   :  { %v4675_v63 = vmul.f32 0.01, %v4669_v61  ;;  %vm4673_vm3 = vcmp.ge.f32.partialorder %v4669_v61, 0.0 }
0x29f4   :  { %v4674_v36 = vmul.f32 0.01, %v4664_v53  ;;  %vm4672_vm4 = vcmp.ge.f32.partialorder %v4664_v53, 0.0 }
0x29f5   :  { %v4677_v2 = vsel %vm4673_vm3, %v4669_v61, %v4675_v63  ;;  %v9306_v61 = vld [vmem:[#allocation19] ss:$0 sm:$0xff]  ;;  %vm7579_vm3 = vcmask 982912  }
0x29f6   :  { %v4676_v0 = vsel %vm4672_vm4, %v4664_v53, %v4674_v36  ;;  %vm7820_vm4 = vcmask 1048512  }
0x29f7   :  { %9981 = vmatprep.mubr.f32.mxu1 %v4676_v0 }
0x29f8   :  { %9982 = vmatmul.mubr.f32.vlgmr.msra.gmra.mrb[48].mxu1 %v4677_v2 }
0x29f9   :  { %10022 = vmatprep.mubr.msk.f32.mxu1 %vm10986_vm1, %v10985_v48  ;;  %10021 = vmatpush3.msra.mxu1 %v11977_v33 }
0x29fa   :  { %10030 = vmatprep.subr.mxu1 %v10985_v48 }
0x2acb   :  { %v9983_v4 = vpop.f32.mrb[48].mxu1 }
0x2acc   :  { %v4773_v7 = vadd.f32 %v9983_v4, %v9304_v5  ;;  %v4767_v8 = vpop.f32.mrb[49].mxu1 }
0x2acd   :  { %v4768_v9 = vadd.f32 %v9304_v5, %v4767_v8  ;;  %v9307_v5 = vld [vmem:[#allocation7] ss:$0 sm:$0xff] }
0x2ace   :  { %v4777_v10 = vmul.f32 2.0, %v4773_v7 }
0x2acf   :  { %v4776_v17 = vmul.f32 2.0, %v4768_v9 }
0x2ad0   :  { %v4781_v18 = vsel %vm266_vm0, %v4777_v10, 0.0 }
0x2ad1   :  { %4782 = vadd.xlane.f32.xlu0 %v4781_v18  ;;  %v4778_v23 = vsel %vm266_vm0, %v4776_v17, 0.0 }
0x2ad2   :  { %4779 = vadd.xlane.f32.xlu1 %v4778_v23 }
0x2b5e   :  { %v4783_v25 = vpop.xlane.xlu0 %4782 }
0x2b5f   :  { %v4785_v26 = vmul.f32 0.03125, %v4783_v25  ;;  %v4780_v27 = vpop.xlane.xlu1 %4779 }
0x2b60   :  { %v4784_v51 = vmul.f32 0.03125, %v4780_v27 }
0x2b61   :  { %v4787_v6 = vsub.f32 %v4777_v10, %v4785_v26 }
0x2b62   :  { %v4786_v29 = vsub.f32 %v4776_v17, %v4784_v51 }
0x2b63   :  { %v4789_v30 = vmul.f32 %v4787_v6, %v4787_v6 }
0x2b64   :  { %v4788_v44 = vmul.f32 %v4786_v29, %v4786_v29 }
0x2b65   :  { %v4793_v31 = vsel %vm266_vm0, %v4789_v30, 0.0 }
0x2b66   :  { %v4790_v47 = vsel %vm266_vm0, %v4788_v44, 0.0 }
0x2b67   :  { %4791 = vadd.xlane.f32.xlu1 %v4790_v47 }
0x2b6b   :  { %4794 = vadd.xlane.f32.xlu1 %v4793_v31 }
0x2bf4   :  { %v4792_v49 = vpop.xlane.xlu1 %4791 }
0x2bf5   :  { %v4796_v50 = vmul.f32 0.03125, %v4792_v49 }
0x2bf7   :  { %v4798_v52 = vadd.f32 1e-05, %v4796_v50 }
0x2bf8   :  { %v4795_v55 = vpop.xlane.xlu1 %4794 }
0x2bf9   :  { %10522 = vrsqrt.f32 %v4798_v52  ;;  %v4797_v58 = vmul.f32 0.03125, %v4795_v55 }
0x2bfb   :  { %v4799_v40 = vadd.f32 1e-05, %v4797_v58 }
0x2bfd   :  { %10524 = vrsqrt.f32 %v4799_v40 }
0x2c03   :  { %v10523_v45 = vpop.eup %10522 }
0x2c04   :  { %v4802_v60 = vmul.f32 %v10523_v45, %v4786_v29 }
0x2c06   :  { %v4811_v62 = vmul.f32 %v9305_v59, %v4802_v60 }
0x2c07   :  { %v10525_v53 = vpop.eup %10524 }
0x2c08   :  { %v4803_v63 = vmul.f32 %v10525_v53, %v4787_v6  ;;  %v4820_v36 = vadd.f32 %v9306_v61, %v4811_v62 }
0x2c0a   :  { %v4812_v0 = vmul.f32 %v9305_v59, %v4803_v63  ;;  %9992 = vmatprep.mubr.msk.f32.mxu0 %vm266_vm0, %v4820_v36  ;;  %v12003_v36 = vld [vmem:[%s12709_s26 + $0x8] sm:$0xff] }
0x2c0c   :  { %v4821_v2 = vadd.f32 %v9306_v61, %v4812_v0 }
0x2c0e   :  { %9993 = vmatmul.mubr.msk.f32.vlgmr.msra.gmra.mrb[56].mxu0 %vm266_vm0, %v4821_v2 }
0x2c0f   :  { %9997 = vmatprep.mubr.msk.f32.mxu0 %vm10986_vm1, %v10985_v48 }
0x2ce1   :  { %v9994_v4 = vpop.f32.mrb[56].mxu0 }
0x2ce2   :  { %v11942_v7 = vadd.f32 %v9994_v4, %v9307_v5  ;;  %v4905_v8 = vpop.f32.mrb[57].mxu0 }
0x2ce3   :  { %v11944_v9 = vadd.f32 %v9307_v5, %v4905_v8 }
0x2ce5   :  { %5008 = vrot.lane.b32.xlu0 %v11944_v9, %s10989_s19  ;;  %4915 = vrot.lane.b32.xlu1 %v11944_v9, %s10987_s9 }
0x2ce9   :  { %5086 = vrot.lane.b32.xlu0 %v11944_v9, %s10988_s1 }
0x2d57   :  { %v4916_v10 = vpop.permute.xlu1 %4915  ;;  %v5009_v17 = vpop.permute.xlu0 %5008 }
0x2d58   :  { %9996 = vmatpush3.xpose.msk.msra.mxu0 %vm488_vm2, %v4916_v10 }
0x2d59   :  { %10000 = vmatprep.subr.mxu0 %v10985_v48 }
0x2d5b   :  { %9998 = vmatmul.mubr.msk.f32.vlgmr.msra.gmra.mrb[58].mxu0 %vm488_vm2, %v11944_v9  ;;  %v5087_v44 = vpop.permute.xlu0 %5086 }
0x2d5c   :  { %10001 = vmatpush3.msra.mxu0 %v5009_v17  ;;  %10002 = vmatprep.mubr.msk.f32.mxu0 %vm10986_vm1, %v10985_v48 }
0x2d5d   :  { %10005 = vmatprep.subr.mxu0 %v10985_v48 }
0x2e2e   :  { %v4987_v18 = vpop.f32.mrb[58].mxu0 }
0x2e2f   :  { %v9999_v23 = vpop.f32.mrb[59].mxu0  ;;  %v4991_v25 = vsel %vm488_vm2, %v4987_v18, -inf }
0x2e30   :  { %4992 = vmax.xlane.f32.xlu1 %v4991_v25 }
0x2ebd   :  { %v4993_v26 = vpop.xlane.xlu1 %4992 }
0x2ebe   :  { %v4994_v27 = vsub.f32 %v4987_v18, %v4993_v26 }
0x2ec0   :  { %v4995_v51 = vmul.f32 1.442695, %v4994_v27 }
0x2ec2   :  { %10526 = vpow2.f32 %v4995_v51 }
0x2ecc   :  { %v10527_v6 = vpop.eup %10526 }
0x2ecd   :  { %v4997_v29 = vsel %vm488_vm2, %v10527_v6, 0.0 }
0x2ece   :  { %4998 = vadd.xlane.f32.xlu0 %v4997_v29 }
0x2ee4   :  { %5084 = vrot.lane.b32.xlu0 %v11944_v9, %s10990_s24 }
0x2f5b   :  { %v4999_v47 = vpop.xlane.xlu0 %4998 }
0x2f5c   :  { %10528 = vrcp.f32 %v4999_v47 }
0x2f5f   :  { %v5085_v32 = vpop.permute.xlu0 %5084 }
0x2f66   :  { %v10529_v30 = vpop.eup %10528 }
0x2f67   :  { %v11963_v31 = vmul.f32 %v10529_v30, %v10527_v6 }
0x2f69   :  { %10003 = vmatmul.mubr.msk.f32.vlgmr.msra.gmra.mrb[60].mxu0 %vm488_vm2, %v11963_v31 }
0x2f6a   :  { %10006 = vmatpush3.xpose.msk.msra.mxu0 %vm488_vm2, %v5087_v44  ;;  %10007 = vmatprep.mubr.msk.f32.mxu0 %vm10986_vm1, %v10985_v48 }
0x2f6b   :  { %10010 = vmatprep.subr.mxu0 %v10985_v48 }
0x2f6d   :  { %10008 = vmatmul.mubr.msk.f32.vlgmr.msra.gmra.mrb[62].mxu0 %vm488_vm2, %v5085_v32 }
0x2f6e   :  { %10012 = vmatprep.mubr.msk.f32.mxu0 %vm10986_vm1, %v10985_v48 }
0x303c   :  { %v5079_v15 = vpop.f32.mrb[60].mxu0 }
0x303d   :  { %v10004_v35 = vpop.f32.mrb[61].mxu0  ;;  %10023 = vmatmul.mubr.msk.f32.vlgmr.msra.gmra.mrb[50].mxu1 %vm488_vm2, %v5079_v15 }
0x303e   :  { %10032 = vmatprep.mubr.msk.f32.mxu1 %vm10986_vm1, %v10985_v48  ;;  %v12037_v35 = vld [vmem:[%s12709_s26 + $0x10] sm:$0xff] }
0x3040   :  { %v5158_v38 = vpop.f32.mrb[62].mxu0 }
0x3041   :  { %v10009_v41 = vpop.f32.mrb[63].mxu0  ;;  %v5162_v49 = vsel %vm488_vm2, %v5158_v38, -inf }
0x3042   :  { %5163 = vmax.xlane.f32.xlu1 %v5162_v49 }
0x3053   :  { %5179 = vrot.lane.b32.xlu1 %v11944_v9, %s10991_s18 }
0x3057   :  { %5403 = vrot.lane.b32.xlu1 %v11944_v9, %s10993_s27 }
0x305b   :  { %5401 = vrot.lane.b32.xlu1 %v11944_v9, %s10992_s11 }
0x30cf   :  { %v5164_v50 = vpop.xlane.xlu1 %5163 }
0x30d0   :  { %v5165_v52 = vsub.f32 %v5158_v38, %v5164_v50 }
0x30d2   :  { %v5166_v55 = vmul.f32 1.442695, %v5165_v52 }
0x30d3   :  { %v5180_v58 = vpop.permute.xlu1 %5179 }
0x30d4   :  { %10530 = vpow2.f32 %v5166_v55  ;;  %10011 = vmatpush3.msra.mxu0 %v5180_v58 }
0x30d5   :  { %10015 = vmatprep.subr.mxu0 %v10985_v48 }
0x30d7   :  { %v5404_v0 = vpop.permute.xlu1 %5403 }
0x30db   :  { %v5402_v4 = vpop.permute.xlu1 %5401 }
0x30de   :  { %v10531_v40 = vpop.eup %10530 }
0x30df   :  { %v5168_v45 = vsel %vm488_vm2, %v10531_v40, 0.0 }
0x30e0   :  { %5169 = vadd.xlane.f32.xlu0 %v5168_v45 }
0x30f6   :  { %5496 = vrot.lane.b32.xlu0 %v11944_v9, %s10996_s3 }
0x30fa   :  { %5648 = vrot.lane.b32.xlu0 %v11944_v9, %s10994_s6 }
0x3110   :  { %v5397_v59 = vpop.f32.mrb[50].mxu1 }
0x3111   :  { %v10024_v60 = vpop.f32.mrb[51].mxu1 }
0x316d   :  { %v5170_v61 = vpop.xlane.xlu0 %5169 }
0x316e   :  { %10532 = vrcp.f32 %v5170_v61 }
0x3171   :  { %v5497_v62 = vpop.permute.xlu0 %5496 }
0x3172   :  { %10031 = vmatpush3.msra.mxu1 %v5497_v62 }
0x3173   :  { %10040 = vmatprep.subr.mxu1 %v10985_v48 }
0x3175   :  { %v5649_v44 = vpop.permute.xlu0 %5648 }
0x3178   :  { %v10533_v53 = vpop.eup %10532 }
0x3179   :  { %v11998_v63 = vmul.f32 %v10533_v53, %v10531_v40 }
0x317b   :  { %10013 = vmatmul.mubr.msk.f32.vlgmr.msra.gmra.mrb[64].mxu0 %vm488_vm2, %v11998_v63 }
0x317c   :  { %10016 = vmatpush3.msra.mxu0 %v12003_v36  ;;  %10017 = vmatprep.mubr.msk.f32.mxu0 %vm10986_vm1, %v10985_v48 }
0x317d   :  { %10025 = vmatprep.subr.mxu0 %v10985_v48 }
0x324e   :  { %v5250_v2 = vpop.f32.mrb[64].mxu0 }
0x324f   :  { %v10014_v5 = vpop.f32.mrb[65].mxu0  ;;  %10018 = vmatmul.mubr.msk.f32.vlgmr.msra.gmra.mrb[66].mxu0 %vm488_vm2, %v5250_v2 }
0x3250   :  { %10026 = vmatpush3.xpose.msk.msra.mxu0 %vm488_vm2, %v5404_v0  ;;  %10027 = vmatprep.mubr.msk.f32.mxu0 %vm10986_vm1, %v10985_v48 }
0x3251   :  { %10035 = vmatprep.subr.mxu0 %v10985_v48 }
0x3253   :  { %10028 = vmatmul.mubr.msk.f32.vlgmr.msra.gmra.mrb[68].mxu0 %vm488_vm2, %v5402_v4 }
0x3254   :  { %10037 = vmatprep.mubr.msk.f32.mxu0 %vm10986_vm1, %v10985_v48  ;;  %10036 = vmatpush3.msra.mxu0 %v12037_v35 }
0x3255   :  { %10045 = vmatprep.subr.mxu0 %v10985_v48 }
0x3322   :  { %v5324_v8 = vpop.f32.mrb[66].mxu0 }
0x3323   :  { %v5398_v10 = vadd.f32 %v5397_v59, %v5324_v8  ;;  %v10019_v17 = vpop.f32.mrb[67].mxu0 }
0x3326   :  { %v5475_v18 = vpop.f32.mrb[68].mxu0 }
0x3327   :  { %v10029_v23 = vpop.f32.mrb[69].mxu0  ;;  %v5479_v25 = vsel %vm488_vm2, %v5475_v18, -inf }
0x3328   :  { %5480 = vmax.xlane.f32.xlu1 %v5479_v25 }
0x33b5   :  { %v5481_v26 = vpop.xlane.xlu1 %5480 }
0x33b6   :  { %v5482_v27 = vsub.f32 %v5475_v18, %v5481_v26 }
0x33b8   :  { %v5483_v51 = vmul.f32 1.442695, %v5482_v27 }
0x33ba   :  { %10534 = vpow2.f32 %v5483_v51 }
0x33c4   :  { %v10535_v6 = vpop.eup %10534 }
0x33c5   :  { %v5485_v29 = vsel %vm488_vm2, %v10535_v6, 0.0 }
0x33c6   :  { %5486 = vadd.xlane.f32.xlu0 %v5485_v29 }
0x33dc   :  { %5646 = vrot.lane.b32.xlu0 %v11944_v9, %s10995_s28 }
0x3453   :  { %v5487_v47 = vpop.xlane.xlu0 %5486 }
0x3454   :  { %10536 = vrcp.f32 %v5487_v47 }
0x3457   :  { %v5647_v15 = vpop.permute.xlu0 %5646 }
0x345e   :  { %v10537_v30 = vpop.eup %10536 }
0x345f   :  { %v12023_v32 = vmul.f32 %v10537_v30, %v10535_v6 }
0x3461   :  { %10033 = vmatmul.mubr.msk.f32.vlgmr.msra.gmra.mrb[52].mxu1 %vm488_vm2, %v12023_v32 }
0x3462   :  { %10041 = vmatpush3.xpose.msk.msra.mxu1 %vm488_vm2, %v5649_v44  ;;  %10042 = vmatprep.mubr.msk.f32.mxu1 %vm10986_vm1, %v10985_v48 }
0x3463   :  { %10050 = vmatprep.subr.mxu1 %v10985_v48 }
0x3465   :  { %10043 = vmatmul.mubr.msk.f32.vlgmr.msra.gmra.mrb[54].mxu1 %vm488_vm2, %v5647_v15 }
0x3466   :  { %10052 = vmatprep.mubr.msk.f32.mxu1 %vm10986_vm1, %v10985_v48 }
0x3534   :  { %v5567_v38 = vpop.f32.mrb[52].mxu1 }
0x3535   :  { %v10034_v41 = vpop.f32.mrb[53].mxu1  ;;  %10038 = vmatmul.mubr.msk.f32.vlgmr.msra.gmra.mrb[70].mxu0 %vm488_vm2, %v5567_v38 }
0x3536   :  { %10047 = vmatprep.mubr.msk.f32.mxu0 %vm10986_vm1, %v10985_v48 }
0x3538   :  { %v5720_v49 = vpop.f32.mrb[54].mxu1 }
0x3539   :  { %v10044_v50 = vpop.f32.mrb[55].mxu1  ;;  %v5724_v52 = vsel %vm488_vm2, %v5720_v49, -inf }
0x353a   :  { %5725 = vmax.xlane.f32.xlu1 %v5724_v52 }
0x354b   :  { %5741 = vrot.lane.b32.xlu1 %v11944_v9, %s10997_s15 }
0x354f   :  { %5892 = vrot.lane.b32.xlu1 %v11942_v7, %s10987_s9 }
0x3553   :  { %6062 = vrot.lane.b32.xlu1 %v11942_v7, %s10988_s1 }
0x3557   :  { %6060 = vrot.lane.b32.xlu1 %v11942_v7, %s10990_s24 }
0x35c7   :  { %v5726_v55 = vpop.xlane.xlu1 %5725 }
0x35c8   :  { %v5727_v58 = vsub.f32 %v5720_v49, %v5726_v55 }
0x35ca   :  { %v5728_v40 = vmul.f32 1.442695, %v5727_v58 }
0x35cb   :  { %v5742_v45 = vpop.permute.xlu1 %5741 }
0x35cc   :  { %10538 = vpow2.f32 %v5728_v40  ;;  %10046 = vmatpush3.msra.mxu0 %v5742_v45 }
0x35cd   :  { %10055 = vmatprep.subr.mxu0 %v10985_v48 }
0x35cf   :  { %v5893_v0 = vpop.permute.xlu1 %5892 }
0x35d3   :  { %v6063_v4 = vpop.permute.xlu1 %6062 }
0x35d6   :  { %v10539_v59 = vpop.eup %10538 }
0x35d7   :  { %v5730_v9 = vsel %vm488_vm2, %v10539_v59, 0.0  ;;  %v6061_v8 = vpop.permute.xlu1 %6060 }
0x35d8   :  { %5731 = vadd.xlane.f32.xlu0 %v5730_v9 }
0x3608   :  { %v5641_v60 = vpop.f32.mrb[70].mxu0 }
0x3609   :  { %v5645_v61 = vadd.f32 %v5641_v60, %v5398_v10  ;;  %v10039_v62 = vpop.f32.mrb[71].mxu0  ;;  %v12077_v10 = vld [vmem:[%s12709_s26 + $0x18] sm:$0xff] }
0x360a   :  { %10051 = vmatpush3.msra.mxu1 %v12077_v10 }
0x360b   :  { %10060 = vmatprep.subr.mxu1 %v10985_v48 }
0x3665   :  { %v5732_v53 = vpop.xlane.xlu0 %5731 }
0x3666   :  { %10540 = vrcp.f32 %v5732_v53 }
0x3670   :  { %v10541_v2 = vpop.eup %10540 }
0x3671   :  { %v12055_v5 = vmul.f32 %v10541_v2, %v10539_v59 }
0x3673   :  { %10048 = vmatmul.mubr.msk.f32.vlgmr.msra.gmra.mrb[72].mxu0 %vm488_vm2, %v12055_v5 }
0x3674   :  { %10056 = vmatpush3.xpose.msk.msra.mxu0 %vm488_vm2, %v5893_v0  ;;  %10057 = vmatprep.mubr.msk.f32.mxu0 %vm10986_vm1, %v10985_v48 }
0x3675   :  { %10065 = vmatprep.subr.mxu0 %v10985_v48 }
0x3677   :  { %10058 = vmatmul.mubr.msk.f32.vlgmr.msra.gmra.mrb[74].mxu0 %vm488_vm2, %v11942_v7 }
0x3678   :  { %10066 = vmatpush3.xpose.msk.msra.mxu0 %vm488_vm2, %v6063_v4  ;;  %10067 = vmatprep.mubr.msk.f32.mxu0 %vm10986_vm1, %v10985_v48 }
0x3679   :  { %10075 = vmatprep.subr.mxu0 %v10985_v48 }
0x367b   :  { %10068 = vmatmul.mubr.msk.f32.vlgmr.msra.gmra.mrb[76].mxu0 %vm488_vm2, %v6061_v8 }
0x367c   :  { %10076 = vmatpush3.msra.mxu0 %v12003_v36  ;;  %10077 = vmatprep.mubr.msk.f32.mxu0 %vm10986_vm1, %v10985_v48 }
0x367d   :  { %10085 = vmatprep.subr.mxu0 %v10985_v48 }
0x3746   :  { %v5812_v17 = vpop.f32.mrb[72].mxu0 }
0x3747   :  { %v10049_v18 = vpop.f32.mrb[73].mxu0  ;;  %10053 = vmatmul.mubr.msk.f32.vlgmr.msra.gmra.mrb[56].mxu1 %vm488_vm2, %v5812_v17 }
0x3748   :  { %10062 = vmatprep.mubr.msk.f32.mxu1 %vm10986_vm1, %v10985_v48 }
0x374a   :  { %v5964_v36 = vpop.f32.mrb[74].mxu0 }
0x374b   :  { %v10059_v23 = vpop.f32.mrb[75].mxu0  ;;  %v5968_v25 = vsel %vm488_vm2, %v5964_v36, -inf }
0x374c   :  { %5969 = vmax.xlane.f32.xlu0 %v5968_v25 }
0x374e   :  { %v6134_v26 = vpop.f32.mrb[76].mxu0 }
0x374f   :  { %v10069_v27 = vpop.f32.mrb[77].mxu0  ;;  %v6138_v51 = vsel %vm488_vm2, %v6134_v26, -inf }
0x3750   :  { %6139 = vmax.xlane.f32.xlu1 %v6138_v51 }
0x3761   :  { %6378 = vrot.lane.b32.xlu1 %v11942_v7, %s10993_s27 }
0x3762   :  { %5984 = vrot.lane.b32.xlu0 %v11942_v7, %s10989_s19 }
0x37d9   :  { %v5970_v6 = vpop.xlane.xlu0 %5969 }
0x37da   :  { %v5971_v29 = vsub.f32 %v5964_v36, %v5970_v6 }
0x37dc   :  { %v5972_v44 = vmul.f32 1.442695, %v5971_v29 }
0x37dd   :  { %v5985_v47 = vpop.permute.xlu0 %5984  ;;  %v6140_v30 = vpop.xlane.xlu1 %6139 }
0x37de   :  { %10542 = vpow2.f32 %v5972_v44  ;;  %v6141_v15 = vsub.f32 %v6134_v26, %v6140_v30  ;;  %10061 = vmatpush3.msra.mxu1 %v5985_v47 }
0x37df   :  { %10070 = vmatprep.subr.mxu1 %v10985_v48 }
0x37e0   :  { %v6142_v38 = vmul.f32 1.442695, %v6141_v15 }
0x37e1   :  { %v6379_v8 = vpop.permute.xlu1 %6378 }
0x37e2   :  { %10544 = vpow2.f32 %v6142_v38 }
0x37e8   :  { %v10543_v41 = vpop.eup %10542 }
0x37e9   :  { %v5974_v49 = vsel %vm488_vm2, %v10543_v41, 0.0 }
0x37ea   :  { %5975 = vadd.xlane.f32.xlu0 %v5974_v49 }
0x37ec   :  { %v10545_v50 = vpop.eup %10544 }
0x37ed   :  { %v6144_v52 = vsel %vm488_vm2, %v10545_v50, 0.0 }
0x37ee   :  { %6145 = vadd.xlane.f32.xlu0 %v6144_v52 }
0x3804   :  { %6154 = vrot.lane.b32.xlu0 %v11942_v7, %s10991_s18 }
0x3808   :  { %6376 = vrot.lane.b32.xlu0 %v11942_v7, %s10992_s11 }
0x381a   :  { %v5886_v55 = vpop.f32.mrb[56].mxu1 }
0x381b   :  { %v12097_v58 = vadd.f32 %v5886_v55, %v5645_v61  ;;  %v10054_v40 = vpop.f32.mrb[57].mxu1 }
0x3877   :  { %v5976_v45 = vpop.xlane.xlu0 %5975 }
0x3878   :  { %10546 = vrcp.f32 %v5976_v45 }
0x387b   :  { %v6146_v59 = vpop.xlane.xlu0 %6145 }
0x387c   :  { %10548 = vrcp.f32 %v6146_v59 }
0x387f   :  { %v6155_v62 = vpop.permute.xlu0 %6154 }
0x3882   :  { %v10547_v9 = vpop.eup %10546 }
0x3883   :  { %v12099_v60 = vmul.f32 %v10547_v9, %v10543_v41 }
0x3885   :  { %10063 = vmatmul.mubr.msk.f32.vlgmr.msra.gmra.mrb[58].mxu1 %vm488_vm2, %v12099_v60 }
0x3886   :  { %v10549_v53 = vpop.eup %10548  ;;  %10071 = vmatpush3.msra.mxu1 %v6155_v62  ;;  %10072 = vmatprep.mubr.msk.f32.mxu1 %vm10986_vm1, %v10985_v48 }
0x3887   :  { %v12105_v0 = vmul.f32 %v10549_v53, %v10545_v50  ;;  %10080 = vmatprep.subr.mxu1 %v10985_v48 }
0x3889   :  { %10073 = vmatmul.mubr.msk.f32.vlgmr.msra.gmra.mrb[60].mxu1 %vm488_vm2, %v12105_v0 }
0x388a   :  { %10081 = vmatpush3.msra.mxu1 %v11977_v33  ;;  %10082 = vmatprep.mubr.msk.f32.mxu1 %vm10986_vm1, %v10985_v48  ;;  %v6377_v33 = vpop.permute.xlu0 %6376 }
0x388b   :  { %10090 = vmatprep.subr.mxu1 %v10985_v48 }
0x3958   :  { %v6055_v61 = vpop.f32.mrb[58].mxu1 }
0x3959   :  { %v10064_v2 = vpop.f32.mrb[59].mxu1  ;;  %10083 = vmatmul.mubr.msk.f32.vlgmr.msra.gmra.mrb[62].mxu1 %vm488_vm2, %v6055_v61 }
0x395a   :  { %10092 = vmatprep.mubr.msk.f32.mxu1 %vm10986_vm1, %v10985_v48  ;;  %v9346_v2 = vld [vmem:[#allocation8] ss:$0 sm:$0xff] }
0x395c   :  { %v6225_v4 = vpop.f32.mrb[60].mxu1 }
0x395d   :  { %v10074_v17 = vpop.f32.mrb[61].mxu1  ;;  %10078 = vmatmul.mubr.msk.f32.vlgmr.msra.gmra.mrb[78].mxu0 %vm488_vm2, %v6225_v4  ;;  %v6871_v4 = vadd.f32 %v9346_v2, %v12097_v58 }
0x395e   :  { %10086 = vmatpush3.xpose.msk.msra.mxu0 %vm488_vm2, %v6379_v8  ;;  %10087 = vmatprep.mubr.msk.f32.mxu0 %vm10986_vm1, %v10985_v48 }
0x395f   :  { %10095 = vmatprep.subr.mxu0 %v10985_v48  ;;  %v6873_v17 = vmul.f32 2.0, %v6871_v4 }
0x3961   :  { %10088 = vmatmul.mubr.msk.f32.vlgmr.msra.gmra.mrb[80].mxu0 %vm488_vm2, %v6377_v33 }
0x3962   :  { %10096 = vmatpush3.msra.mxu0 %v12037_v35  ;;  %10097 = vmatprep.mubr.msk.f32.mxu0 %vm10986_vm1, %v10985_v48 }
0x3963   :  { %10105 = vmatprep.subr.mxu0 %v10985_v48 }
0x3a2c   :  { %v6372_v18 = vpop.f32.mrb[62].mxu1 }
0x3a2d   :  { %v10084_v36 = vpop.f32.mrb[63].mxu1 }
0x3a30   :  { %v6299_v23 = vpop.f32.mrb[78].mxu0 }
0x3a31   :  { %v6373_v25 = vadd.f32 %v6372_v18, %v6299_v23  ;;  %v10079_v26 = vpop.f32.mrb[79].mxu0  ;;  %v6875_v18 = vsel %vm266_vm0, %v6873_v17, 0.0 }
0x3a34   :  { %v6450_v27 = vpop.f32.mrb[80].mxu0 }
0x3a35   :  { %v10089_v51 = vpop.f32.mrb[81].mxu0  ;;  %v6454_v6 = vsel %vm488_vm2, %v6450_v27, -inf }
0x3a36   :  { %6455 = vmax.xlane.f32.xlu0 %v6454_v6 }
0x3a4c   :  { %6470 = vrot.lane.b32.xlu0 %v11942_v7, %s10996_s3 }
0x3a50   :  { %6620 = vrot.lane.b32.xlu0 %v11942_v7, %s10995_s28 }
0x3ac3   :  { %v6456_v35 = vpop.xlane.xlu0 %6455 }
0x3ac4   :  { %v6457_v29 = vsub.f32 %v6450_v27, %v6456_v35 }
0x3ac6   :  { %v6458_v44 = vmul.f32 1.442695, %v6457_v29 }
0x3ac7   :  { %v6471_v47 = vpop.permute.xlu0 %6470 }
0x3ac8   :  { %10550 = vpow2.f32 %v6458_v44  ;;  %10091 = vmatpush3.msra.mxu1 %v6471_v47 }
0x3ac9   :  { %10100 = vmatprep.subr.mxu1 %v10985_v48 }
0x3acb   :  { %v6621_v52 = vpop.permute.xlu0 %6620 }
0x3ad2   :  { %v10551_v30 = vpop.eup %10550 }
0x3ad3   :  { %v6460_v15 = vsel %vm488_vm2, %v10551_v30, 0.0 }
0x3ad4   :  { %6461 = vadd.xlane.f32.xlu1 %v6460_v15 }
0x3ae5   :  { %6622 = vrot.lane.b32.xlu1 %v11942_v7, %s10994_s6 }
0x3b61   :  { %v6462_v38 = vpop.xlane.xlu1 %6461 }
0x3b62   :  { %10552 = vrcp.f32 %v6462_v38 }
0x3b65   :  { %v6623_v50 = vpop.permute.xlu1 %6622 }
0x3b6c   :  { %v10553_v41 = vpop.eup %10552 }
0x3b6d   :  { %v12136_v49 = vmul.f32 %v10553_v41, %v10551_v30 }
0x3b6f   :  { %10093 = vmatmul.mubr.msk.f32.vlgmr.msra.gmra.mrb[64].mxu1 %vm488_vm2, %v12136_v49 }
0x3b70   :  { %10101 = vmatpush3.xpose.msk.msra.mxu1 %vm488_vm2, %v6623_v50  ;;  %10102 = vmatprep.mubr.msk.f32.mxu1 %vm10986_vm1, %v10985_v48 }
0x3b71   :  { %10110 = vmatprep.subr.mxu1 %v10985_v48 }
0x3b73   :  { %10103 = vmatmul.mubr.msk.f32.vlgmr.msra.gmra.mrb[66].mxu1 %vm488_vm2, %v6621_v52 }
0x3b74   :  { %10111 = vmatpush3.msra.mxu1 %v12077_v10  ;;  %10112 = vmatprep.mubr.msk.f32.mxu1 %vm10986_vm1, %v10985_v48 }
0x3b75   :  { %10126 = vmatprep.subr.mxu1 %v10985_v48 }
0x3c42   :  { %v6541_v55 = vpop.f32.mrb[64].mxu1 }
0x3c43   :  { %v10094_v40 = vpop.f32.mrb[65].mxu1  ;;  %10098 = vmatmul.mubr.msk.f32.vlgmr.msra.gmra.mrb[82].mxu0 %vm488_vm2, %v6541_v55 }
0x3c44   :  { %10107 = vmatprep.mubr.msk.f32.mxu0 %vm10986_vm1, %v10985_v48 }
0x3c46   :  { %v6694_v45 = vpop.f32.mrb[66].mxu1 }
0x3c47   :  { %v10104_v59 = vpop.f32.mrb[67].mxu1  ;;  %v6698_v9 = vsel %vm488_vm2, %v6694_v45, -inf }
0x3c48   :  { %6699 = vmax.xlane.f32.xlu0 %v6698_v9 }
0x3c5e   :  { %6714 = vrot.lane.b32.xlu0 %v11942_v7, %s10997_s15 }
0x3cd5   :  { %v6700_v10 = vpop.xlane.xlu0 %6699 }
0x3cd6   :  { %v6701_v62 = vsub.f32 %v6694_v45, %v6700_v10 }
0x3cd8   :  { %v6702_v53 = vmul.f32 1.442695, %v6701_v62 }
0x3cd9   :  { %v6715_v61 = vpop.permute.xlu0 %6714 }
0x3cda   :  { %10554 = vpow2.f32 %v6702_v53  ;;  %10106 = vmatpush3.msra.mxu0 %v6715_v61 }
0x3ce4   :  { %v10555_v8 = vpop.eup %10554 }
0x3ce5   :  { %v6704_v33 = vsel %vm488_vm2, %v10555_v8, 0.0 }
0x3ce6   :  { %6705 = vadd.xlane.f32.xlu1 %v6704_v33 }
0x3cea   :  { %6876 = vadd.xlane.f32.xlu1 %v6875_v18  ;;  %v6919_v18 = vld [vmem:[%s12664_s8] sm:$0xff] }
0x3d16   :  { %v6615_v36 = vpop.f32.mrb[82].mxu0 }
0x3d17   :  { %v6619_v23 = vadd.f32 %v6615_v36, %v6373_v25  ;;  %v10099_v7 = vpop.f32.mrb[83].mxu0  ;;  %v6920_v36 = vld [vmem:[%s12664_s8 + $0x8] sm:$0xff] }
0x3d18   :  { %v6921_v7 = vld [vmem:[%s12664_s8 + $0x10] sm:$0xff] }
0x3d73   :  { %v6706_v26 = vpop.xlane.xlu1 %6705 }
0x3d74   :  { %10556 = vrcp.f32 %v6706_v26  ;;  %v6922_v26 = vld [vmem:[%s12664_s8 + $0x18] sm:$0xff] }
0x3d77   :  { %v6877_v35 = vpop.xlane.xlu1 %6876 }
0x3d78   :  { %v6881_v29 = vmul.f32 0.03125, %v6877_v35 }
0x3d7a   :  { %v6883_v30 = vsub.f32 %v6873_v17, %v6881_v29 }
0x3d7c   :  { %v6885_v50 = vmul.f32 %v6883_v30, %v6883_v30 }
0x3d7e   :  { %v10557_v27 = vpop.eup %10556  ;;  %v6887_v52 = vsel %vm266_vm0, %v6885_v50, 0.0 }
0x3d7f   :  { %v12158_v51 = vmul.f32 %v10557_v27, %v10555_v8  ;;  %v9348_v8 = vld [vmem:[#allocation22] ss:$0 sm:$0xff]  ;;  %v10368_v27 = vpack.c.bf16 %v6922_v26, %v6921_v7 }
0x3d81   :  { %10108 = vmatmul.mubr.msk.f32.vlgmr.msra.gmra.mrb[84].mxu0 %vm488_vm2, %v12158_v51 }
0x3e54   :  { %v6785_v58 = vpop.f32.mrb[84].mxu0 }
0x3e55   :  { %v10109_v6 = vpop.f32.mrb[85].mxu0  ;;  %10113 = vmatmul.mubr.msk.f32.vlgmr.msra.gmra.mrb[68].mxu1 %vm488_vm2, %v6785_v58 }
0x3e56   :  { %10128 = vmatprep.mubr.msk.f32.mxu1 %vm10986_vm1, %v10985_v48 }
0x3f28   :  { %v6859_v44 = vpop.f32.mrb[68].mxu1 }
0x3f29   :  { %v6863_v25 = vadd.f32 %v6859_v44, %v6619_v23  ;;  %v10114_v47 = vpop.f32.mrb[69].mxu1  ;;  %v10364_v23 = vpack.c.bf16 %v6920_v36, %v6919_v18 }
0x3f2b   :  { %v6872_v15 = vadd.f32 %v9346_v2, %v6863_v25  ;;  %v9347_v2 = vld [vmem:[#allocation20] ss:$0 sm:$0xff]  ;;  %10365 = vmatprep.subr.bf16.mxu0 %v10364_v23 }
0x3f2c   :  { %10367 = vmatpush3.bf16.msra.mxu0 %v10364_v23 }
0x3f2d   :  { %v6874_v38 = vmul.f32 2.0, %v6872_v15  ;;  %10369 = vmatprep.subr.bf16.mxu0 %v10368_v27 }
0x3f2f   :  { %v6878_v41 = vsel %vm266_vm0, %v6874_v38, 0.0 }
0x3f30   :  { %6879 = vadd.xlane.f32.xlu1 %v6878_v41  ;;  %10371 = vmatpush3.bf16.msra.mxu0 %v10368_v27 }
0x3f31   :  { %10136 = vmatprep.subr.mxu0 %v10985_v48 }
0x3f34   :  { %6888 = vadd.xlane.f32.xlu1 %v6887_v52 }
0x3fbd   :  { %v6880_v55 = vpop.xlane.xlu1 %6879 }
0x3fbe   :  { %v6882_v40 = vmul.f32 0.03125, %v6880_v55 }
0x3fc0   :  { %v6884_v45 = vsub.f32 %v6874_v38, %v6882_v40 }
0x3fc1   :  { %v6889_v59 = vpop.xlane.xlu1 %6888 }
0x3fc2   :  { %v6893_v9 = vmul.f32 0.03125, %v6889_v59  ;;  %v6886_v10 = vmul.f32 %v6884_v45, %v6884_v45 }
0x3fc4   :  { %v6895_v62 = vadd.f32 1e-05, %v6893_v9  ;;  %v6890_v53 = vsel %vm266_vm0, %v6886_v10, 0.0 }
0x3fc5   :  { %6891 = vadd.xlane.f32.xlu0 %v6890_v53 }
0x3fc6   :  { %10558 = vrsqrt.f32 %v6895_v62 }
0x3fd0   :  { %v10559_v61 = vpop.eup %10558 }
0x3fd1   :  { %v6899_v4 = vmul.f32 %v10559_v61, %v6883_v30  ;;  %v9349_v30 = vld [vmem:[#allocation11] ss:$0 sm:$0xff] }
0x3fd3   :  { %v6908_v17 = vmul.f32 %v9347_v2, %v6899_v4 }
0x3fd5   :  { %v6917_v33 = vadd.f32 %v9348_v8, %v6908_v17 }
0x3fd7   :  { %10123 = vmatprep.mubr.msk.f32.mxu0 %vm266_vm0, %v6917_v33 }
0x4052   :  { %v6892_v58 = vpop.xlane.xlu0 %6891 }
0x4053   :  { %v6894_v6 = vmul.f32 0.03125, %v6892_v58 }
0x4055   :  { %v6896_v35 = vadd.f32 1e-05, %v6894_v6 }
0x4057   :  { %10560 = vrsqrt.f32 %v6896_v35  ;;  %v12231_v35 = vld [vmem:[%s12666_s10] sm:$0xff] }
0x4061   :  { %v10561_v29 = vpop.eup %10560 }
0x4062   :  { %v6900_v44 = vmul.f32 %v10561_v29, %v6884_v45  ;;  %v12237_v29 = vld [vmem:[%s12666_s10 + $0x8] sm:$0xff] }
0x4064   :  { %v6909_v25 = vmul.f32 %v9347_v2, %v6900_v44 }
0x4066   :  { %v6918_v47 = vadd.f32 %v9348_v8, %v6909_v25 }
0x4068   :  { %10124 = vmatmul.mubr.msk.f32.vlgmr.msra.gmra.mrb[86].mxu0 %vm266_vm0, %v6918_v47 }
0x4069   :  { %10138 = vmatprep.mubr.msk.f32.mxu0 %vm10986_vm1, %v10985_v48 }
0x413b   :  { %v10125_v15 = vpop.f32.mrb[86].mxu0 }
0x413c   :  { %v12185_v38 = vadd.f32 %v10125_v15, %v9349_v30  ;;  %v7002_v41 = vpop.f32.mrb[87].mxu0 }
0x413d   :  { %v12187_v50 = vadd.f32 %v9349_v30, %v7002_v41 }
0x413f   :  { %7177 = vrot.lane.b32.xlu1 %v12187_v50, %s10990_s24  ;;  %10127 = vmatpush3.xpose.msk.msra.mxu1 %vm488_vm2, %v12187_v50 }
0x4140   :  { %10131 = vmatprep.subr.mxu1 %v10985_v48 }
0x4142   :  { %10129 = vmatmul.mubr.msk.f32.vlgmr.msra.gmra.mrb[70].mxu1 %vm488_vm2, %v11588_v21 }
0x4143   :  { %10133 = vmatprep.mubr.msk.f32.mxu1 %vm10986_vm1, %v10985_v48 }
0x41b1   :  { %v7178_v52 = vpop.permute.xlu1 %7177 }
0x41b2   :  { %10137 = vmatpush3.xpose.msk.msra.mxu0 %vm488_vm2, %v7178_v52 }
0x41b3   :  { %10146 = vmatprep.subr.mxu0 %v10985_v48 }
0x41b5   :  { %10139 = vmatmul.mubr.msk.f32.vlgmr.msra.gmra.mrb[88].mxu0 %vm488_vm2, %v11634_v16 }
0x41b6   :  { %10148 = vmatprep.mubr.msk.f32.mxu0 %vm10986_vm1, %v10985_v48  ;;  %10147 = vmatpush3.msra.mxu0 %v12237_v29 }
0x41b7   :  { %10156 = vmatprep.subr.mxu0 %v10985_v48 }
0x4215   :  { %v7080_v55 = vpop.f32.mrb[70].mxu1 }
0x4216   :  { %v10130_v40 = vpop.f32.mrb[71].mxu1  ;;  %v7084_v45 = vsel %vm488_vm2, %v7080_v55, -inf }
0x4217   :  { %7085 = vmax.xlane.f32.xlu1 %v7084_v45 }
0x4228   :  { %7268 = vrot.lane.b32.xlu1 %v12187_v50, %s10988_s1 }
0x4288   :  { %v7247_v21 = vpop.f32.mrb[88].mxu0 }
0x4289   :  { %v10140_v59 = vpop.f32.mrb[89].mxu0  ;;  %v7251_v9 = vsel %vm488_vm2, %v7247_v21, -inf }
0x428a   :  { %7252 = vmax.xlane.f32.xlu0 %v7251_v9 }
0x42a4   :  { %v7086_v10 = vpop.xlane.xlu1 %7085 }
0x42a5   :  { %v7087_v62 = vsub.f32 %v7080_v55, %v7086_v10 }
0x42a7   :  { %v7088_v53 = vmul.f32 1.442695, %v7087_v62 }
0x42a8   :  { %v7269_v27 = vpop.permute.xlu1 %7268 }
0x42a9   :  { %10562 = vpow2.f32 %v7088_v53 }
0x42b3   :  { %v10563_v16 = vpop.eup %10562 }
0x42b4   :  { %v7090_v61 = vsel %vm488_vm2, %v10563_v16, 0.0 }
0x42b5   :  { %7091 = vadd.xlane.f32.xlu0 %v7090_v61 }
0x4317   :  { %v7253_v2 = vpop.xlane.xlu0 %7252 }
0x4318   :  { %v7254_v4 = vsub.f32 %v7247_v21, %v7253_v2 }
0x431a   :  { %v7255_v8 = vmul.f32 1.442695, %v7254_v4 }
0x431c   :  { %10564 = vpow2.f32 %v7255_v8 }
0x4326   :  { %v10565_v17 = vpop.eup %10564 }
0x4327   :  { %v7257_v33 = vsel %vm488_vm2, %v10565_v17, 0.0 }
0x4328   :  { %7258 = vadd.xlane.f32.xlu0 %v7257_v33  ;;  %v12276_v33 = vld [vmem:[%s12666_s10 + $0x10] sm:$0xff] }
0x433e   :  { %7101 = vrot.lane.b32.xlu0 %v12187_v50, %s10987_s9 }
0x4342   :  { %7490 = vrot.lane.b32.xlu0 %v12187_v50, %s10992_s11  ;;  %v7092_v18 = vpop.xlane.xlu0 %7091 }
0x4343   :  { %10566 = vrcp.f32 %v7092_v18 }
0x434d   :  { %v10567_v23 = vpop.eup %10566 }
0x434e   :  { %v12214_v7 = vmul.f32 %v10567_v23, %v10563_v16 }
0x43b5   :  { %v7259_v36 = vpop.xlane.xlu0 %7258 }
0x43b6   :  { %10568 = vrcp.f32 %v7259_v36 }
0x43b9   :  { %v7102_v26 = vpop.permute.xlu0 %7101 }
0x43ba   :  { %10132 = vmatpush3.msra.mxu1 %v7102_v26 }
0x43bb   :  { %10134 = vmatmul.mubr.msk.f32.vlgmr.msra.gmra.mrb[72].mxu1 %vm488_vm2, %v12214_v7  ;;  %10141 = vmatprep.subr.mxu1 %v10985_v48 }
0x43bc   :  { %10142 = vmatpush3.msra.mxu1 %v7269_v27  ;;  %10143 = vmatprep.mubr.msk.f32.mxu1 %vm10986_vm1, %v10985_v48 }
0x43bd   :  { %10151 = vmatprep.subr.mxu1 %v10985_v48  ;;  %v7491_v30 = vpop.permute.xlu0 %7490 }
0x43c0   :  { %v10569_v58 = vpop.eup %10568 }
0x43c1   :  { %v12222_v6 = vmul.f32 %v10569_v58, %v10565_v17 }
0x43c3   :  { %10144 = vmatmul.mubr.msk.f32.vlgmr.msra.gmra.mrb[74].mxu1 %vm488_vm2, %v12222_v6 }
0x43c4   :  { %10153 = vmatprep.mubr.msk.f32.mxu1 %vm10986_vm1, %v10985_v48  ;;  %10152 = vmatpush3.msra.mxu1 %v12231_v35 }
0x43c5   :  { %10161 = vmatprep.subr.mxu1 %v10985_v48 }
0x448e   :  { %v7172_v44 = vpop.f32.mrb[72].mxu1 }
0x448f   :  { %v10135_v25 = vpop.f32.mrb[73].mxu1  ;;  %10154 = vmatmul.mubr.msk.f32.vlgmr.msra.gmra.mrb[76].mxu1 %vm488_vm2, %v7172_v44 }
0x4490   :  { %10163 = vmatprep.mubr.msk.f32.mxu1 %vm10986_vm1, %v10985_v48 }
0x4496   :  { %v7339_v47 = vpop.f32.mrb[74].mxu1 }
0x4497   :  { %v10145_v15 = vpop.f32.mrb[75].mxu1  ;;  %10149 = vmatmul.mubr.msk.f32.vlgmr.msra.gmra.mrb[90].mxu0 %vm488_vm2, %v7339_v47 }
0x4498   :  { %10157 = vmatpush3.xpose.msk.msra.mxu0 %vm488_vm2, %v7491_v30  ;;  %10158 = vmatprep.mubr.msk.f32.mxu0 %vm10986_vm1, %v10985_v48 }
0x4499   :  { %10166 = vmatprep.subr.mxu0 %v10985_v48 }
0x449b   :  { %10159 = vmatmul.mubr.msk.f32.vlgmr.msra.gmra.mrb[92].mxu0 %vm488_vm2, %v11688_v57 }
0x449c   :  { %10168 = vmatprep.mubr.msk.f32.mxu0 %vm10986_vm1, %v10985_v48  ;;  %10167 = vmatpush3.msra.mxu0 %v12276_v33 }
0x449d   :  { %10176 = vmatprep.subr.mxu0 %v10985_v48 }
0x4562   :  { %v7486_v41 = vpop.f32.mrb[76].mxu1 }
0x4563   :  { %v10155_v52 = vpop.f32.mrb[77].mxu1 }
0x456a   :  { %v7413_v55 = vpop.f32.mrb[90].mxu0 }
0x456b   :  { %v7487_v40 = vadd.f32 %v7486_v41, %v7413_v55  ;;  %v10150_v45 = vpop.f32.mrb[91].mxu0 }
0x456e   :  { %v7560_v21 = vpop.f32.mrb[92].mxu0 }
0x456f   :  { %v10160_v59 = vpop.f32.mrb[93].mxu0  ;;  %v7564_v9 = vsel %vm488_vm2, %v7560_v21, -inf }
0x4570   :  { %7565 = vmax.xlane.f32.xlu0 %v7564_v9 }
0x4586   :  { %7581 = vrot.lane.b32.xlu0 %v12187_v50, %s10993_s27 }
0x45fd   :  { %v7566_v10 = vpop.xlane.xlu0 %7565 }
0x45fe   :  { %v7567_v62 = vsub.f32 %v7560_v21, %v7566_v10 }
0x4600   :  { %v7568_v53 = vmul.f32 1.442695, %v7567_v62 }
0x4601   :  { %v7582_v57 = vpop.permute.xlu0 %7581 }
0x4602   :  { %10570 = vpow2.f32 %v7568_v53  ;;  %10162 = vmatpush3.msra.mxu1 %v7582_v57 }
0x4603   :  { %10171 = vmatprep.subr.mxu1 %v10985_v48 }
0x460c   :  { %v10571_v16 = vpop.eup %10570 }
0x460d   :  { %v7570_v61 = vsel %vm488_vm2, %v10571_v16, 0.0 }
0x460e   :  { %7571 = vadd.xlane.f32.xlu1 %v7570_v61 }
0x461f   :  { %7731 = vrot.lane.b32.xlu1 %v12187_v50, %s10995_s28 }
0x469b   :  { %v7572_v2 = vpop.xlane.xlu1 %7571 }
0x469c   :  { %10572 = vrcp.f32 %v7572_v2 }
0x469f   :  { %v7732_v17 = vpop.permute.xlu1 %7731 }
0x46a6   :  { %v10573_v4 = vpop.eup %10572 }
0x46a7   :  { %v12261_v8 = vmul.f32 %v10573_v4, %v10571_v16 }
0x46a9   :  { %10164 = vmatmul.mubr.msk.f32.vlgmr.msra.gmra.mrb[78].mxu1 %vm488_vm2, %v12261_v8 }
0x46aa   :  { %10172 = vmatpush3.xpose.msk.msra.mxu1 %vm488_vm2, %v7732_v17  ;;  %10173 = vmatprep.mubr.msk.f32.mxu1 %vm10986_vm1, %v10985_v48 }
0x46ab   :  { %10181 = vmatprep.subr.mxu1 %v10985_v48 }
0x46ad   :  { %10174 = vmatmul.mubr.msk.f32.vlgmr.msra.gmra.mrb[80].mxu1 %vm488_vm2, %v11711_v13 }
0x46ae   :  { %10183 = vmatprep.mubr.msk.f32.mxu1 %vm10986_vm1, %v10985_v48 }
0x477c   :  { %v7652_v18 = vpop.f32.mrb[78].mxu1 }
0x477d   :  { %v10165_v36 = vpop.f32.mrb[79].mxu1  ;;  %10169 = vmatmul.mubr.msk.f32.vlgmr.msra.gmra.mrb[94].mxu0 %vm488_vm2, %v7652_v18 }
0x477e   :  { %10178 = vmatprep.mubr.msk.f32.mxu0 %vm10986_vm1, %v10985_v48 }
0x4780   :  { %v7801_v13 = vpop.f32.mrb[80].mxu1 }
0x4781   :  { %v10175_v23 = vpop.f32.mrb[81].mxu1  ;;  %v7805_v26 = vsel %vm488_vm2, %v7801_v13, -inf }
0x4782   :  { %7806 = vmax.xlane.f32.xlu0 %v7805_v26 }
0x4798   :  { %7822 = vrot.lane.b32.xlu0 %v12187_v50, %s10994_s6 }
0x480f   :  { %v7807_v27 = vpop.xlane.xlu0 %7806 }
0x4810   :  { %v7808_v58 = vsub.f32 %v7801_v13, %v7807_v27 }
0x4812   :  { %v7809_v44 = vmul.f32 1.442695, %v7808_v58 }
0x4813   :  { %v7823_v25 = vpop.permute.xlu0 %7822 }
0x4814   :  { %10574 = vpow2.f32 %v7809_v44  ;;  %10177 = vmatpush3.msra.mxu0 %v7823_v25 }
0x4815   :  { %10186 = vmatprep.subr.mxu0 %v10985_v48 }
0x481e   :  { %v10575_v47 = vpop.eup %10574 }
0x481f   :  { %v7811_v30 = vsel %vm488_vm2, %v10575_v47, 0.0 }
0x4820   :  { %7812 = vadd.xlane.f32.xlu1 %v7811_v30 }
0x4831   :  { %8137 = vrot.lane.b32.xlu1 %v12185_v38, %s10990_s24 }
0x4850   :  { %v7726_v15 = vpop.f32.mrb[94].mxu0 }
0x4851   :  { %v7730_v41 = vadd.f32 %v7726_v15, %v7487_v40  ;;  %v10170_v52 = vpop.f32.mrb[95].mxu0 }
0x48ad   :  { %v7813_v55 = vpop.xlane.xlu1 %7812 }
0x48ae   :  { %10576 = vrcp.f32 %v7813_v55 }
0x48b1   :  { %v8138_v21 = vpop.permute.xlu1 %8137 }
0x48b8   :  { %v10577_v50 = vpop.eup %10576 }
0x48b9   :  { %v12290_v45 = vmul.f32 %v10577_v50, %v10575_v47 }
0x48bb   :  { %10179 = vmatmul.mubr.msk.f32.vlgmr.msra.gmra.mrb[96].mxu0 %vm488_vm2, %v12290_v45 }
0x48bc   :  { %10187 = vmatpush3.xpose.msk.msra.mxu0 %vm488_vm2, %v12185_v38  ;;  %10188 = vmatprep.mubr.msk.f32.mxu0 %vm10986_vm1, %v10985_v48 }
0x48bd   :  { %10196 = vmatprep.subr.mxu0 %v10985_v48 }
0x48bf   :  { %10189 = vmatmul.mubr.msk.f32.vlgmr.msra.gmra.mrb[98].mxu0 %vm488_vm2, %v11358_v46  ;;  %v12314_v46 = vld [vmem:[%s12666_s10 + $0x18] sm:$0xff]  ;;  %s10998_s10 = smov 16  }
0x48c0   :  { %10197 = vmatpush3.xpose.msk.msra.mxu0 %vm488_vm2, %v8138_v21  ;;  %10198 = vmatprep.mubr.msk.f32.mxu0 %vm10986_vm1, %v10985_v48 }
0x48c1   :  { %10206 = vmatprep.subr.mxu0 %v10985_v48  ;;  %10182 = vmatpush3.msra.mxu1 %v12314_v46 }
0x48c2   :  { %10191 = vmatprep.subr.mxu1 %v10985_v48 }
0x48c3   :  { %10199 = vmatmul.mubr.msk.f32.vlgmr.msra.gmra.mrb[100].mxu0 %vm488_vm2, %v11751_v14 }
0x48c4   :  { %10207 = vmatpush3.msra.mxu0 %v12237_v29  ;;  %10208 = vmatprep.mubr.msk.f32.mxu0 %vm10986_vm1, %v10985_v48 }
0x48c5   :  { %10216 = vmatprep.subr.mxu0 %v10985_v48 }
0x498e   :  { %v7893_v40 = vpop.f32.mrb[96].mxu0 }
0x498f   :  { %v10180_v59 = vpop.f32.mrb[97].mxu0  ;;  %10184 = vmatmul.mubr.msk.f32.vlgmr.msra.gmra.mrb[82].mxu1 %vm488_vm2, %v7893_v40 }
0x4990   :  { %10193 = vmatprep.mubr.msk.f32.mxu1 %vm10986_vm1, %v10985_v48 }
0x4992   :  { %v8041_v14 = vpop.f32.mrb[98].mxu0 }
0x4993   :  { %v10190_v29 = vpop.f32.mrb[99].mxu0  ;;  %v8045_v9 = vsel %vm488_vm2, %v8041_v14, -inf }
0x4994   :  { %8046 = vmax.xlane.f32.xlu0 %v8045_v9 }
0x4996   :  { %v8207_v10 = vpop.f32.mrb[100].mxu0 }
0x4997   :  { %v10200_v62 = vpop.f32.mrb[101].mxu0  ;;  %v8211_v53 = vsel %vm488_vm2, %v8207_v10, -inf }
0x4998   :  { %8212 = vmax.xlane.f32.xlu1 %v8211_v53 }
0x49a9   :  { %8227 = vrot.lane.b32.xlu1 %v12185_v38, %s10988_s1 }
0x49ad   :  { %8449 = vrot.lane.b32.xlu1 %v12185_v38, %s10992_s11 }
0x4a21   :  { %v8047_v57 = vpop.xlane.xlu0 %8046 }
0x4a22   :  { %v8048_v16 = vsub.f32 %v8041_v14, %v8047_v57 }
0x4a24   :  { %v8049_v61 = vmul.f32 1.442695, %v8048_v16 }
0x4a25   :  { %v8213_v2 = vpop.xlane.xlu1 %8212 }
0x4a26   :  { %10578 = vpow2.f32 %v8049_v61  ;;  %v8214_v4 = vsub.f32 %v8207_v10, %v8213_v2 }
0x4a28   :  { %v8215_v17 = vmul.f32 1.442695, %v8214_v4 }
0x4a29   :  { %v8228_v52 = vpop.permute.xlu1 %8227 }
0x4a2a   :  { %10580 = vpow2.f32 %v8215_v17 }
0x4a2d   :  { %v8450_v59 = vpop.permute.xlu1 %8449 }
0x4a30   :  { %v10579_v18 = vpop.eup %10578 }
0x4a31   :  { %v8051_v36 = vsel %vm488_vm2, %v10579_v18, 0.0 }
0x4a32   :  { %8052 = vadd.xlane.f32.xlu0 %v8051_v36 }
0x4a34   :  { %v10581_v13 = vpop.eup %10580 }
0x4a35   :  { %v8217_v23 = vsel %vm488_vm2, %v10581_v13, 0.0 }
0x4a36   :  { %8218 = vadd.xlane.f32.xlu0 %v8217_v23 }
0x4a4c   :  { %8061 = vrot.lane.b32.xlu0 %v12185_v38, %s10987_s9 }
0x4a62   :  { %v7967_v26 = vpop.f32.mrb[82].mxu1 }
0x4a63   :  { %v12331_v27 = vadd.f32 %v7967_v26, %v7730_v41  ;;  %v10185_v58 = vpop.f32.mrb[83].mxu1  ;;  %v12380_v26 = vld [vmem:[#allocation13] ss:$0 sm:$0xff] }
0x4abf   :  { %v8053_v44 = vpop.xlane.xlu0 %8052 }
0x4ac0   :  { %10582 = vrcp.f32 %v8053_v44  ;;  %v8936_v44 = vadd.f32 %v12380_v26, %v12331_v27 }
0x4ac3   :  { %v8219_v25 = vpop.xlane.xlu0 %8218 }
0x4ac4   :  { %10584 = vrcp.f32 %v8219_v25 }
0x4ac7   :  { %v8062_v47 = vpop.permute.xlu0 %8061 }
0x4ac8   :  { %10192 = vmatpush3.msra.mxu1 %v8062_v47 }
0x4ac9   :  { %10201 = vmatprep.subr.mxu1 %v10985_v48 }
0x4aca   :  { %v10583_v30 = vpop.eup %10582 }
0x4acb   :  { %v12334_v15 = vmul.f32 %v10583_v30, %v10579_v18  ;;  %v8938_v30 = vmul.f32 2.0, %v8936_v44  ;;  %v8985_v44 = vld [vmem:[%s12668_s12 + $0x8] sm:$0xff] }
0x4acd   :  { %10194 = vmatmul.mubr.msk.f32.vlgmr.msra.gmra.mrb[84].mxu1 %vm488_vm2, %v12334_v15 }
0x4ace   :  { %v10585_v55 = vpop.eup %10584  ;;  %10202 = vmatpush3.msra.mxu1 %v8228_v52  ;;  %10203 = vmatprep.mubr.msk.f32.mxu1 %vm10986_vm1, %v10985_v48  ;;  %v8940_v52 = vsel %vm266_vm0, %v8938_v30, 0.0 }
0x4acf   :  { %v12340_v41 = vmul.f32 %v10585_v55, %v10581_v13  ;;  %10211 = vmatprep.subr.mxu1 %v10985_v48 }
0x4ad1   :  { %10204 = vmatmul.mubr.msk.f32.vlgmr.msra.gmra.mrb[86].mxu1 %vm488_vm2, %v12340_v41 }
0x4ad2   :  { %10212 = vmatpush3.msra.mxu1 %v12231_v35  ;;  %10213 = vmatprep.mubr.msk.f32.mxu1 %vm10986_vm1, %v10985_v48 }
0x4ad3   :  { %10221 = vmatprep.subr.mxu1 %v10985_v48 }
0x4ba0   :  { %v8132_v50 = vpop.f32.mrb[84].mxu1 }
0x4ba1   :  { %v10195_v21 = vpop.f32.mrb[85].mxu1  ;;  %10214 = vmatmul.mubr.msk.f32.vlgmr.msra.gmra.mrb[88].mxu1 %vm488_vm2, %v8132_v50 }
0x4ba2   :  { %10223 = vmatprep.mubr.msk.f32.mxu1 %vm10986_vm1, %v10985_v48 }
0x4ba4   :  { %v8298_v40 = vpop.f32.mrb[86].mxu1 }
0x4ba5   :  { %v10205_v14 = vpop.f32.mrb[87].mxu1  ;;  %10209 = vmatmul.mubr.msk.f32.vlgmr.msra.gmra.mrb[102].mxu0 %vm488_vm2, %v8298_v40 }
0x4ba6   :  { %10217 = vmatpush3.xpose.msk.msra.mxu0 %vm488_vm2, %v8450_v59  ;;  %10218 = vmatprep.mubr.msk.f32.mxu0 %vm10986_vm1, %v10985_v48 }
0x4ba7   :  { %10226 = vmatprep.subr.mxu0 %v10985_v48 }
0x4ba9   :  { %10219 = vmatmul.mubr.msk.f32.vlgmr.msra.gmra.mrb[104].mxu0 %vm488_vm2, %v11807_v20 }
0x4baa   :  { %10227 = vmatpush3.msra.mxu0 %v12276_v33  ;;  %10228 = vmatprep.mubr.msk.f32.mxu0 %vm10986_vm1, %v10985_v48 }
0x4bab   :  { %10236 = vmatprep.subr.mxu0 %v10985_v48 }
0x4c74   :  { %v8445_v35 = vpop.f32.mrb[88].mxu1 }
0x4c75   :  { %v10215_v29 = vpop.f32.mrb[89].mxu1 }
0x4c78   :  { %v8372_v9 = vpop.f32.mrb[102].mxu0 }
0x4c79   :  { %v8446_v10 = vadd.f32 %v8445_v35, %v8372_v9  ;;  %v10210_v62 = vpop.f32.mrb[103].mxu0 }
0x4c7c   :  { %v8519_v53 = vpop.f32.mrb[104].mxu0 }
0x4c7d   :  { %v10220_v57 = vpop.f32.mrb[105].mxu0  ;;  %v8523_v16 = vsel %vm488_vm2, %v8519_v53, -inf }
0x4c7e   :  { %8524 = vmax.xlane.f32.xlu1 %v8523_v16 }
0x4c8f   :  { %8689 = vrot.lane.b32.xlu1 %v12185_v38, %s10995_s28 }
0x4d0b   :  { %v8525_v20 = vpop.xlane.xlu1 %8524 }
0x4d0c   :  { %v8526_v33 = vsub.f32 %v8519_v53, %v8525_v20 }
0x4d0e   :  { %v8527_v61 = vmul.f32 1.442695, %v8526_v33 }
0x4d0f   :  { %v8690_v23 = vpop.permute.xlu1 %8689 }
0x4d10   :  { %10586 = vpow2.f32 %v8527_v61 }
0x4d1a   :  { %v10587_v2 = vpop.eup %10586 }
0x4d1b   :  { %v8529_v4 = vsel %vm488_vm2, %v10587_v2, 0.0 }
0x4d1c   :  { %8530 = vadd.xlane.f32.xlu0 %v8529_v4 }
0x4d32   :  { %8539 = vrot.lane.b32.xlu0 %v12185_v38, %s10993_s27 }
0x4da9   :  { %v8531_v17 = vpop.xlane.xlu0 %8530 }
0x4daa   :  { %10588 = vrcp.f32 %v8531_v17 }
0x4dad   :  { %v8540_v18 = vpop.permute.xlu0 %8539 }
0x4dae   :  { %10222 = vmatpush3.msra.mxu1 %v8540_v18  ;;  %v12444_v18 = vld [vmem:[#allocation23] ss:$0 sm:$0xff] }
0x4daf   :  { %10231 = vmatprep.subr.mxu1 %v10985_v48 }
0x4db4   :  { %v10589_v36 = vpop.eup %10588 }
0x4db5   :  { %v8533_v13 = vmul.f32 %v10589_v36, %v10587_v2 }
0x4db7   :  { %10224 = vmatmul.mubr.msk.f32.vlgmr.msra.gmra.mrb[90].mxu1 %vm488_vm2, %v8533_v13 }
0x4db8   :  { %10232 = vmatpush3.xpose.msk.msra.mxu1 %vm488_vm2, %v8690_v23  ;;  %10233 = vmatprep.mubr.msk.f32.mxu1 %vm10986_vm1, %v10985_v48 }
0x4db9   :  { %10241 = vmatprep.subr.mxu1 %v10985_v48 }
0x4dbb   :  { %10234 = vmatmul.mubr.msk.f32.vlgmr.msra.gmra.mrb[92].mxu1 %vm488_vm2, %v11832_v56 }
0x4dbc   :  { %10242 = vmatpush3.msra.mxu1 %v12314_v46  ;;  %10243 = vmatprep.mubr.msk.f32.mxu1 %vm10986_vm1, %v10985_v48 }
0x4e8a   :  { %v8610_v58 = vpop.f32.mrb[90].mxu1 }
0x4e8b   :  { %v10225_v25 = vpop.f32.mrb[91].mxu1  ;;  %10229 = vmatmul.mubr.msk.f32.vlgmr.msra.gmra.mrb[106].mxu0 %vm488_vm2, %v8610_v58  ;;  %v8984_v58 = vld [vmem:[%s12668_s12] sm:$0xff] }
0x4e8c   :  { %10238 = vmatprep.mubr.msk.f32.mxu0 %vm10986_vm1, %v10985_v48  ;;  %v10372_v25 = vpack.c.bf16 %v8985_v44, %v8984_v58  ;;  %vm7099_vm1 = vcmask 851712  }
0x4e8e   :  { %v8759_v47 = vpop.f32.mrb[92].mxu1 }
0x4e8f   :  { %v10235_v56 = vpop.f32.mrb[93].mxu1  ;;  %v8763_v46 = vsel %vm488_vm2, %v8759_v47, -inf }
0x4e90   :  { %8764 = vmax.xlane.f32.xlu1 %v8763_v46  ;;  %v9090_v56 = vld [vmem:[%s12670_s14 + $0x40] sm:$0xff]  ;;  %v9091_v46 = vld [vmem:[%s12670_s14 + $0x48] sm:$0xff] }
0x4e94   :  { %8941 = vadd.xlane.f32.xlu1 %v8940_v52  ;;  %v10396_v52 = vpack.c.bf16 %v9091_v46, %v9090_v56 }
0x4f1d   :  { %v8765_v55 = vpop.xlane.xlu1 %8764 }
0x4f1e   :  { %v8766_v50 = vsub.f32 %v8759_v47, %v8765_v55  ;;  %v9089_v47 = vld [vmem:[%s12670_s14 + $0x38] sm:$0xff]  ;;  %v9092_v55 = vld [vmem:[%s12670_s14 + $0x50] sm:$0xff] }
0x4f20   :  { %v8767_v21 = vmul.f32 1.442695, %v8766_v50  ;;  %v9093_v50 = vld [vmem:[%s12670_s14 + $0x58] sm:$0xff] }
0x4f22   :  { %10590 = vpow2.f32 %v8767_v21  ;;  %v10400_v21 = vpack.c.bf16 %v9093_v50, %v9092_v55 }
0x4f2c   :  { %v10591_v27 = vpop.eup %10590 }
0x4f2d   :  { %v8769_v40 = vsel %vm488_vm2, %v10591_v27, 0.0 }
0x4f2e   :  { %8770 = vadd.xlane.f32.xlu0 %v8769_v40 }
0x4f44   :  { %8779 = vrot.lane.b32.xlu0 %v12185_v38, %s10994_s6 }
0x4f48   :  { %1059 = vrot.lane.b32.xlu0 %v11452_v42, %s10998_s10 }
0x4f4c   :  { %1304 = vrot.lane.b32.xlu0 %v11482_v3, %s10999_s17 }
0x4f50   :  { %1716 = vrot.lane.b32.xlu0 %v11533_v37, %s12703_s20 }
0x4f54   :  { %2032 = vrot.lane.b32.xlu0 %v11564_v1, %s10998_s10 }
0x4f58   :  { %2665 = vrot.lane.b32.xlu0 %v11652_v39, %s11000_s13 }
0x4f5c   :  { %3153 = vrot.lane.b32.xlu0 %v11703_v11, %s10996_s3 }
0x4f5e   :  { %v8684_v48 = vpop.f32.mrb[106].mxu0 }
0x4f5f   :  { %v8688_v38 = vadd.f32 %v8684_v48, %v8446_v10  ;;  %v10230_v59 = vpop.f32.mrb[107].mxu0 }
0x4f60   :  { %3641 = vrot.lane.b32.xlu0 %v11784_v12, %s11000_s13 }
0x4f64   :  { %4127 = vrot.lane.b32.xlu0 %v11824_v54, %s10996_s3 }
0x4f68   :  { %5003 = vrot.lane.b32.xlu0 %v11963_v31, %s10989_s19 }
0x4f6c   :  { %5491 = vrot.lane.b32.xlu0 %v12023_v32, %s10993_s27 }
0x4f70   :  { %5980 = vrot.lane.b32.xlu0 %v12099_v60, %s10989_s19  ;;  %v8942_v60 = vpop.xlane.xlu1 %8941 }
0x4f74   :  { %6466 = vrot.lane.b32.xlu0 %v12136_v49, %s10993_s27  ;;  %v8946_v49 = vmul.f32 0.03125, %v8942_v60 }
0x4f76   :  { %v8948_v14 = vsub.f32 %v8938_v30, %v8946_v49 }
0x4f78   :  { %7096 = vrot.lane.b32.xlu0 %v12214_v7, %s10987_s9  ;;  %v8950_v10 = vmul.f32 %v8948_v14, %v8948_v14 }
0x4f7a   :  { %v8952_v62 = vsel %vm266_vm0, %v8950_v10, 0.0 }
0x4f7c   :  { %7576 = vrot.lane.b32.xlu0 %v12261_v8, %s10992_s11 }
0x4f80   :  { %8057 = vrot.lane.b32.xlu0 %v12334_v15, %s10987_s9 }
0x4f84   :  { %8535 = vrot.lane.b32.xlu0 %v8533_v13, %s10992_s11  ;;  %v12446_v13 = vld [vmem:[#allocation25] ss:$0 sm:$0xff] }
0x4fbb   :  { %v8771_v42 = vpop.xlane.xlu0 %8770 }
0x4fbc   :  { %10592 = vrcp.f32 %v8771_v42 }
0x4fbf   :  { %v8780_v3 = vpop.permute.xlu0 %8779 }
0x4fc0   :  { %10237 = vmatpush3.msra.mxu0 %v8780_v3 }
0x4fc1   :  { %10373 = vmatprep.subr.bf16.mxu0 %v10372_v25 }
0x4fc3   :  { %v12419_v37 = vpop.permute.xlu0 %1059 }
0x4fc6   :  { %v10593_v1 = vpop.eup %10592 }
0x4fc7   :  { %v12421_v39 = vmul.f32 %v10593_v1, %v10591_v27  ;;  %v12423_v11 = vpop.permute.xlu0 %1304 }
0x4fc9   :  { %10239 = vmatmul.mubr.msk.f32.vlgmr.msra.gmra.mrb[108].mxu0 %vm488_vm2, %v12421_v39 }
0x4fca   :  { %10375 = vmatpush3.bf16.msra.mxu0 %v10372_v25 }
0x4fcb   :  { %v1717_v12 = vpop.permute.xlu0 %1716 }
0x4fcc   :  { %9242 = vst.msk [vmem:[%s12679_s23 + $0x8] sm:$0xff] %vm745_vm5, %v1717_v12 }
0x4fcf   :  { %v2033_v54 = vpop.permute.xlu0 %2032 }
0x4fd0   :  { %9248 = vst.msk [vmem:[%s12679_s23 + $0x8] sm:$0xff] %vm1062_vm6, %v2033_v54 }
0x4fd3   :  { %v2666_v27 = vpop.permute.xlu0 %2665 }
0x4fd7   :  { %v3154_v40 = vpop.permute.xlu0 %3153 }
0x4fdb   :  { %v3642_v48 = vpop.permute.xlu0 %3641 }
0x509c   :  { %v8850_v31 = vpop.f32.mrb[108].mxu0 }
0x509d   :  { %v10240_v32 = vpop.f32.mrb[109].mxu0  ;;  %10244 = vmatmul.mubr.msk.f32.vlgmr.msra.gmra.mrb[94].mxu1 %vm488_vm2, %v8850_v31  ;;  %vm7266_vm2 = vcmask 917312  }
0x5170   :  { %v8924_v7 = vpop.f32.mrb[94].mxu1 }
0x5171   :  { %v8928_v8 = vadd.f32 %v8924_v7, %v8688_v38  ;;  %v10245_v15 = vpop.f32.mrb[95].mxu1  ;;  %v4128_v38 = vpop.permute.xlu0 %4127 }
0x5173   :  { %v8937_v35 = vadd.f32 %v12380_v26, %v8928_v8 }
0x5175   :  { %v8939_v29 = vmul.f32 2.0, %v8937_v35 }
0x5177   :  { %v8943_v9 = vsel %vm266_vm0, %v8939_v29, 0.0 }
0x5178   :  { %8944 = vadd.xlane.f32.xlu1 %v8943_v9 }
0x517c   :  { %8953 = vadd.xlane.f32.xlu1 %v8952_v62 }
0x5205   :  { %v8945_v53 = vpop.xlane.xlu1 %8944 }
0x5206   :  { %v8947_v57 = vmul.f32 0.03125, %v8945_v53 }
0x5208   :  { %v12439_v16 = vsub.f32 %v8939_v29, %v8947_v57 }
0x5209   :  { %v8954_v20 = vpop.xlane.xlu1 %8953 }
0x520a   :  { %v8958_v33 = vmul.f32 0.03125, %v8954_v20  ;;  %v8951_v61 = vmul.f32 %v12439_v16, %v12439_v16 }
0x520c   :  { %v8960_v2 = vadd.f32 1e-05, %v8958_v33  ;;  %v8955_v4 = vsel %vm266_vm0, %v8951_v61, 0.0 }
0x520d   :  { %8956 = vadd.xlane.f32.xlu1 %v8955_v4  ;;  %v9094_v4 = vld [vmem:[%s12670_s14 + $0x60] sm:$0xff] }
0x520e   :  { %10594 = vrsqrt.f32 %v8960_v2 }
0x5218   :  { %v10595_v17 = vpop.eup %10594 }
0x5219   :  { %v8964_v36 = vmul.f32 %v10595_v17, %v8948_v14  ;;  %v9095_v17 = vld [vmem:[%s12670_s14 + $0x68] sm:$0xff] }
0x521b   :  { %v8973_v23 = vmul.f32 %v12444_v18, %v8964_v36  ;;  %v9096_v36 = vld [vmem:[%s12670_s14 + $0x70] sm:$0xff] }
0x521d   :  { %v8982_v26 = vadd.f32 %v12446_v13, %v8973_v23 }
0x521e   :  { %742 = vrot.lane.b32.xlu1 %v11417_v19, %s12703_s20  ;;  %v8986_v19 = vld [vmem:[%s12668_s12 + $0x10] sm:$0xff] }
0x521f   :  { %10254 = vmatprep.mubr.msk.f32.mxu0 %vm266_vm0, %v8982_v26  ;;  %v9391_v26 = vld [vmem:[#allocation14] ss:$0 sm:$0xff] }
0x5222   :  { %2276 = vrot.lane.b32.xlu1 %v11592_v28, %s10999_s17  ;;  %v8987_v28 = vld [vmem:[%s12668_s12 + $0x18] sm:$0xff] }
0x5226   :  { %2836 = vrot.lane.b32.xlu1 %v11660_v43, %s10997_s15  ;;  %v10376_v43 = vpack.c.bf16 %v8987_v28, %v8986_v19 }
0x5228   :  { %10377 = vmatprep.subr.bf16.mxu0 %v10376_v43 }
0x5229   :  { %10379 = vmatpush3.bf16.msra.mxu0 %v10376_v43 }
0x522a   :  { %3398 = vrot.lane.b32.xlu1 %v11736_v34, %s10991_s18  ;;  %v9082_v34 = vld [vmem:[%s12670_s14] sm:$0xff] }
0x522e   :  { %3811 = vrot.lane.b32.xlu1 %v11790_v22, %s10997_s15  ;;  %v9083_v22 = vld [vmem:[%s12670_s14 + $0x8] sm:$0xff] }
0x5232   :  { %4371 = vrot.lane.b32.xlu1 %v11848_v24, %s10991_s18  ;;  %v9084_v24 = vld [vmem:[%s12670_s14 + $0x10] sm:$0xff] }
0x5236   :  { %5174 = vrot.lane.b32.xlu1 %v11998_v63, %s10994_s6  ;;  %v10380_v63 = vpack.c.bf16 %v9083_v22, %v9082_v34 }
0x5238   :  { %10381 = vmatprep.subr.bf16.mxu1 %v10380_v63 }
0x5239   :  { %10383 = vmatpush3.bf16.msra.mxu1 %v10380_v63 }
0x523a   :  { %5736 = vrot.lane.b32.xlu1 %v12055_v5, %s10988_s1  ;;  %v9085_v5 = vld [vmem:[%s12670_s14 + $0x18] sm:$0xff] }
0x523e   :  { %6150 = vrot.lane.b32.xlu1 %v12105_v0, %s10994_s6  ;;  %v10384_v0 = vpack.c.bf16 %v9085_v5, %v9084_v24  ;;  %v9394_v24 = vld [vmem:[#allocation16] ss:$0 sm:$0xff] }
0x5240   :  { %10385 = vmatprep.subr.bf16.mxu1 %v10384_v0 }
0x5241   :  { %10387 = vmatpush3.bf16.msra.mxu1 %v10384_v0 }
0x5242   :  { %6710 = vrot.lane.b32.xlu1 %v12158_v51, %s10988_s1  ;;  %v9086_v51 = vld [vmem:[%s12670_s14 + $0x20] sm:$0xff] }
0x5246   :  { %7263 = vrot.lane.b32.xlu1 %v12222_v6, %s10995_s28  ;;  %v9087_v6 = vld [vmem:[%s12670_s14 + $0x28] sm:$0xff] }
0x524a   :  { %7817 = vrot.lane.b32.xlu1 %v12290_v45, %s10990_s24  ;;  %v10388_v45 = vpack.c.bf16 %v9087_v6, %v9086_v51 }
0x524c   :  { %10389 = vmatprep.subr.bf16.mxu1 %v10388_v45 }
0x524d   :  { %10391 = vmatpush3.bf16.msra.mxu1 %v10388_v45 }
0x524e   :  { %8223 = vrot.lane.b32.xlu1 %v12340_v41, %s10995_s28  ;;  %v9088_v41 = vld [vmem:[%s12670_s14 + $0x30] sm:$0xff] }
0x524f   :  { %v10392_v30 = vpack.c.bf16 %v9089_v47, %v9088_v41 }
0x5251   :  { %10393 = vmatprep.subr.bf16.mxu1 %v10392_v30 }
0x5252   :  { %8775 = vrot.lane.b32.xlu1 %v12421_v39, %s10990_s24  ;;  %10395 = vmatpush3.bf16.msra.mxu1 %v10392_v30  ;;  %v5004_v39 = vpop.permute.xlu0 %5003 }
0x5253   :  { %10397 = vmatprep.subr.bf16.mxu1 %v10396_v52 }
0x5256   :  { %10399 = vmatpush3.bf16.msra.mxu1 %v10396_v52 }
0x5257   :  { %10401 = vmatprep.subr.bf16.mxu1 %v10400_v21 }
0x525a   :  { %10403 = vmatpush3.bf16.msra.mxu1 %v10400_v21 }
0x529a   :  { %v8957_v59 = vpop.xlane.xlu1 %8956 }
0x529b   :  { %v8959_v42 = vmul.f32 0.03125, %v8957_v59 }
0x529d   :  { %v8961_v3 = vadd.f32 1e-05, %v8959_v42 }
0x529e   :  { %v743_v1 = vpop.permute.xlu1 %742 }
0x529f   :  { %10596 = vrsqrt.f32 %v8961_v3  ;;  %746 = vst.msk [vmem:[%s12679_s23] sm:$0xff] %vm745_vm5, %v743_v1 }
0x52a0   :  { %1063 = vst.msk [vmem:[%s12679_s23] sm:$0xff] %vm1062_vm6, %v12419_v37  ;;  %v5492_v37 = vpop.permute.xlu0 %5491 }
0x52a1   :  { %1308 = vst.msk [vmem:[%s12679_s23] sm:$0xff] %vm1307_vm7, %v12423_v11 }
0x52a2   :  { %v2277_v12 = vpop.permute.xlu1 %2276  ;;  %2669 = vst.msk [vmem:[%s12679_s23] sm:$0xff] %vm2668_vm8, %v2666_v27 }
0x52a3   :  { %9253 = vst.msk [vmem:[%s12679_s23 + $0x8] sm:$0xff] %vm1307_vm7, %v2277_v12 }
0x52a4   :  { %9280 = vst.msk [vmem:[%s12679_s23 + $0x8] sm:$0xff] %vm2668_vm8, %v3642_v48  ;;  %v5981_v60 = vpop.permute.xlu0 %5980 }
0x52a6   :  { %v2837_v54 = vpop.permute.xlu1 %2836 }
0x52a7   :  { %2840 = vst.msk [vmem:[%s12679_s23] sm:$0xff] %vm2839_vm9, %v2837_v54 }
0x52a8   :  { %3157 = vst.msk [vmem:[%s12679_s23] sm:$0xff] %vm3156_vm10, %v3154_v40  ;;  %v6467_v15 = vpop.permute.xlu0 %6466 }
0x52a9   :  { %v10597_v11 = vpop.eup %10596 }
0x52aa   :  { %v8965_v31 = vmul.f32 %v10597_v11, %v12439_v16  ;;  %v3399_v32 = vpop.permute.xlu1 %3398 }
0x52ab   :  { %3402 = vst.msk [vmem:[%s12679_s23] sm:$0xff] %vm3401_vm11, %v3399_v32 }
0x52ac   :  { %v8974_v49 = vmul.f32 %v12444_v18, %v8965_v31  ;;  %5007 = vst.msk [vmem:[%s12679_s23] sm:$0xff] %vm5006_vm12, %v5004_v39  ;;  %v7097_v29 = vpop.permute.xlu0 %7096  ;;  %v10404_v18 = vpack.c.bf16 %v9095_v17, %v9094_v4 }
0x52ae   :  { %v3812_v7 = vpop.permute.xlu1 %3811  ;;  %v8983_v8 = vadd.f32 %v12446_v13, %v8974_v49  ;;  %10405 = vmatprep.subr.bf16.mxu1 %v10404_v18  ;;  %v9097_v13 = vld [vmem:[%s12670_s14 + $0x78] sm:$0xff]  ;;  %s11001_s14 = smov [#allocation26]  }
0x52af   :  { %9284 = vst.msk [vmem:[%s12679_s23 + $0x8] sm:$0xff] %vm2839_vm9, %v3812_v7  ;;  %10407 = vmatpush3.bf16.msra.mxu1 %v10404_v18  ;;  %v10408_v23 = vpack.c.bf16 %v9097_v13, %v9096_v36 }
0x52b0   :  { %9290 = vst.msk [vmem:[%s12679_s23 + $0x8] sm:$0xff] %vm3156_vm10, %v4128_v38  ;;  %10255 = vmatmul.mubr.msk.f32.vlgmr.msra.gmra.mrb[110].mxu0 %vm266_vm0, %v8983_v8  ;;  %v7577_v10 = vpop.permute.xlu0 %7576 }
0x52b1   :  { %10409 = vmatprep.subr.bf16.mxu1 %v10408_v23 }
0x52b2   :  { %v4372_v14 = vpop.permute.xlu1 %4371 }
0x52b3   :  { %9295 = vst.msk [vmem:[%s12679_s23 + $0x8] sm:$0xff] %vm3401_vm11, %v4372_v14  ;;  %10411 = vmatpush3.bf16.msra.mxu1 %v10408_v23 }
0x52b4   :  { %9328 = vst.msk [vmem:[%s12679_s23 + $0x8] sm:$0xff] %vm5006_vm12, %v5981_v60  ;;  %v8058_v57 = vpop.permute.xlu0 %8057 }
0x52b6   :  { %v5175_v35 = vpop.permute.xlu1 %5174 }
0x52b7   :  { %5178 = vst.msk [vmem:[%s12679_s23] sm:$0xff] %vm5177_vm13, %v5175_v35 }
0x52b8   :  { %5495 = vst.msk [vmem:[%s12679_s23] sm:$0xff] %vm5494_vm14, %v5492_v37  ;;  %v8536_v61 = vpop.permute.xlu0 %8535 }
0x52ba   :  { %v5737_v9 = vpop.permute.xlu1 %5736 }
0x52bb   :  { %5740 = vst.msk [vmem:[%s12679_s23] sm:$0xff] %vm5739_vm15, %v5737_v9 }
0x52bc   :  { %7100 = vst.msk [vmem:[%s12679_s23] sm:$0xff] %vm7099_vm1, %v7097_v29 }
0x52be   :  { %v6151_v62 = vpop.permute.xlu1 %6150 }
0x52bf   :  { %9332 = vst.msk [vmem:[%s12679_s23 + $0x8] sm:$0xff] %vm5177_vm13, %v6151_v62 }
0x52c0   :  { %9338 = vst.msk [vmem:[%s12679_s23 + $0x8] sm:$0xff] %vm5494_vm14, %v6467_v15 }
0x52c2   :  { %v6711_v53 = vpop.permute.xlu1 %6710 }
0x52c3   :  { %9343 = vst.msk [vmem:[%s12679_s23 + $0x8] sm:$0xff] %vm5739_vm15, %v6711_v53 }
0x52c4   :  { %9370 = vst.msk [vmem:[%s12679_s23 + $0x8] sm:$0xff] %vm7099_vm1, %v8058_v57 }
0x52c6   :  { %v7264_v16 = vpop.permute.xlu1 %7263 }
0x52c7   :  { %7267 = vst.msk [vmem:[%s12679_s23] sm:$0xff] %vm7266_vm2, %v7264_v16 }
0x52c8   :  { %7580 = vst.msk [vmem:[%s12679_s23] sm:$0xff] %vm7579_vm3, %v7577_v10 }
0x52ca   :  { %v7818_v20 = vpop.permute.xlu1 %7817 }
0x52cb   :  { %7821 = vst.msk [vmem:[%s12679_s23] sm:$0xff] %vm7820_vm4, %v7818_v20 }
0x52ce   :  { %v8224_v33 = vpop.permute.xlu1 %8223 }
0x52cf   :  { %9374 = vst.msk [vmem:[%s12679_s23 + $0x8] sm:$0xff] %vm7266_vm2, %v8224_v33 }
0x52d0   :  { %9380 = vst.msk [vmem:[%s12679_s23 + $0x8] sm:$0xff] %vm7579_vm3, %v8536_v61 }
0x52d2   :  { %v8776_v2 = vpop.permute.xlu1 %8775 }
0x52d3   :  { %9385 = vst.msk [vmem:[%s12679_s23 + $0x8] sm:$0xff] %vm7820_vm4, %v8776_v2  ;;  %s9189_s23 = sshll.u32 %s11001_s14, 4  ;;  %s9190_s23 = int_to_ptr.vmem [resolvable:$true] %s9189_s23 }
0x52d4   :  { %s10928_s2 = scalar_lea.vmem %s9190_s23, 256  ;;  %p10933_p9 = scmp.lt.s32.totalorder %s9190_s23, %s9190_s23 }
0x52d5   :  { %p10929_p8 = scmp.ne.s32.totalorder %s9190_s23, %s10928_s2  ;;  %p10934_p10 = scmp.lt.s32.totalorder %s10928_s2, %s10928_s2 }
0x52d7   :  { %p10935_p11 = por %p10934_p10, %p10933_p9 }
0x52d9   :  { %p10936_p12 = pnand %p10935_p11, %p10929_p8 }
0x5383   :  { %v10256_v58 = vpop.f32.mrb[110].mxu0 }
0x5384   :  { %v9073_v44 = vadd.f32 %v10256_v58, %v9391_v26  ;;  %v9067_v25 = vpop.f32.mrb[111].mxu0 }
0x5385   :  { %v9068_v19 = vadd.f32 %v9391_v26, %v9067_v25 }
0x5386   :  { %v9079_v28 = vmul.f32 0.01, %v9073_v44  ;;  %vm9077_vm5 = vcmp.ge.f32.partialorder %v9073_v44, 0.0 }
0x5387   :  { %v9078_v43 = vmul.f32 0.01, %v9068_v19  ;;  %vm9076_vm6 = vcmp.ge.f32.partialorder %v9068_v19, 0.0 }
0x5388   :  { %v9081_v22 = vsel %vm9077_vm5, %v9073_v44, %v9079_v28 }
0x5389   :  { %v9080_v34 = vsel %vm9076_vm6, %v9068_v19, %v9078_v43 }
0x538a   :  { %10289 = vmatprep.mubr.f32.mxu1 %v9080_v34 }
0x538b   :  { %10290 = vmatmul.mubr.f32.vlgmr.msra.gmra.mrb[96].mxu1 %v9081_v22 }
0x545e   :  { %v10291_v63 = vpop.f32.mrb[96].mxu1 }
0x545f   :  { %v9177_v5 = vadd.f32 %v10291_v63, %v9394_v24  ;;  %v9171_v0 = vpop.f32.mrb[97].mxu1 }
0x5460   :  { %v9172_v51 = vadd.f32 %v9394_v24, %v9171_v0 }
0x5461   :  { %v9181_v6 = vmul.f32 2.0, %v9177_v5 }
0x5462   :  { %v9180_v45 = vmul.f32 2.0, %v9172_v51 }
0x5463   :  { %9183 = vst.msk [vmem:[#allocation26 + $0x8] sm:$0xff] %vm266_vm0, %v9181_v6 }
0x5464   :  { %9182 = vst.msk [vmem:[#allocation26] sm:$0xff] %vm266_vm0, %v9180_v45 }
0x5465   :  { %10939 = shalt.err (!%p10936_p12)
}
0x5466   :  { %s10940_s13 = scalar_lea.hbm %s12678_s22, 256 }
0x5467   :  { %p10941_p13 = scmp.ne.s32.totalorder %s12678_s22, %s10940_s13  ;;  %p10944_p0 = scmp.lt.u32.totalorder %s10940_s13, %s12678_s22 }
0x5469   :  { %p10946_p1 = pnand %p10944_p0, %p10941_p13 }
0x546b   :  { %10949 = shalt.err (!%p10946_p1)
}
0x546c   :  { %9195 = dma.vmem_to_hbm [thread:$0]  %s9190_s23, 256, %s12678_s22, [#allocation4], %s12704_s29, %s12704_s29, %s12703_s20  }
0x546d   :  { %10966 = dma.done.wait [#allocation4], 256  }
0x546e   :  { %10967 = vsyncadd [#allocation4], 4294967040 }
0x546f   :  { %9203 = vsyncpa [#allocation3], 1 }
0x5470   :  { %9204 = vsyncpa [#allocation6], 1 }
0x5471   :  { %9205 = vsyncpa [#allocation9], 1 }
0x5472   :  { %9206 = vsyncpa [#allocation12], 1 }
0x5473   :  { %9207 = vsyncpa [#allocation15], 1 }
0x5474   :  { %9208 = vsyncpa [#allocation18], 1 }
0x5475   :  { %9209 = vsyncpa [#allocation21], 1 }
0x5476   :  { %9210 = vsyncpa [#allocation24], 1 }
0x5477   :  { %9211 = vsyncpa [#allocation4], 1 }

</bundles_post_ra>
